<compile_context>
chip_gen: v7x
topology: tpu7x:2x2x1
jax: 0.10.0
libtpu: 0.0.40
codegen_flags: <defaults>
</compile_context>

<pallas_src>
import jax
import jax.numpy as jnp
from jax import lax
from jax.experimental import pallas as pl
from jax.experimental.pallas import tpu as pltpu


_COMPILER_PARAMS = pltpu.CompilerParams(
    dimension_semantics=("parallel",),
    vmem_limit_bytes=32 * 1024 * 1024,
)


# ----------------------------------------------------------------------------
# shared in-kernel helpers
# ----------------------------------------------------------------------------
def _zero_window_border(win_ref):
    """Zero only the 1-pixel halo border of a (H+2, W+2, C) VMEM window."""
    Hp, Wp, C = win_ref.shape
    dt = win_ref.dtype
    win_ref[0:1] = jnp.zeros((1, Wp, C), dt)
    win_ref[Hp - 1:Hp] = jnp.zeros((1, Wp, C), dt)
    win_ref[:, 0:1, :] = jnp.zeros((Hp, 1, C), dt)
    win_ref[:, Wp - 1:Wp, :] = jnp.zeros((Hp, 1, C), dt)


def _conv3x3_from_window(win_ref, w_ref):
    """3x3 'same' conv from a zero-padded VMEM window.

    win_ref: (H+2, W+2, Cin) VMEM scratch (borders already zero)
    w_ref  : (3, 3, Cin, Cout) VMEM weights
    returns: (H*W, Cout) float32 accumulator held in registers.
    """
    Hp, Wp, Cin = win_ref.shape
    H, W = Hp - 2, Wp - 2
    acc = None
    for dy in range(3):                      # static unroll
        rows = win_ref[dy:dy + H]            # one VMEM load per dy: (H, W+2, Cin)
        for dx in range(3):
            # dx shift is a register slice of the already-loaded rows.
            # TODO(synk): group the 3 dx taps into one K=3*Cin matmul per dy
            # (minor-dim concat im2col) once that layout is validated; kept as
            # register-accumulated per-tap dots for lowering robustness.
            patch = rows[:, dx:dx + W, :].reshape(H * W, Cin)
            contrib = jnp.dot(patch, w_ref[dy, dx],
                              preferred_element_type=jnp.float32)
            acc = contrib if acc is None else acc + contrib
    return acc


def _write_stats(stat_ref, acc):
    # BatchNorm partial statistics epilogue (sum, sum_sq), reduced across the
    # batch in tiny plain-JAX glue.
    # TODO(synk): E[x^2]-E[x]^2 can cancel for large activation means; a
    # Welford-style merge would be safer for deep nets.
    stat_ref[0, 0, 0:1, :] = jnp.sum(acc, axis=0, keepdims=True)
    stat_ref[0, 0, 1:2, :] = jnp.sum(acc * acc, axis=0, keepdims=True)


# ----------------------------------------------------------------------------
# Kernel A: fused 2x2 max-pool + conv1 (3x3, pad=1) + BN1 partial stats
# ----------------------------------------------------------------------------
def _pool_conv1_stats_kernel(x_ref, w_ref, c1_ref, stat_ref, win_ref):
    # x_ref   : (1, H2, 2, W2, 2*Cin) f32  raw input, pool window folded in
    # w_ref   : (3, 3, Cin, Cout)          conv1 weights (compute dtype)
    # c1_ref  : (1, H2, W2, Cout)  f32     conv1 output (pre-BN)
    # stat_ref: (1, 1, 2, Cout)    f32     per-image (sum, sum_sq)
    # win_ref : (H2+2, W2+2, Cin)  VMEM    zero-padded pooled window scratch
    H2, W2 = c1_ref.shape[1], c1_ref.shape[2]
    Cin = win_ref.shape[2]

    # Vectorized 2x2 max-pool in f32 (whole-image VPU ops, no per-row loop).
    xall = x_ref[0]                                   # (H2, 2, W2, 2*Cin)
    v = jnp.maximum(xall[:, 0], xall[:, 1])           # max over row pair
    pooled = jnp.maximum(v[..., :Cin], v[..., Cin:])  # max over col pair

    _zero_window_border(win_ref)
    win_ref[1:1 + H2, 1:1 + W2, :] = pooled.astype(win_ref.dtype)

    acc = _conv3x3_from_window(win_ref, w_ref)        # (H2*W2, Cout) f32
    c1_ref[0] = acc.reshape(H2, W2, -1).astype(c1_ref.dtype)
    _write_stats(stat_ref, acc)


def pool_conv1_stats(x5, w1, cout, compute_dtype):
    N, H2, _, W2, two_cin = x5.shape
    cin = two_cin // 2
    # TODO(synk): for large H,W row-tile this kernel (duplicated-halo layout or
    # manual double-buffered halo DMA) so blocks fit v7x's 64 MiB VMEM;
    # full-image blocks are fine at these demo shapes.
    return pl.pallas_call(
        _pool_conv1_stats_kernel,
        out_shape=(jax.ShapeDtypeStruct((N, H2, W2, cout), jnp.float32),
                   jax.ShapeDtypeStruct((N, 1, 2, cout), jnp.float32)),
        grid=(N,),
        in_specs=[pl.BlockSpec((1, H2, 2, W2, two_cin),
                               lambda n: (n, 0, 0, 0, 0)),
                  pl.BlockSpec((3, 3, cin, cout), lambda n: (0, 0, 0, 0))],
        out_specs=(pl.BlockSpec((1, H2, W2, cout), lambda n: (n, 0, 0, 0)),
                   pl.BlockSpec((1, 1, 2, cout), lambda n: (n, 0, 0, 0))),
        scratch_shapes=[pltpu.VMEM((H2 + 2, W2 + 2, cin), compute_dtype)],
        compiler_params=_COMPILER_PARAMS,
    )(x5, w1)


# ----------------------------------------------------------------------------
# Kernel B: BN1+ReLU fused into conv2's load + conv2 + BN2 partial stats
# ----------------------------------------------------------------------------
def _bnrelu_conv2_stats_kernel(c1_ref, s_ref, t_ref, w_ref,
                               c2_ref, stat_ref, win_ref):
    # c1_ref  : (1, H2, W2, C) f32    conv1 output
    # s_ref/t_ref: (1, C) f32         BN1 scale/shift
    # w_ref   : (3, 3, C, Cout)       conv2 weights (compute dtype)
    # c2_ref  : (1, H2, W2, Cout) f32 conv2 output (pre-BN)
    # stat_ref: (1, 1, 2, Cout) f32
    # win_ref : (H2+2, W2+2, C) VMEM  zero-padded activation window scratch
    H2, W2 = c1_ref.shape[1], c1_ref.shape[2]

    # BN1 + ReLU applied in f32 on the loaded block; padded activation tensor
    # never exists in HBM.
    a1 = jnp.maximum(c1_ref[0] * s_ref[...] + t_ref[...], 0.0)

    _zero_window_border(win_ref)
    win_ref[1:1 + H2, 1:1 + W2, :] = a1.astype(win_ref.dtype)

    acc = _conv3x3_from_window(win_ref, w_ref)
    c2_ref[0] = acc.reshape(H2, W2, -1).astype(c2_ref.dtype)
    _write_stats(stat_ref, acc)


def bnrelu_conv2_stats(c1, s1, t1, w2, compute_dtype):
    N, H2, W2, C = c1.shape
    cout = w2.shape[3]
    return pl.pallas_call(
        _bnrelu_conv2_stats_kernel,
        out_shape=(jax.ShapeDtypeStruct((N, H2, W2, cout), jnp.float32),
                   jax.ShapeDtypeStruct((N, 1, 2, cout), jnp.float32)),
        grid=(N,),
        in_specs=[pl.BlockSpec((1, H2, W2, C), lambda n: (n, 0, 0, 0)),
                  pl.BlockSpec((1, C), lambda n: (0, 0)),
                  pl.BlockSpec((1, C), lambda n: (0, 0)),
                  pl.BlockSpec((3, 3, C, cout), lambda n: (0, 0, 0, 0))],
        out_specs=(pl.BlockSpec((1, H2, W2, cout), lambda n: (n, 0, 0, 0)),
                   pl.BlockSpec((1, 1, 2, cout), lambda n: (n, 0, 0, 0))),
        scratch_shapes=[pltpu.VMEM((H2 + 2, W2 + 2, C), compute_dtype)],
        compiler_params=_COMPILER_PARAMS,
    )(c1, s1, t1, w2)


# ----------------------------------------------------------------------------
# Kernel C: final BN2 + ReLU (emits only the true Cout channels, f32)
# ----------------------------------------------------------------------------
def _bn_relu_kernel(y_ref, s_ref, t_ref, o_ref):
    o_ref[0] = jnp.maximum(y_ref[0] * s_ref[...] + t_ref[...],
                           0.0).astype(o_ref.dtype)


def bn_relu(y, scale, shift):
    N, H2, W2, C = y.shape
    return pl.pallas_call(
        _bn_relu_kernel,
        out_shape=jax.ShapeDtypeStruct((N, H2, W2, C), jnp.float32),
        grid=(N,),
        in_specs=[pl.BlockSpec((1, H2, W2, C), lambda n: (n, 0, 0, 0)),
                  pl.BlockSpec((1, C), lambda n: (0, 0)),
                  pl.BlockSpec((1, C), lambda n: (0, 0))],
        out_specs=pl.BlockSpec((1, H2, W2, C), lambda n: (n, 0, 0, 0)),
        compiler_params=_COMPILER_PARAMS,
    )(y, scale, shift)


# ----------------------------------------------------------------------------
# Tiny plain-JAX glue (weight re-layout, BN stats reduction)
# ----------------------------------------------------------------------------
def _prep_conv_weight(w_oihw, dtype):
    # PyTorch (Cout, Cin, 3, 3) -> (3, 3, Cin, Cout).
    return jnp.transpose(w_oihw, (2, 3, 1, 0)).astype(dtype)


def _finalize_stats(stats, gamma, beta, count, eps):
    # stats: (N, 1, 2, C) per-image (sum, sum_sq) -> per-channel scale/shift.
    tot = jnp.sum(stats, axis=(0, 1))                 # (2, C)
    mean = tot[0] / count
    var = jnp.maximum(tot[1] / count - mean * mean, 0.0)
    scale = gamma.astype(jnp.float32) * lax.rsqrt(var + eps)
    shift = beta.astype(jnp.float32) - mean * scale
    return scale.reshape(1, -1), shift.reshape(1, -1)


# ----------------------------------------------------------------------------
# DownSample forward (NCHW in / NCHW out, matching PyTorch)
# ----------------------------------------------------------------------------
def downsample_forward(x_nchw, p, *, compute_dtype=jnp.bfloat16, eps=1e-5):
    N, Cin, H, W = x_nchw.shape
    Cout = p["w1"].shape[0]
    H2, W2 = H // 2, W // 2

    # NCHW -> NHWC, then fold the 2x2 pool window into (row-pair, lane) axes.
    # Both reshapes are zero-copy regroupings of contiguous data.
    x = jnp.transpose(x_nchw, (0, 2, 3, 1))
    x5 = x.reshape(N, H2, 2, W2, 2 * Cin)

    w1 = _prep_conv_weight(p["w1"], compute_dtype)
    w2 = _prep_conv_weight(p["w2"], compute_dtype)
    # NOTE: conv biases p["b1"], p["b2"] are intentionally unused -- a constant
    # per-channel offset is exactly cancelled by train-mode BatchNorm.  This is
    # NOT valid if eval-mode running statistics are ever used.

    c1, st1 = pool_conv1_stats(x5, w1, Cout, compute_dtype)   # pool+conv1+stats
    s1, t1 = _finalize_stats(st1, p["g1"], p["be1"], N * H2 * W2, eps)
    c2, st2 = bnrelu_conv2_stats(c1, s1, t1, w2, compute_dtype)  # BN1+ReLU+conv2
    s2, t2 = _finalize_stats(st2, p["g2"], p["be2"], N * H2 * W2, eps)
    out = bn_relu(c2, s2, t2)                          # (N, H2, W2, Cout) f32

    return jnp.transpose(out, (0, 3, 1, 2))            # NHWC -> NCHW


# ----------------------------------------------------------------------------
# Deterministic parameter init (mimicking nn.Conv2d / nn.BatchNorm2d shapes)
# ----------------------------------------------------------------------------
def init_params(key, cin, cout):
    keys = jax.random.split(key, 8)

    def conv_init(kw, kb, ci, co):
        bound = 1.0 / ((ci * 9) ** 0.5)
        w = jax.random.uniform(kw, (co, ci, 3, 3), jnp.float32, -bound, bound)
        b = jax.random.uniform(kb, (co,), jnp.float32, -bound, bound)
        return w, b

    w1, b1 = conv_init(keys[0], keys[1], cin, cout)
    w2, b2 = conv_init(keys[2], keys[3], cout, cout)
    g1 = jax.random.uniform(keys[4], (cout,), jnp.float32, 0.5, 1.5)
    be1 = jax.random.uniform(keys[5], (cout,), jnp.float32, -0.2, 0.2)
    g2 = jax.random.uniform(keys[6], (cout,), jnp.float32, 0.5, 1.5)
    be2 = jax.random.uniform(keys[7], (cout,), jnp.float32, -0.2, 0.2)
    return dict(w1=w1, b1=b1, g1=g1, be1=be1, w2=w2, b2=b2, g2=g2, be2=be2)


# ----------------------------------------------------------------------------
# Pure-JAX (XLA) reference reproducing PyTorch forward semantics
# ----------------------------------------------------------------------------
def reference_forward(x, p, eps=1e-5):
    def maxpool(x):
        return lax.reduce_window(x, -jnp.inf, lax.max,
                                 (1, 1, 2, 2), (1, 1, 2, 2), 'VALID')

    def conv(x, w, b):
        y = lax.conv_general_dilated(x, w, (1, 1), ((1, 1), (1, 1)),
                                     dimension_numbers=('NCHW', 'OIHW', 'NCHW'))
        return y + b[None, :, None, None]

    def bn_relu_ref(x, g, be):
        mean = jnp.mean(x, axis=(0, 2, 3), keepdims=True)
        var = jnp.mean((x - mean) ** 2, axis=(0, 2, 3), keepdims=True)
        xn = (x - mean) / jnp.sqrt(var + eps)
        return jnp.maximum(xn * g[None, :, None, None]
                           + be[None, :, None, None], 0.0)

    y = maxpool(x)
    y = bn_relu_ref(conv(y, p["w1"], p["b1"]), p["g1"], p["be1"])
    y = bn_relu_ref(conv(y, p["w2"], p["b2"]), p["g2"], p["be2"])
    return y


if __name__ == "__main__":
    key = jax.random.PRNGKey(0)
    kx, kp = jax.random.split(key)

    N, Cin, H, W = 2, 4, 16, 16
    Cout = 8
    x = jax.random.normal(kx, (N, Cin, H, W), jnp.float32)
    params = init_params(kp, Cin, Cout)

    fwd = jax.jit(downsample_forward, static_argnames=("compute_dtype",))

    ref = jax.block_until_ready(reference_forward(x, params))

    # Default path: bf16 MXU inputs, f32 accumulation & elementwise math.
    out = jax.block_until_ready(fwd(x, params))
    assert out.shape == (N, Cout, H // 2, W // 2), out.shape
    assert bool(jnp.all(jnp.isfinite(out)))
    err_bf16 = float(jnp.max(jnp.abs(out - ref)))
    assert err_bf16 < 1e-1, f"bf16-path max abs error {err_bf16}"

    # Exactness check of the kernel logic with f32 MXU inputs.
    out32 = jax.block_until_ready(fwd(x, params, compute_dtype=jnp.float32))
    err_f32 = float(jnp.max(jnp.abs(out32 - ref)))
    assert err_f32 < 1e-3, f"f32-path max abs error {err_f32}"

    print("KERNEL_OK")
</pallas_src>

<mosaic_0001>
module attributes {stable_mosaic.version = 11 : i64} {
  func.func @_pool_conv1_stats_kernel(%arg0: i32, %arg1: memref<1x8x2x8x8xf32, #tpu.memory_space<vmem>>, %arg2: memref<3x3x4x8xbf16, #tpu.memory_space<vmem>>, %arg3: memref<1x8x8x8xf32, #tpu.memory_space<vmem>>, %arg4: memref<1x1x2x8xf32, #tpu.memory_space<vmem>>, %arg5: memref<10x10x4xbf16, #tpu.memory_space<vmem>>) attributes {dimension_semantics = [#tpu.dimension_semantics<parallel>], iteration_bounds = array<i64: 2>, scalar_prefetch = 0 : i64, scratch_operands = 1 : i64, tpu.core_type = #tpu.core_type<tc>, window_params = [{transform_indices = @transform_0, window_bounds = array<i64: 1, 8, 2, 8, 8>}, {pipeline_mode = #tpu.pipeline_mode<synchronous>, transform_indices = @transform_1, window_bounds = array<i64: 3, 3, 4, 8>}, {transform_indices = @transform_2, window_bounds = array<i64: 1, 8, 8, 8>}, {transform_indices = @transform_3, window_bounds = array<i64: 1, 1, 2, 8>}]} {
    %c0 = arith.constant 0 : index
    %c0_0 = arith.constant 0 : index
    %c0_1 = arith.constant 0 : index
    %c0_2 = arith.constant 0 : index
    %c0_3 = arith.constant 0 : index
    %0 = vector.load %arg1[%c0, %c0_0, %c0_1, %c0_2, %c0_3] : memref<1x8x2x8x8xf32, #tpu.memory_space<vmem>>, vector<1x8x2x8x8xf32>
    %1 = vector.shape_cast %0 : vector<1x8x2x8x8xf32> to vector<8x2x8x8xf32>
    %2 = vector.extract_strided_slice %1 {offsets = [0, 0, 0, 0], sizes = [8, 1, 8, 8], strides = [1, 1, 1, 1]} : vector<8x2x8x8xf32> to vector<8x1x8x8xf32>
    %3 = vector.shape_cast %2 : vector<8x1x8x8xf32> to vector<8x8x8xf32>
    %4 = vector.extract_strided_slice %1 {offsets = [0, 1, 0, 0], sizes = [8, 1, 8, 8], strides = [1, 1, 1, 1]} : vector<8x2x8x8xf32> to vector<8x1x8x8xf32>
    %5 = vector.shape_cast %4 : vector<8x1x8x8xf32> to vector<8x8x8xf32>
    %6 = arith.maximumf %3, %5 : vector<8x8x8xf32>
    %7 = vector.extract_strided_slice %6 {offsets = [0, 0, 0], sizes = [8, 8, 4], strides = [1, 1, 1]} : vector<8x8x8xf32> to vector<8x8x4xf32>
    %8 = vector.extract_strided_slice %6 {offsets = [0, 0, 4], sizes = [8, 8, 4], strides = [1, 1, 1]} : vector<8x8x8xf32> to vector<8x8x4xf32>
    %9 = arith.maximumf %7, %8 : vector<8x8x4xf32>
    %cst = arith.constant 0.000000e+00 : bf16
    %10 = vector.broadcast %cst : bf16 to vector<1x10x4xbf16>
    %c0_4 = arith.constant 0 : index
    %c0_5 = arith.constant 0 : index
    %c0_6 = arith.constant 0 : index
    %11 = vector.load %arg5[%c0_4, %c0_5, %c0_6] : memref<10x10x4xbf16, #tpu.memory_space<vmem>>, vector<1x10x4xbf16>
    tpu.vector_store %arg5[%c0_4, %c0_5, %c0_6], %10 {strides = array<i32>} : memref<10x10x4xbf16, #tpu.memory_space<vmem>>, vector<1x10x4xbf16>,
    %cst_7 = arith.constant 0.000000e+00 : bf16
    %12 = vector.broadcast %cst_7 : bf16 to vector<1x10x4xbf16>
    %c9 = arith.constant 9 : index
    %c0_8 = arith.constant 0 : index
    %c0_9 = arith.constant 0 : index
    %13 = vector.load %arg5[%c9, %c0_8, %c0_9] : memref<10x10x4xbf16, #tpu.memory_space<vmem>>, vector<1x10x4xbf16>
    tpu.vector_store %arg5[%c9, %c0_8, %c0_9], %12 {strides = array<i32>} : memref<10x10x4xbf16, #tpu.memory_space<vmem>>, vector<1x10x4xbf16>,
    %cst_10 = arith.constant 0.000000e+00 : bf16
    %14 = vector.broadcast %cst_10 : bf16 to vector<10x1x4xbf16>
    %c0_11 = arith.constant 0 : index
    %c0_12 = arith.constant 0 : index
    %c0_13 = arith.constant 0 : index
    %15 = vector.load %arg5[%c0_11, %c0_12, %c0_13] : memref<10x10x4xbf16, #tpu.memory_space<vmem>>, vector<10x1x4xbf16>
    tpu.vector_store %arg5[%c0_11, %c0_12, %c0_13], %14 {strides = array<i32>} : memref<10x10x4xbf16, #tpu.memory_space<vmem>>, vector<10x1x4xbf16>,
    %cst_14 = arith.constant 0.000000e+00 : bf16
    %16 = vector.broadcast %cst_14 : bf16 to vector<10x1x4xbf16>
    %c0_15 = arith.constant 0 : index
    %c9_16 = arith.constant 9 : index
    %c0_17 = arith.constant 0 : index
    %17 = vector.load %arg5[%c0_15, %c9_16, %c0_17] : memref<10x10x4xbf16, #tpu.memory_space<vmem>>, vector<10x1x4xbf16>
    tpu.vector_store %arg5[%c0_15, %c9_16, %c0_17], %16 {strides = array<i32>} : memref<10x10x4xbf16, #tpu.memory_space<vmem>>, vector<10x1x4xbf16>,
    %18 = arith.truncf %9 : vector<8x8x4xf32> to vector<8x8x4xbf16>
    %c1 = arith.constant 1 : index
    %c1_18 = arith.constant 1 : index
    %c0_19 = arith.constant 0 : index
    %19 = vector.load %arg5[%c1, %c1_18, %c0_19] : memref<10x10x4xbf16, #tpu.memory_space<vmem>>, vector<8x8x4xbf16>
    tpu.vector_store %arg5[%c1, %c1_18, %c0_19], %18 {strides = array<i32>} : memref<10x10x4xbf16, #tpu.memory_space<vmem>>, vector<8x8x4xbf16>,
    %c0_20 = arith.constant 0 : index
    %c0_21 = arith.constant 0 : index
    %c0_22 = arith.constant 0 : index
    %20 = vector.load %arg5[%c0_20, %c0_21, %c0_22] : memref<10x10x4xbf16, #tpu.memory_space<vmem>>, vector<8x10x4xbf16>
    %21 = vector.extract_strided_slice %20 {offsets = [0, 0, 0], sizes = [8, 8, 4], strides = [1, 1, 1]} : vector<8x10x4xbf16> to vector<8x8x4xbf16>
    %22 = vector.shape_cast %21 : vector<8x8x4xbf16> to vector<64x4xbf16>
    %c0_23 = arith.constant 0 : index
    %c0_24 = arith.constant 0 : index
    %c0_25 = arith.constant 0 : index
    %c0_26 = arith.constant 0 : index
    %23 = vector.load %arg2[%c0_23, %c0_24, %c0_25, %c0_26] : memref<3x3x4x8xbf16, #tpu.memory_space<vmem>>, vector<1x1x4x8xbf16>
    %24 = vector.shape_cast %23 : vector<1x1x4x8xbf16> to vector<4x8xbf16>
    %cst_27 = arith.constant dense<0.000000e+00> : vector<64x8xf32>
    %25 = tpu.matmul %22, %24, %cst_27 {dimension_numbers = #tpu.dot_dimension_numbers<[1], [0], [0], [1], [0, 0, 1, 1], [], []>} : vector<64x4xbf16>, vector<4x8xbf16>, vector<64x8xf32> -> vector<64x8xf32>
    %26 = vector.extract_strided_slice %20 {offsets = [0, 1, 0], sizes = [8, 8, 4], strides = [1, 1, 1]} : vector<8x10x4xbf16> to vector<8x8x4xbf16>
    %27 = vector.shape_cast %26 : vector<8x8x4xbf16> to vector<64x4xbf16>
    %c0_28 = arith.constant 0 : index
    %c1_29 = arith.constant 1 : index
    %c0_30 = arith.constant 0 : index
    %c0_31 = arith.constant 0 : index
    %28 = vector.load %arg2[%c0_28, %c1_29, %c0_30, %c0_31] : memref<3x3x4x8xbf16, #tpu.memory_space<vmem>>, vector<1x1x4x8xbf16>
    %29 = vector.shape_cast %28 : vector<1x1x4x8xbf16> to vector<4x8xbf16>
    %cst_32 = arith.constant dense<0.000000e+00> : vector<64x8xf32>
    %30 = tpu.matmul %27, %29, %cst_32 {dimension_numbers = #tpu.dot_dimension_numbers<[1], [0], [0], [1], [0, 0, 1, 1], [], []>} : vector<64x4xbf16>, vector<4x8xbf16>, vector<64x8xf32> -> vector<64x8xf32>
    %31 = arith.addf %25, %30 : vector<64x8xf32>
    %32 = vector.extract_strided_slice %20 {offsets = [0, 2, 0], sizes = [8, 8, 4], strides = [1, 1, 1]} : vector<8x10x4xbf16> to vector<8x8x4xbf16>
    %33 = vector.shape_cast %32 : vector<8x8x4xbf16> to vector<64x4xbf16>
    %c0_33 = arith.constant 0 : index
    %c2 = arith.constant 2 : index
    %c0_34 = arith.constant 0 : index
    %c0_35 = arith.constant 0 : index
    %34 = vector.load %arg2[%c0_33, %c2, %c0_34, %c0_35] : memref<3x3x4x8xbf16, #tpu.memory_space<vmem>>, vector<1x1x4x8xbf16>
    %35 = vector.shape_cast %34 : vector<1x1x4x8xbf16> to vector<4x8xbf16>
    %cst_36 = arith.constant dense<0.000000e+00> : vector<64x8xf32>
    %36 = tpu.matmul %33, %35, %cst_36 {dimension_numbers = #tpu.dot_dimension_numbers<[1], [0], [0], [1], [0, 0, 1, 1], [], []>} : vector<64x4xbf16>, vector<4x8xbf16>, vector<64x8xf32> -> vector<64x8xf32>
    %37 = arith.addf %31, %36 : vector<64x8xf32>
    %c1_37 = arith.constant 1 : index
    %c0_38 = arith.constant 0 : index
    %c0_39 = arith.constant 0 : index
    %38 = vector.load %arg5[%c1_37, %c0_38, %c0_39] : memref<10x10x4xbf16, #tpu.memory_space<vmem>>, vector<8x10x4xbf16>
    %39 = vector.extract_strided_slice %38 {offsets = [0, 0, 0], sizes = [8, 8, 4], strides = [1, 1, 1]} : vector<8x10x4xbf16> to vector<8x8x4xbf16>
    %40 = vector.shape_cast %39 : vector<8x8x4xbf16> to vector<64x4xbf16>
    %c1_40 = arith.constant 1 : index
    %c0_41 = arith.constant 0 : index
    %c0_42 = arith.constant 0 : index
    %c0_43 = arith.constant 0 : index
    %41 = vector.load %arg2[%c1_40, %c0_41, %c0_42, %c0_43] : memref<3x3x4x8xbf16, #tpu.memory_space<vmem>>, vector<1x1x4x8xbf16>
    %42 = vector.shape_cast %41 : vector<1x1x4x8xbf16> to vector<4x8xbf16>
    %cst_44 = arith.constant dense<0.000000e+00> : vector<64x8xf32>
    %43 = tpu.matmul %40, %42, %cst_44 {dimension_numbers = #tpu.dot_dimension_numbers<[1], [0], [0], [1], [0, 0, 1, 1], [], []>} : vector<64x4xbf16>, vector<4x8xbf16>, vector<64x8xf32> -> vector<64x8xf32>
    %44 = arith.addf %37, %43 : vector<64x8xf32>
    %45 = vector.extract_strided_slice %38 {offsets = [0, 1, 0], sizes = [8, 8, 4], strides = [1, 1, 1]} : vector<8x10x4xbf16> to vector<8x8x4xbf16>
    %46 = vector.shape_cast %45 : vector<8x8x4xbf16> to vector<64x4xbf16>
    %c1_45 = arith.constant 1 : index
    %c1_46 = arith.constant 1 : index
    %c0_47 = arith.constant 0 : index
    %c0_48 = arith.constant 0 : index
    %47 = vector.load %arg2[%c1_45, %c1_46, %c0_47, %c0_48] : memref<3x3x4x8xbf16, #tpu.memory_space<vmem>>, vector<1x1x4x8xbf16>
    %48 = vector.shape_cast %47 : vector<1x1x4x8xbf16> to vector<4x8xbf16>
    %cst_49 = arith.constant dense<0.000000e+00> : vector<64x8xf32>
    %49 = tpu.matmul %46, %48, %cst_49 {dimension_numbers = #tpu.dot_dimension_numbers<[1], [0], [0], [1], [0, 0, 1, 1], [], []>} : vector<64x4xbf16>, vector<4x8xbf16>, vector<64x8xf32> -> vector<64x8xf32>
    %50 = arith.addf %44, %49 : vector<64x8xf32>
    %51 = vector.extract_strided_slice %38 {offsets = [0, 2, 0], sizes = [8, 8, 4], strides = [1, 1, 1]} : vector<8x10x4xbf16> to vector<8x8x4xbf16>
    %52 = vector.shape_cast %51 : vector<8x8x4xbf16> to vector<64x4xbf16>
    %c1_50 = arith.constant 1 : index
    %c2_51 = arith.constant 2 : index
    %c0_52 = arith.constant 0 : index
    %c0_53 = arith.constant 0 : index
    %53 = vector.load %arg2[%c1_50, %c2_51, %c0_52, %c0_53] : memref<3x3x4x8xbf16, #tpu.memory_space<vmem>>, vector<1x1x4x8xbf16>
    %54 = vector.shape_cast %53 : vector<1x1x4x8xbf16> to vector<4x8xbf16>
    %cst_54 = arith.constant dense<0.000000e+00> : vector<64x8xf32>
    %55 = tpu.matmul %52, %54, %cst_54 {dimension_numbers = #tpu.dot_dimension_numbers<[1], [0], [0], [1], [0, 0, 1, 1], [], []>} : vector<64x4xbf16>, vector<4x8xbf16>, vector<64x8xf32> -> vector<64x8xf32>
    %56 = arith.addf %50, %55 : vector<64x8xf32>
    %c2_55 = arith.constant 2 : index
    %c0_56 = arith.constant 0 : index
    %c0_57 = arith.constant 0 : index
    %57 = vector.load %arg5[%c2_55, %c0_56, %c0_57] : memref<10x10x4xbf16, #tpu.memory_space<vmem>>, vector<8x10x4xbf16>
    %58 = vector.extract_strided_slice %57 {offsets = [0, 0, 0], sizes = [8, 8, 4], strides = [1, 1, 1]} : vector<8x10x4xbf16> to vector<8x8x4xbf16>
    %59 = vector.shape_cast %58 : vector<8x8x4xbf16> to vector<64x4xbf16>
    %c2_58 = arith.constant 2 : index
    %c0_59 = arith.constant 0 : index
    %c0_60 = arith.constant 0 : index
    %c0_61 = arith.constant 0 : index
    %60 = vector.load %arg2[%c2_58, %c0_59, %c0_60, %c0_61] : memref<3x3x4x8xbf16, #tpu.memory_space<vmem>>, vector<1x1x4x8xbf16>
    %61 = vector.shape_cast %60 : vector<1x1x4x8xbf16> to vector<4x8xbf16>
    %cst_62 = arith.constant dense<0.000000e+00> : vector<64x8xf32>
    %62 = tpu.matmul %59, %61, %cst_62 {dimension_numbers = #tpu.dot_dimension_numbers<[1], [0], [0], [1], [0, 0, 1, 1], [], []>} : vector<64x4xbf16>, vector<4x8xbf16>, vector<64x8xf32> -> vector<64x8xf32>
    %63 = arith.addf %56, %62 : vector<64x8xf32>
    %64 = vector.extract_strided_slice %57 {offsets = [0, 1, 0], sizes = [8, 8, 4], strides = [1, 1, 1]} : vector<8x10x4xbf16> to vector<8x8x4xbf16>
    %65 = vector.shape_cast %64 : vector<8x8x4xbf16> to vector<64x4xbf16>
    %c2_63 = arith.constant 2 : index
    %c1_64 = arith.constant 1 : index
    %c0_65 = arith.constant 0 : index
    %c0_66 = arith.constant 0 : index
    %66 = vector.load %arg2[%c2_63, %c1_64, %c0_65, %c0_66] : memref<3x3x4x8xbf16, #tpu.memory_space<vmem>>, vector<1x1x4x8xbf16>
    %67 = vector.shape_cast %66 : vector<1x1x4x8xbf16> to vector<4x8xbf16>
    %cst_67 = arith.constant dense<0.000000e+00> : vector<64x8xf32>
    %68 = tpu.matmul %65, %67, %cst_67 {dimension_numbers = #tpu.dot_dimension_numbers<[1], [0], [0], [1], [0, 0, 1, 1], [], []>} : vector<64x4xbf16>, vector<4x8xbf16>, vector<64x8xf32> -> vector<64x8xf32>
    %69 = arith.addf %63, %68 : vector<64x8xf32>
    %70 = vector.extract_strided_slice %57 {offsets = [0, 2, 0], sizes = [8, 8, 4], strides = [1, 1, 1]} : vector<8x10x4xbf16> to vector<8x8x4xbf16>
    %71 = vector.shape_cast %70 : vector<8x8x4xbf16> to vector<64x4xbf16>
    %c2_68 = arith.constant 2 : index
    %c2_69 = arith.constant 2 : index
    %c0_70 = arith.constant 0 : index
    %c0_71 = arith.constant 0 : index
    %72 = vector.load %arg2[%c2_68, %c2_69, %c0_70, %c0_71] : memref<3x3x4x8xbf16, #tpu.memory_space<vmem>>, vector<1x1x4x8xbf16>
    %73 = vector.shape_cast %72 : vector<1x1x4x8xbf16> to vector<4x8xbf16>
    %cst_72 = arith.constant dense<0.000000e+00> : vector<64x8xf32>
    %74 = tpu.matmul %71, %73, %cst_72 {dimension_numbers = #tpu.dot_dimension_numbers<[1], [0], [0], [1], [0, 0, 1, 1], [], []>} : vector<64x4xbf16>, vector<4x8xbf16>, vector<64x8xf32> -> vector<64x8xf32>
    %75 = arith.addf %69, %74 : vector<64x8xf32>
    %76 = vector.shape_cast %75 : vector<64x8xf32> to vector<8x8x8xf32>
    %c0_73 = arith.constant 0 : index
    %c0_74 = arith.constant 0 : index
    %c0_75 = arith.constant 0 : index
    %c0_76 = arith.constant 0 : index
    %77 = vector.load %arg3[%c0_73, %c0_74, %c0_75, %c0_76] : memref<1x8x8x8xf32, #tpu.memory_space<vmem>>, vector<1x8x8x8xf32>
    %78 = vector.shape_cast %77 : vector<1x8x8x8xf32> to vector<8x8x8xf32>
    %79 = vector.shape_cast %76 : vector<8x8x8xf32> to vector<1x8x8x8xf32>
    tpu.vector_store %arg3[%c0_73, %c0_74, %c0_75, %c0_76], %79 {strides = array<i32>} : memref<1x8x8x8xf32, #tpu.memory_space<vmem>>, vector<1x8x8x8xf32>,
    %cst_77 = arith.constant dense<0.000000e+00> : vector<8xf32>
    %80 = vector.multi_reduction <add>, %75, %cst_77 [0] : vector<64x8xf32> to vector<8xf32>
    %81 = vector.shape_cast %80 : vector<8xf32> to vector<1x8xf32>
    %c0_78 = arith.constant 0 : index
    %c0_79 = arith.constant 0 : index
    %c0_80 = arith.constant 0 : index
    %c0_81 = arith.constant 0 : index
    %82 = vector.load %arg4[%c0_78, %c0_79, %c0_80, %c0_81] : memref<1x1x2x8xf32, #tpu.memory_space<vmem>>, vector<1x1x1x8xf32>
    %83 = vector.shape_cast %82 : vector<1x1x1x8xf32> to vector<1x8xf32>
    %84 = vector.shape_cast %81 : vector<1x8xf32> to vector<1x1x1x8xf32>
    tpu.vector_store %arg4[%c0_78, %c0_79, %c0_80, %c0_81], %84 {strides = array<i32>} : memref<1x1x2x8xf32, #tpu.memory_space<vmem>>, vector<1x1x1x8xf32>,
    %85 = arith.mulf %75, %75 : vector<64x8xf32>
    %cst_82 = arith.constant dense<0.000000e+00> : vector<8xf32>
    %86 = vector.multi_reduction <add>, %85, %cst_82 [0] : vector<64x8xf32> to vector<8xf32>
    %87 = vector.shape_cast %86 : vector<8xf32> to vector<1x8xf32>
    %c0_83 = arith.constant 0 : index
    %c0_84 = arith.constant 0 : index
    %c1_85 = arith.constant 1 : index
    %c0_86 = arith.constant 0 : index
    %88 = vector.load %arg4[%c0_83, %c0_84, %c1_85, %c0_86] : memref<1x1x2x8xf32, #tpu.memory_space<vmem>>, vector<1x1x1x8xf32>
    %89 = vector.shape_cast %88 : vector<1x1x1x8xf32> to vector<1x8xf32>
    %90 = vector.shape_cast %87 : vector<1x8xf32> to vector<1x1x1x8xf32>
    tpu.vector_store %arg4[%c0_83, %c0_84, %c1_85, %c0_86], %90 {strides = array<i32>} : memref<1x1x2x8xf32, #tpu.memory_space<vmem>>, vector<1x1x1x8xf32>,
    return
  }
  func.func @transform_0(%arg0: i32) -> (i32, i32, i32, i32, i32) {
    %c0_i32 = arith.constant 0 : i32
    %c0_i32_0 = arith.constant 0 : i32
    %c0_i32_1 = arith.constant 0 : i32
    %c0_i32_2 = arith.constant 0 : i32
    %c0_i32_3 = arith.constant 0 : i32
    return %arg0, %c0_i32, %c0_i32_0, %c0_i32_1, %c0_i32_2 : i32, i32, i32, i32, i32
  }
  func.func @transform_1(%arg0: i32) -> (i32, i32, i32, i32) {
    %c0_i32 = arith.constant 0 : i32
    %c0_i32_0 = arith.constant 0 : i32
    %c0_i32_1 = arith.constant 0 : i32
    %c0_i32_2 = arith.constant 0 : i32
    %c0_i32_3 = arith.constant 0 : i32
    return %c0_i32, %c0_i32_0, %c0_i32_1, %c0_i32_2 : i32, i32, i32, i32
  }
  func.func @transform_2(%arg0: i32) -> (i32, i32, i32, i32) {
    %c0_i32 = arith.constant 0 : i32
    %c0_i32_0 = arith.constant 0 : i32
    %c0_i32_1 = arith.constant 0 : i32
    %c0_i32_2 = arith.constant 0 : i32
    return %arg0, %c0_i32, %c0_i32_0, %c0_i32_1 : i32, i32, i32, i32
  }
  func.func @transform_3(%arg0: i32) -> (i32, i32, i32, i32) {
    %c0_i32 = arith.constant 0 : i32
    %c0_i32_0 = arith.constant 0 : i32
    %c0_i32_1 = arith.constant 0 : i32
    %c0_i32_2 = arith.constant 0 : i32
    return %arg0, %c0_i32, %c0_i32_0, %c0_i32_1 : i32, i32, i32, i32
  }
}

module attributes {stable_mosaic.version = 11 : i64} {
  func.func @_bn_relu_kernel(%arg0: i32, %arg1: memref<1x8x8x8xf32, #tpu.memory_space<vmem>>, %arg2: memref<1x8xf32, #tpu.memory_space<vmem>>, %arg3: memref<1x8xf32, #tpu.memory_space<vmem>>, %arg4: memref<1x8x8x8xf32, #tpu.memory_space<vmem>>) attributes {dimension_semantics = [#tpu.dimension_semantics<parallel>], iteration_bounds = array<i64: 2>, scalar_prefetch = 0 : i64, scratch_operands = 0 : i64, tpu.core_type = #tpu.core_type<tc>, window_params = [{transform_indices = @transform_0, window_bounds = array<i64: 1, 8, 8, 8>}, {pipeline_mode = #tpu.pipeline_mode<synchronous>, transform_indices = @transform_1, window_bounds = array<i64: 1, 8>}, {pipeline_mode = #tpu.pipeline_mode<synchronous>, transform_indices = @transform_2, window_bounds = array<i64: 1, 8>}, {transform_indices = @transform_3, window_bounds = array<i64: 1, 8, 8, 8>}]} {
    %c0 = arith.constant 0 : index
    %c0_0 = arith.constant 0 : index
    %c0_1 = arith.constant 0 : index
    %c0_2 = arith.constant 0 : index
    %0 = vector.load %arg1[%c0, %c0_0, %c0_1, %c0_2] : memref<1x8x8x8xf32, #tpu.memory_space<vmem>>, vector<1x8x8x8xf32>
    %1 = vector.shape_cast %0 : vector<1x8x8x8xf32> to vector<8x8x8xf32>
    %c0_3 = arith.constant 0 : index
    %c0_4 = arith.constant 0 : index
    %2 = vector.load %arg2[%c0_3, %c0_4] : memref<1x8xf32, #tpu.memory_space<vmem>>, vector<1x8xf32>
    %3 = vector.shape_cast %2 : vector<1x8xf32> to vector<1x1x8xf32>
    %4 = vector.broadcast %3 : vector<1x1x8xf32> to vector<8x8x8xf32>
    %5 = arith.mulf %1, %4 : vector<8x8x8xf32>
    %c0_5 = arith.constant 0 : index
    %c0_6 = arith.constant 0 : index
    %6 = vector.load %arg3[%c0_5, %c0_6] : memref<1x8xf32, #tpu.memory_space<vmem>>, vector<1x8xf32>
    %7 = vector.shape_cast %6 : vector<1x8xf32> to vector<1x1x8xf32>
    %8 = vector.broadcast %7 : vector<1x1x8xf32> to vector<8x8x8xf32>
    %9 = arith.addf %5, %8 : vector<8x8x8xf32>
    %cst = arith.constant 0.000000e+00 : f32
    %10 = vector.broadcast %cst : f32 to vector<8x8x8xf32>
    %11 = arith.maximumf %9, %10 : vector<8x8x8xf32>
    %c0_7 = arith.constant 0 : index
    %c0_8 = arith.constant 0 : index
    %c0_9 = arith.constant 0 : index
    %c0_10 = arith.constant 0 : index
    %12 = vector.load %arg4[%c0_7, %c0_8, %c0_9, %c0_10] : memref<1x8x8x8xf32, #tpu.memory_space<vmem>>, vector<1x8x8x8xf32>
    %13 = vector.shape_cast %12 : vector<1x8x8x8xf32> to vector<8x8x8xf32>
    %14 = vector.shape_cast %11 : vector<8x8x8xf32> to vector<1x8x8x8xf32>
    tpu.vector_store %arg4[%c0_7, %c0_8, %c0_9, %c0_10], %14 {strides = array<i32>} : memref<1x8x8x8xf32, #tpu.memory_space<vmem>>, vector<1x8x8x8xf32>,
    return
  }
  func.func @transform_0(%arg0: i32) -> (i32, i32, i32, i32) {
    %c0_i32 = arith.constant 0 : i32
    %c0_i32_0 = arith.constant 0 : i32
    %c0_i32_1 = arith.constant 0 : i32
    %c0_i32_2 = arith.constant 0 : i32
    return %arg0, %c0_i32, %c0_i32_0, %c0_i32_1 : i32, i32, i32, i32
  }
  func.func @transform_1(%arg0: i32) -> (i32, i32) {
    %c0_i32 = arith.constant 0 : i32
    %c0_i32_0 = arith.constant 0 : i32
    %c0_i32_1 = arith.constant 0 : i32
    return %c0_i32, %c0_i32_0 : i32, i32
  }
  func.func @transform_2(%arg0: i32) -> (i32, i32) {
    %c0_i32 = arith.constant 0 : i32
    %c0_i32_0 = arith.constant 0 : i32
    %c0_i32_1 = arith.constant 0 : i32
    return %c0_i32, %c0_i32_0 : i32, i32
  }
  func.func @transform_3(%arg0: i32) -> (i32, i32, i32, i32) {
    %c0_i32 = arith.constant 0 : i32
    %c0_i32_0 = arith.constant 0 : i32
    %c0_i32_1 = arith.constant 0 : i32
    %c0_i32_2 = arith.constant 0 : i32
    return %arg0, %c0_i32, %c0_i32_0, %c0_i32_1 : i32, i32, i32, i32
  }
}

module attributes {stable_mosaic.version = 11 : i64} {
  func.func @_bnrelu_conv2_stats_kernel(%arg0: i32, %arg1: memref<1x8x8x8xf32, #tpu.memory_space<vmem>>, %arg2: memref<1x8xf32, #tpu.memory_space<vmem>>, %arg3: memref<1x8xf32, #tpu.memory_space<vmem>>, %arg4: memref<3x3x8x8xbf16, #tpu.memory_space<vmem>>, %arg5: memref<1x8x8x8xf32, #tpu.memory_space<vmem>>, %arg6: memref<1x1x2x8xf32, #tpu.memory_space<vmem>>, %arg7: memref<10x10x8xbf16, #tpu.memory_space<vmem>>) attributes {dimension_semantics = [#tpu.dimension_semantics<parallel>], iteration_bounds = array<i64: 2>, scalar_prefetch = 0 : i64, scratch_operands = 1 : i64, tpu.core_type = #tpu.core_type<tc>, window_params = [{transform_indices = @transform_0, window_bounds = array<i64: 1, 8, 8, 8>}, {pipeline_mode = #tpu.pipeline_mode<synchronous>, transform_indices = @transform_1, window_bounds = array<i64: 1, 8>}, {pipeline_mode = #tpu.pipeline_mode<synchronous>, transform_indices = @transform_2, window_bounds = array<i64: 1, 8>}, {pipeline_mode = #tpu.pipeline_mode<synchronous>, transform_indices = @transform_3, window_bounds = array<i64: 3, 3, 8, 8>}, {transform_indices = @transform_4, window_bounds = array<i64: 1, 8, 8, 8>}, {transform_indices = @transform_5, window_bounds = array<i64: 1, 1, 2, 8>}]} {
    %c0 = arith.constant 0 : index
    %c0_0 = arith.constant 0 : index
    %c0_1 = arith.constant 0 : index
    %c0_2 = arith.constant 0 : index
    %0 = vector.load %arg1[%c0, %c0_0, %c0_1, %c0_2] : memref<1x8x8x8xf32, #tpu.memory_space<vmem>>, vector<1x8x8x8xf32>
    %1 = vector.shape_cast %0 : vector<1x8x8x8xf32> to vector<8x8x8xf32>
    %c0_3 = arith.constant 0 : index
    %c0_4 = arith.constant 0 : index
    %2 = vector.load %arg2[%c0_3, %c0_4] : memref<1x8xf32, #tpu.memory_space<vmem>>, vector<1x8xf32>
    %3 = vector.shape_cast %2 : vector<1x8xf32> to vector<1x1x8xf32>
    %4 = vector.broadcast %3 : vector<1x1x8xf32> to vector<8x8x8xf32>
    %5 = arith.mulf %1, %4 : vector<8x8x8xf32>
    %c0_5 = arith.constant 0 : index
    %c0_6 = arith.constant 0 : index
    %6 = vector.load %arg3[%c0_5, %c0_6] : memref<1x8xf32, #tpu.memory_space<vmem>>, vector<1x8xf32>
    %7 = vector.shape_cast %6 : vector<1x8xf32> to vector<1x1x8xf32>
    %8 = vector.broadcast %7 : vector<1x1x8xf32> to vector<8x8x8xf32>
    %9 = arith.addf %5, %8 : vector<8x8x8xf32>
    %cst = arith.constant 0.000000e+00 : f32
    %10 = vector.broadcast %cst : f32 to vector<8x8x8xf32>
    %11 = arith.maximumf %9, %10 : vector<8x8x8xf32>
    %cst_7 = arith.constant 0.000000e+00 : bf16
    %12 = vector.broadcast %cst_7 : bf16 to vector<1x10x8xbf16>
    %c0_8 = arith.constant 0 : index
    %c0_9 = arith.constant 0 : index
    %c0_10 = arith.constant 0 : index
    %13 = vector.load %arg7[%c0_8, %c0_9, %c0_10] : memref<10x10x8xbf16, #tpu.memory_space<vmem>>, vector<1x10x8xbf16>
    tpu.vector_store %arg7[%c0_8, %c0_9, %c0_10], %12 {strides = array<i32>} : memref<10x10x8xbf16, #tpu.memory_space<vmem>>, vector<1x10x8xbf16>,
    %cst_11 = arith.constant 0.000000e+00 : bf16
    %14 = vector.broadcast %cst_11 : bf16 to vector<1x10x8xbf16>
    %c9 = arith.constant 9 : index
    %c0_12 = arith.constant 0 : index
    %c0_13 = arith.constant 0 : index
    %15 = vector.load %arg7[%c9, %c0_12, %c0_13] : memref<10x10x8xbf16, #tpu.memory_space<vmem>>, vector<1x10x8xbf16>
    tpu.vector_store %arg7[%c9, %c0_12, %c0_13], %14 {strides = array<i32>} : memref<10x10x8xbf16, #tpu.memory_space<vmem>>, vector<1x10x8xbf16>,
    %cst_14 = arith.constant 0.000000e+00 : bf16
    %16 = vector.broadcast %cst_14 : bf16 to vector<10x1x8xbf16>
    %c0_15 = arith.constant 0 : index
    %c0_16 = arith.constant 0 : index
    %c0_17 = arith.constant 0 : index
    %17 = vector.load %arg7[%c0_15, %c0_16, %c0_17] : memref<10x10x8xbf16, #tpu.memory_space<vmem>>, vector<10x1x8xbf16>
    tpu.vector_store %arg7[%c0_15, %c0_16, %c0_17], %16 {strides = array<i32>} : memref<10x10x8xbf16, #tpu.memory_space<vmem>>, vector<10x1x8xbf16>,
    %cst_18 = arith.constant 0.000000e+00 : bf16
    %18 = vector.broadcast %cst_18 : bf16 to vector<10x1x8xbf16>
    %c0_19 = arith.constant 0 : index
    %c9_20 = arith.constant 9 : index
    %c0_21 = arith.constant 0 : index
    %19 = vector.load %arg7[%c0_19, %c9_20, %c0_21] : memref<10x10x8xbf16, #tpu.memory_space<vmem>>, vector<10x1x8xbf16>
    tpu.vector_store %arg7[%c0_19, %c9_20, %c0_21], %18 {strides = array<i32>} : memref<10x10x8xbf16, #tpu.memory_space<vmem>>, vector<10x1x8xbf16>,
    %20 = arith.truncf %11 : vector<8x8x8xf32> to vector<8x8x8xbf16>
    %c1 = arith.constant 1 : index
    %c1_22 = arith.constant 1 : index
    %c0_23 = arith.constant 0 : index
    %21 = vector.load %arg7[%c1, %c1_22, %c0_23] : memref<10x10x8xbf16, #tpu.memory_space<vmem>>, vector<8x8x8xbf16>
    tpu.vector_store %arg7[%c1, %c1_22, %c0_23], %20 {strides = array<i32>} : memref<10x10x8xbf16, #tpu.memory_space<vmem>>, vector<8x8x8xbf16>,
    %c0_24 = arith.constant 0 : index
    %c0_25 = arith.constant 0 : index
    %c0_26 = arith.constant 0 : index
    %22 = vector.load %arg7[%c0_24, %c0_25, %c0_26] : memref<10x10x8xbf16, #tpu.memory_space<vmem>>, vector<8x10x8xbf16>
    %23 = vector.extract_strided_slice %22 {offsets = [0, 0, 0], sizes = [8, 8, 8], strides = [1, 1, 1]} : vector<8x10x8xbf16> to vector<8x8x8xbf16>
    %24 = vector.shape_cast %23 : vector<8x8x8xbf16> to vector<64x8xbf16>
    %c0_27 = arith.constant 0 : index
    %c0_28 = arith.constant 0 : index
    %c0_29 = arith.constant 0 : index
    %c0_30 = arith.constant 0 : index
    %25 = vector.load %arg4[%c0_27, %c0_28, %c0_29, %c0_30] : memref<3x3x8x8xbf16, #tpu.memory_space<vmem>>, vector<1x1x8x8xbf16>
    %26 = vector.shape_cast %25 : vector<1x1x8x8xbf16> to vector<8x8xbf16>
    %cst_31 = arith.constant dense<0.000000e+00> : vector<64x8xf32>
    %27 = tpu.matmul %24, %26, %cst_31 {dimension_numbers = #tpu.dot_dimension_numbers<[1], [0], [0], [1], [0, 0, 1, 1], [], []>} : vector<64x8xbf16>, vector<8x8xbf16>, vector<64x8xf32> -> vector<64x8xf32>
    %28 = vector.extract_strided_slice %22 {offsets = [0, 1, 0], sizes = [8, 8, 8], strides = [1, 1, 1]} : vector<8x10x8xbf16> to vector<8x8x8xbf16>
    %29 = vector.shape_cast %28 : vector<8x8x8xbf16> to vector<64x8xbf16>
    %c0_32 = arith.constant 0 : index
    %c1_33 = arith.constant 1 : index
    %c0_34 = arith.constant 0 : index
    %c0_35 = arith.constant 0 : index
    %30 = vector.load %arg4[%c0_32, %c1_33, %c0_34, %c0_35] : memref<3x3x8x8xbf16, #tpu.memory_space<vmem>>, vector<1x1x8x8xbf16>
    %31 = vector.shape_cast %30 : vector<1x1x8x8xbf16> to vector<8x8xbf16>
    %cst_36 = arith.constant dense<0.000000e+00> : vector<64x8xf32>
    %32 = tpu.matmul %29, %31, %cst_36 {dimension_numbers = #tpu.dot_dimension_numbers<[1], [0], [0], [1], [0, 0, 1, 1], [], []>} : vector<64x8xbf16>, vector<8x8xbf16>, vector<64x8xf32> -> vector<64x8xf32>
    %33 = arith.addf %27, %32 : vector<64x8xf32>
    %34 = vector.extract_strided_slice %22 {offsets = [0, 2, 0], sizes = [8, 8, 8], strides = [1, 1, 1]} : vector<8x10x8xbf16> to vector<8x8x8xbf16>
    %35 = vector.shape_cast %34 : vector<8x8x8xbf16> to vector<64x8xbf16>
    %c0_37 = arith.constant 0 : index
    %c2 = arith.constant 2 : index
    %c0_38 = arith.constant 0 : index
    %c0_39 = arith.constant 0 : index
    %36 = vector.load %arg4[%c0_37, %c2, %c0_38, %c0_39] : memref<3x3x8x8xbf16, #tpu.memory_space<vmem>>, vector<1x1x8x8xbf16>
    %37 = vector.shape_cast %36 : vector<1x1x8x8xbf16> to vector<8x8xbf16>
    %cst_40 = arith.constant dense<0.000000e+00> : vector<64x8xf32>
    %38 = tpu.matmul %35, %37, %cst_40 {dimension_numbers = #tpu.dot_dimension_numbers<[1], [0], [0], [1], [0, 0, 1, 1], [], []>} : vector<64x8xbf16>, vector<8x8xbf16>, vector<64x8xf32> -> vector<64x8xf32>
    %39 = arith.addf %33, %38 : vector<64x8xf32>
    %c1_41 = arith.constant 1 : index
    %c0_42 = arith.constant 0 : index
    %c0_43 = arith.constant 0 : index
    %40 = vector.load %arg7[%c1_41, %c0_42, %c0_43] : memref<10x10x8xbf16, #tpu.memory_space<vmem>>, vector<8x10x8xbf16>
    %41 = vector.extract_strided_slice %40 {offsets = [0, 0, 0], sizes = [8, 8, 8], strides = [1, 1, 1]} : vector<8x10x8xbf16> to vector<8x8x8xbf16>
    %42 = vector.shape_cast %41 : vector<8x8x8xbf16> to vector<64x8xbf16>
    %c1_44 = arith.constant 1 : index
    %c0_45 = arith.constant 0 : index
    %c0_46 = arith.constant 0 : index
    %c0_47 = arith.constant 0 : index
    %43 = vector.load %arg4[%c1_44, %c0_45, %c0_46, %c0_47] : memref<3x3x8x8xbf16, #tpu.memory_space<vmem>>, vector<1x1x8x8xbf16>
    %44 = vector.shape_cast %43 : vector<1x1x8x8xbf16> to vector<8x8xbf16>
    %cst_48 = arith.constant dense<0.000000e+00> : vector<64x8xf32>
    %45 = tpu.matmul %42, %44, %cst_48 {dimension_numbers = #tpu.dot_dimension_numbers<[1], [0], [0], [1], [0, 0, 1, 1], [], []>} : vector<64x8xbf16>, vector<8x8xbf16>, vector<64x8xf32> -> vector<64x8xf32>
    %46 = arith.addf %39, %45 : vector<64x8xf32>
    %47 = vector.extract_strided_slice %40 {offsets = [0, 1, 0], sizes = [8, 8, 8], strides = [1, 1, 1]} : vector<8x10x8xbf16> to vector<8x8x8xbf16>
    %48 = vector.shape_cast %47 : vector<8x8x8xbf16> to vector<64x8xbf16>
    %c1_49 = arith.constant 1 : index
    %c1_50 = arith.constant 1 : index
    %c0_51 = arith.constant 0 : index
    %c0_52 = arith.constant 0 : index
    %49 = vector.load %arg4[%c1_49, %c1_50, %c0_51, %c0_52] : memref<3x3x8x8xbf16, #tpu.memory_space<vmem>>, vector<1x1x8x8xbf16>
    %50 = vector.shape_cast %49 : vector<1x1x8x8xbf16> to vector<8x8xbf16>
    %cst_53 = arith.constant dense<0.000000e+00> : vector<64x8xf32>
    %51 = tpu.matmul %48, %50, %cst_53 {dimension_numbers = #tpu.dot_dimension_numbers<[1], [0], [0], [1], [0, 0, 1, 1], [], []>} : vector<64x8xbf16>, vector<8x8xbf16>, vector<64x8xf32> -> vector<64x8xf32>
    %52 = arith.addf %46, %51 : vector<64x8xf32>
    %53 = vector.extract_strided_slice %40 {offsets = [0, 2, 0], sizes = [8, 8, 8], strides = [1, 1, 1]} : vector<8x10x8xbf16> to vector<8x8x8xbf16>
    %54 = vector.shape_cast %53 : vector<8x8x8xbf16> to vector<64x8xbf16>
    %c1_54 = arith.constant 1 : index
    %c2_55 = arith.constant 2 : index
    %c0_56 = arith.constant 0 : index
    %c0_57 = arith.constant 0 : index
    %55 = vector.load %arg4[%c1_54, %c2_55, %c0_56, %c0_57] : memref<3x3x8x8xbf16, #tpu.memory_space<vmem>>, vector<1x1x8x8xbf16>
    %56 = vector.shape_cast %55 : vector<1x1x8x8xbf16> to vector<8x8xbf16>
    %cst_58 = arith.constant dense<0.000000e+00> : vector<64x8xf32>
    %57 = tpu.matmul %54, %56, %cst_58 {dimension_numbers = #tpu.dot_dimension_numbers<[1], [0], [0], [1], [0, 0, 1, 1], [], []>} : vector<64x8xbf16>, vector<8x8xbf16>, vector<64x8xf32> -> vector<64x8xf32>
    %58 = arith.addf %52, %57 : vector<64x8xf32>
    %c2_59 = arith.constant 2 : index
    %c0_60 = arith.constant 0 : index
    %c0_61 = arith.constant 0 : index
    %59 = vector.load %arg7[%c2_59, %c0_60, %c0_61] : memref<10x10x8xbf16, #tpu.memory_space<vmem>>, vector<8x10x8xbf16>
    %60 = vector.extract_strided_slice %59 {offsets = [0, 0, 0], sizes = [8, 8, 8], strides = [1, 1, 1]} : vector<8x10x8xbf16> to vector<8x8x8xbf16>
    %61 = vector.shape_cast %60 : vector<8x8x8xbf16> to vector<64x8xbf16>
    %c2_62 = arith.constant 2 : index
    %c0_63 = arith.constant 0 : index
    %c0_64 = arith.constant 0 : index
    %c0_65 = arith.constant 0 : index
    %62 = vector.load %arg4[%c2_62, %c0_63, %c0_64, %c0_65] : memref<3x3x8x8xbf16, #tpu.memory_space<vmem>>, vector<1x1x8x8xbf16>
    %63 = vector.shape_cast %62 : vector<1x1x8x8xbf16> to vector<8x8xbf16>
    %cst_66 = arith.constant dense<0.000000e+00> : vector<64x8xf32>
    %64 = tpu.matmul %61, %63, %cst_66 {dimension_numbers = #tpu.dot_dimension_numbers<[1], [0], [0], [1], [0, 0, 1, 1], [], []>} : vector<64x8xbf16>, vector<8x8xbf16>, vector<64x8xf32> -> vector<64x8xf32>
    %65 = arith.addf %58, %64 : vector<64x8xf32>
    %66 = vector.extract_strided_slice %59 {offsets = [0, 1, 0], sizes = [8, 8, 8], strides = [1, 1, 1]} : vector<8x10x8xbf16> to vector<8x8x8xbf16>
    %67 = vector.shape_cast %66 : vector<8x8x8xbf16> to vector<64x8xbf16>
    %c2_67 = arith.constant 2 : index
    %c1_68 = arith.constant 1 : index
    %c0_69 = arith.constant 0 : index
    %c0_70 = arith.constant 0 : index
    %68 = vector.load %arg4[%c2_67, %c1_68, %c0_69, %c0_70] : memref<3x3x8x8xbf16, #tpu.memory_space<vmem>>, vector<1x1x8x8xbf16>
    %69 = vector.shape_cast %68 : vector<1x1x8x8xbf16> to vector<8x8xbf16>
    %cst_71 = arith.constant dense<0.000000e+00> : vector<64x8xf32>
    %70 = tpu.matmul %67, %69, %cst_71 {dimension_numbers = #tpu.dot_dimension_numbers<[1], [0], [0], [1], [0, 0, 1, 1], [], []>} : vector<64x8xbf16>, vector<8x8xbf16>, vector<64x8xf32> -> vector<64x8xf32>
    %71 = arith.addf %65, %70 : vector<64x8xf32>
    %72 = vector.extract_strided_slice %59 {offsets = [0, 2, 0], sizes = [8, 8, 8], strides = [1, 1, 1]} : vector<8x10x8xbf16> to vector<8x8x8xbf16>
    %73 = vector.shape_cast %72 : vector<8x8x8xbf16> to vector<64x8xbf16>
    %c2_72 = arith.constant 2 : index
    %c2_73 = arith.constant 2 : index
    %c0_74 = arith.constant 0 : index
    %c0_75 = arith.constant 0 : index
    %74 = vector.load %arg4[%c2_72, %c2_73, %c0_74, %c0_75] : memref<3x3x8x8xbf16, #tpu.memory_space<vmem>>, vector<1x1x8x8xbf16>
    %75 = vector.shape_cast %74 : vector<1x1x8x8xbf16> to vector<8x8xbf16>
    %cst_76 = arith.constant dense<0.000000e+00> : vector<64x8xf32>
    %76 = tpu.matmul %73, %75, %cst_76 {dimension_numbers = #tpu.dot_dimension_numbers<[1], [0], [0], [1], [0, 0, 1, 1], [], []>} : vector<64x8xbf16>, vector<8x8xbf16>, vector<64x8xf32> -> vector<64x8xf32>
    %77 = arith.addf %71, %76 : vector<64x8xf32>
    %78 = vector.shape_cast %77 : vector<64x8xf32> to vector<8x8x8xf32>
    %c0_77 = arith.constant 0 : index
    %c0_78 = arith.constant 0 : index
    %c0_79 = arith.constant 0 : index
    %c0_80 = arith.constant 0 : index
    %79 = vector.load %arg5[%c0_77, %c0_78, %c0_79, %c0_80] : memref<1x8x8x8xf32, #tpu.memory_space<vmem>>, vector<1x8x8x8xf32>
    %80 = vector.shape_cast %79 : vector<1x8x8x8xf32> to vector<8x8x8xf32>
    %81 = vector.shape_cast %78 : vector<8x8x8xf32> to vector<1x8x8x8xf32>
    tpu.vector_store %arg5[%c0_77, %c0_78, %c0_79, %c0_80], %81 {strides = array<i32>} : memref<1x8x8x8xf32, #tpu.memory_space<vmem>>, vector<1x8x8x8xf32>,
    %cst_81 = arith.constant dense<0.000000e+00> : vector<8xf32>
    %82 = vector.multi_reduction <add>, %77, %cst_81 [0] : vector<64x8xf32> to vector<8xf32>
    %83 = vector.shape_cast %82 : vector<8xf32> to vector<1x8xf32>
    %c0_82 = arith.constant 0 : index
    %c0_83 = arith.constant 0 : index
    %c0_84 = arith.constant 0 : index
    %c0_85 = arith.constant 0 : index
    %84 = vector.load %arg6[%c0_82, %c0_83, %c0_84, %c0_85] : memref<1x1x2x8xf32, #tpu.memory_space<vmem>>, vector<1x1x1x8xf32>
    %85 = vector.shape_cast %84 : vector<1x1x1x8xf32> to vector<1x8xf32>
    %86 = vector.shape_cast %83 : vector<1x8xf32> to vector<1x1x1x8xf32>
    tpu.vector_store %arg6[%c0_82, %c0_83, %c0_84, %c0_85], %86 {strides = array<i32>} : memref<1x1x2x8xf32, #tpu.memory_space<vmem>>, vector<1x1x1x8xf32>,
    %87 = arith.mulf %77, %77 : vector<64x8xf32>
    %cst_86 = arith.constant dense<0.000000e+00> : vector<8xf32>
    %88 = vector.multi_reduction <add>, %87, %cst_86 [0] : vector<64x8xf32> to vector<8xf32>
    %89 = vector.shape_cast %88 : vector<8xf32> to vector<1x8xf32>
    %c0_87 = arith.constant 0 : index
    %c0_88 = arith.constant 0 : index
    %c1_89 = arith.constant 1 : index
    %c0_90 = arith.constant 0 : index
    %90 = vector.load %arg6[%c0_87, %c0_88, %c1_89, %c0_90] : memref<1x1x2x8xf32, #tpu.memory_space<vmem>>, vector<1x1x1x8xf32>
    %91 = vector.shape_cast %90 : vector<1x1x1x8xf32> to vector<1x8xf32>
    %92 = vector.shape_cast %89 : vector<1x8xf32> to vector<1x1x1x8xf32>
    tpu.vector_store %arg6[%c0_87, %c0_88, %c1_89, %c0_90], %92 {strides = array<i32>} : memref<1x1x2x8xf32, #tpu.memory_space<vmem>>, vector<1x1x1x8xf32>,
    return
  }
  func.func @transform_0(%arg0: i32) -> (i32, i32, i32, i32) {
    %c0_i32 = arith.constant 0 : i32
    %c0_i32_0 = arith.constant 0 : i32
    %c0_i32_1 = arith.constant 0 : i32
    %c0_i32_2 = arith.constant 0 : i32
    return %arg0, %c0_i32, %c0_i32_0, %c0_i32_1 : i32, i32, i32, i32
  }
  func.func @transform_1(%arg0: i32) -> (i32, i32) {
    %c0_i32 = arith.constant 0 : i32
    %c0_i32_0 = arith.constant 0 : i32
    %c0_i32_1 = arith.constant 0 : i32
    return %c0_i32, %c0_i32_0 : i32, i32
  }
  func.func @transform_2(%arg0: i32) -> (i32, i32) {
    %c0_i32 = arith.constant 0 : i32
    %c0_i32_0 = arith.constant 0 : i32
    %c0_i32_1 = arith.constant 0 : i32
    return %c0_i32, %c0_i32_0 : i32, i32
  }
  func.func @transform_3(%arg0: i32) -> (i32, i32, i32, i32) {
    %c0_i32 = arith.constant 0 : i32
    %c0_i32_0 = arith.constant 0 : i32
    %c0_i32_1 = arith.constant 0 : i32
    %c0_i32_2 = arith.constant 0 : i32
    %c0_i32_3 = arith.constant 0 : i32
    return %c0_i32, %c0_i32_0, %c0_i32_1, %c0_i32_2 : i32, i32, i32, i32
  }
  func.func @transform_4(%arg0: i32) -> (i32, i32, i32, i32) {
    %c0_i32 = arith.constant 0 : i32
    %c0_i32_0 = arith.constant 0 : i32
    %c0_i32_1 = arith.constant 0 : i32
    %c0_i32_2 = arith.constant 0 : i32
    return %arg0, %c0_i32, %c0_i32_0, %c0_i32_1 : i32, i32, i32, i32
  }
  func.func @transform_5(%arg0: i32) -> (i32, i32, i32, i32) {
    %c0_i32 = arith.constant 0 : i32
    %c0_i32_0 = arith.constant 0 : i32
    %c0_i32_1 = arith.constant 0 : i32
    %c0_i32_2 = arith.constant 0 : i32
    return %arg0, %c0_i32, %c0_i32_0, %c0_i32_1 : i32, i32, i32, i32
  }
}

</mosaic_0001>

<bundles_post_ra>
// kernel: downsample_forward.5
= control target key start
LH: loop header
LB: loop body
LE: loop exit
PB: predicated region body
PF: predicated region fallthrough
CT: control target
= control target key end

     0   :  { %s332_s12 = smov 0   ;;  %s363_s0 = inlined_call_operand.vmem [shape: f32[2,8,8,8], index: 0, kind: input, shape index: {}]   ;;  %s364_s1 = inlined_call_operand.vmem [shape: f32[1,8], index: 1, kind: input, shape index: {}]   ;;  %s365_s2 = inlined_call_operand.vmem [shape: f32[1,8], index: 2, kind: input, shape index: {}]   ;;  %s366_s3 = inlined_call_operand.vmem [shape: f32[2,8,8,8], index: 3, kind: output, shape index: {}]  }
   0x1 LB: > { %s281_s13 = sadd.s32 4294967295, %s310_s12   ;;  %p285_p0 = scmp.ge.s32.totalorder %s310_s12, 1  ;;  %s310_s12 = sphi %s332_s12, %s13_s12  }
   0x2   : > { %p137_p1 = scmp.lt.s32.totalorder %s310_s12, 3 }
   0x4   : > { %p138_p2 = pnand %p285_p0, %p137_p1 }
   0x5   : > { %p161_p3 = scmp.lt.s32.totalorder (!%p138_p2), %s281_s13, 1  ;;  %v290_v0 = vld [vmem:[%s364_s1] ss:$0 sm:$0xff] (!%p138_p2)  ;;  %vm217_vm0 = vcmask (!%p138_p2), 64512  }
   0x6   : > { %141 = sbr.rel (%p138_p2) target bundleno = 27 (0x1b), region = 32  ;;  %v291_v1 = vld [vmem:[%s365_s2] ss:$0 sm:$0xff] (!%p138_p2) }
   0xd   : > { %s368_s13 = smov (!%p161_p3, %s281_s13), 1 }
   0xe   : > { %s294_s14 = sshll.u32 %s368_s13, 6 }
   0xf   : > { %s165_s19 = scalar_lea.vmem %s363_s0, %s294_s14  ;;  %s170_s24 = scalar_lea.vmem %s366_s3, %s294_s14 }
  0x10   : > { %v171_v2 = vld [vmem:[%s165_s19] sm:$0xff]  ;;  %v172_v3 = vld [vmem:[%s165_s19 + $0x8] sm:$0xff]  ;;  %v173_v4 = vld [vmem:[%s165_s19 + $0x10] sm:$0xff] }
  0x11   : > { %v186_v5 = vmul.f32 %v290_v0, %v171_v2  ;;  %v187_v6 = vmul.f32 %v290_v0, %v172_v3  ;;  %v188_v7 = vmul.f32 %v290_v0, %v173_v4  ;;  %v174_v8 = vld [vmem:[%s165_s19 + $0x18] sm:$0xff]  ;;  %v175_v9 = vld [vmem:[%s165_s19 + $0x20] sm:$0xff]  ;;  %v176_v10 = vld [vmem:[%s165_s19 + $0x28] sm:$0xff] }
  0x12   : > { %v189_v11 = vmul.f32 %v290_v0, %v174_v8  ;;  %v190_v12 = vmul.f32 %v290_v0, %v175_v9  ;;  %v191_v13 = vmul.f32 %v290_v0, %v176_v10  ;;  %v177_v14 = vld [vmem:[%s165_s19 + $0x30] sm:$0xff]  ;;  %v178_v15 = vld [vmem:[%s165_s19 + $0x38] sm:$0xff] }
  0x13   : > { %v201_v16 = vadd.f32 %v291_v1, %v186_v5  ;;  %v202_v17 = vadd.f32 %v291_v1, %v187_v6  ;;  %v203_v18 = vadd.f32 %v291_v1, %v188_v7  ;;  %v192_v19 = vmul.f32 %v290_v0, %v177_v14 }
  0x14   : > { %v204_v20 = vadd.f32 %v291_v1, %v189_v11  ;;  %v205_v21 = vadd.f32 %v291_v1, %v190_v12  ;;  %v206_v22 = vadd.f32 %v291_v1, %v191_v13  ;;  %v193_v23 = vmul.f32 %v290_v0, %v178_v15 }
  0x15   : > { %v209_v24 = vmax.f32 %v201_v16, 0.0  ;;  %v210_v25 = vmax.f32 %v202_v17, 0.0  ;;  %v211_v26 = vmax.f32 %v203_v18, 0.0  ;;  %v207_v27 = vadd.f32 %v291_v1, %v192_v19 }
  0x16   : > { %v212_v28 = vmax.f32 %v204_v20, 0.0  ;;  %v213_v29 = vmax.f32 %v205_v21, 0.0  ;;  %v214_v30 = vmax.f32 %v206_v22, 0.0  ;;  %v208_v31 = vadd.f32 %v291_v1, %v193_v23 }
  0x17   : > { %218 = vst.msk [vmem:[%s170_s24] sm:$0xff] %vm217_vm0, %v209_v24  ;;  %219 = vst.msk [vmem:[%s170_s24 + $0x8] sm:$0xff] %vm217_vm0, %v210_v25  ;;  %v215_v32 = vmax.f32 %v207_v27, 0.0 }
  0x18   : > { %220 = vst.msk [vmem:[%s170_s24 + $0x10] sm:$0xff] %vm217_vm0, %v211_v26  ;;  %221 = vst.msk [vmem:[%s170_s24 + $0x18] sm:$0xff] %vm217_vm0, %v212_v28  ;;  %v216_v33 = vmax.f32 %v208_v31, 0.0 }
  0x19   : > { %222 = vst.msk [vmem:[%s170_s24 + $0x20] sm:$0xff] %vm217_vm0, %v213_v29  ;;  %223 = vst.msk [vmem:[%s170_s24 + $0x28] sm:$0xff] %vm217_vm0, %v214_v30 }
  0x1a   : > { %224 = vst.msk [vmem:[%s170_s24 + $0x30] sm:$0xff] %vm217_vm0, %v215_v32  ;;  %225 = vst.msk [vmem:[%s170_s24 + $0x38] sm:$0xff] %vm217_vm0, %v216_v33 }
  0x1b PF: > { %s13_s12 = sadd.s32 1, %s310_s12  }
  0x1c   : > { %p10_p4 = scmp.ge.s32.totalorder %s13_s12, 4  }
  0x1e   :  { %12 = sbr.rel (!%p10_p4) target bundleno = 1 (0x1), region = 62 }

// kernel: downsample_forward.4
= control target key start
LH: loop header
LB: loop body
LE: loop exit
PB: predicated region body
PF: predicated region fallthrough
CT: control target
= control target key end

     0   :  { %s2509_s18 = smov 0   ;;  %s3225_s0 = inlined_call_operand.vmem [shape: f32[2,8,8,8], index: 0, kind: input, shape index: {}]   ;;  %s3226_s1 = inlined_call_operand.vmem [shape: f32[1,8], index: 1, kind: input, shape index: {}]   ;;  %s3227_s2 = inlined_call_operand.vmem [shape: f32[1,8], index: 2, kind: input, shape index: {}]   ;;  %s3228_s3 = inlined_call_operand.vmem [shape: bf16[3,3,8,8], index: 3, kind: input, shape index: {}]   ;;  %s3229_s4 = inlined_call_operand.vmem [shape: f32[2,8,8,8], index: 4, kind: output, shape index: {0}]   ;;  %s3230_s5 = inlined_call_operand.vmem [shape: f32[2,1,2,8], index: 5, kind: output, shape index: {1}]  }
   0x1 LB: > { %s2102_s19 = sadd.s32 4294967295, %s2476_s18   ;;  %p2106_p0 = scmp.ge.s32.totalorder %s2476_s18, 1  ;;  %s2476_s18 = sphi %s2509_s18, %s16_s18  }
   0x2   : > { %p190_p1 = scmp.lt.s32.totalorder %s2476_s18, 3 }
   0x4   : > { %p191_p2 = pnand %p2106_p0, %p190_p1 }
   0x6   : > { %194 = sbr.rel (%p191_p2) target bundleno = 397 (0x18d), region = 36 }
   0xd   : > { %v2122_v0 = vld [vmem:[%s3228_s3 + $0x4] sm:$0xf]  ;;  %vm677_vm0 = vcmask 1043456   ;;  %v2165_v1 = vld [vmem:[%s3228_s3 + $0x10] sm:$0xf]  ;;  %p222_p3 = scmp.lt.s32.totalorder %s2102_s19, 1 }
   0xe   : > { %2439 = vmatprep.subr.msk.bf16.mxu1 %vm677_vm0, %v2122_v0  ;;  %2443 = vmatprep.subr.msk.bf16.mxu0 %vm677_vm0, %v2165_v1  ;;  %v679_v2 = vsel %vm677_vm0, %v2122_v0, 0  ;;  %v2527_v3 = vsel %vm677_vm0, %v2165_v1, 0  ;;  %vm283_vm1 = vcmask 60416   ;;  %vm285_vm2 = vcmask 57344   ;;  %v296_v6 = vld [vmem:[#allocation2 + $0x8] sm:$0x1] }
   0xf   : > { %2284 = vmatpush3.bf16.msra.mxu1 %v679_v2  ;;  %2324 = vmatpush3.bf16.msra.mxu0 %v2527_v3  ;;  %s3256_s19 = smov (!%p222_p3, %s2102_s19), 1  ;;  %vm291_vm3 = vsmask.f32 256  ;;  %v2478_v4 = vmov 0   ;;  %vm323_vm5 = vsmask.f32 7938 }
  0x10   : > { %284 = vst.msk [vmem:[#allocation2] sm:$0xf] %vm283_vm1, %v2478_v4  ;;  %vm2535_vm4 = vmand %vm285_vm2, %vm291_vm3  ;;  %v328_v7 = vld [vmem:[#allocation2 + $0xc] sm:$0x1]  ;;  %s2228_s24 = sshll.u32 %s3256_s19, 6  ;;  %vm664_vm11 = vcmask 64512  }
  0x11   : > { %286 = vst.msk [vmem:[#allocation2 + $0x4] sm:$0x1] %vm285_vm2, %v2478_v4  ;;  %289 = vst.msk [vmem:[#allocation2 + $0x4c] sm:$0x1] %vm285_vm2, %v2478_v4  ;;  %v2545_v8 = vld [vmem:[%s3226_s1] ss:$0 sm:$0xff]  ;;  %s2560_s29 = scalar_lea.vmem %s3225_s0, %s2228_s24  ;;  %s3182_s28 = scalar_lea.vmem %s3229_s4, %s2228_s24 }
  0x12   : > { %288 = vst.msk [vmem:[#allocation2 + $0x48] sm:$0xf] %vm283_vm1, %v2478_v4  ;;  %v297_v9 = vsel %vm2535_vm4, 0, %v296_v6  ;;  %vm2551_vm6 = vmand %vm285_vm2, %vm323_vm5  ;;  %v2567_v12 = vld [vmem:[%s3228_s3] sm:$0xf]  ;;  %v238_v16 = vld [vmem:[%s2560_s29 + $0x8] sm:$0xff] }
  0x13   : > { %298 = vst [vmem:[#allocation2 + $0x8] sm:$0x1] %v297_v9  ;;  %v329_v11 = vsel %vm2551_vm6, 0, %v328_v7  ;;  %v299_v13 = vld [vmem:[#allocation2 + $0x10] sm:$0x1]  ;;  %v237_v14 = vld [vmem:[%s2560_s29] sm:$0xff]  ;;  %2440 = vmatprep.subr.msk.bf16.mxu1 %vm677_vm0, %v2567_v12  ;;  %v253_v19 = vmul.f32 %v2545_v8, %v238_v16  ;;  %vm2627_vm9 = vmand %vm283_vm1, %vm323_vm5 }
  0x14   : > { %v2573_v15 = vld [vmem:[%s3227_s2] ss:$0 sm:$0xff]  ;;  %330 = vst [vmem:[#allocation2 + $0xc] sm:$0x1] %v329_v11  ;;  %v300_v17 = vsel %vm2535_vm4, 0, %v299_v13  ;;  %v252_v18 = vmul.f32 %v2545_v8, %v237_v14  ;;  %v239_v22 = vld [vmem:[%s2560_s29 + $0x10] sm:$0xff] }
  0x15   : > { %301 = vst [vmem:[#allocation2 + $0x10] sm:$0x1] %v300_v17  ;;  %v331_v20 = vld [vmem:[#allocation2 + $0x14] sm:$0x1]  ;;  %v254_v24 = vmul.f32 %v2545_v8, %v239_v22  ;;  %v302_v25 = vld [vmem:[#allocation2 + $0x18] sm:$0x1]  ;;  %v268_v29 = vadd.f32 %v2573_v15, %v253_v19 }
  0x16   : > { %v2585_v21 = vld [vmem:[%s3228_s3 + $0x14] sm:$0xf]  ;;  %v332_v23 = vsel %vm2551_vm6, 0, %v331_v20  ;;  %v334_v26 = vld [vmem:[#allocation2 + $0x1c] sm:$0x1]  ;;  %v267_v28 = vadd.f32 %v2573_v15, %v252_v18  ;;  %v303_v30 = vsel %vm2535_vm4, 0, %v302_v25 }
  0x17   : > { %2445 = vmatprep.subr.msk.bf16.mxu0 %vm677_vm0, %v2585_v21  ;;  %v240_v27 = vld [vmem:[%s2560_s29 + $0x18] sm:$0xff]  ;;  %333 = vst [vmem:[#allocation2 + $0x14] sm:$0x1] %v332_v23  ;;  %v335_v31 = vsel %vm2551_vm6, 0, %v334_v26  ;;  %v305_v32 = vld [vmem:[#allocation2 + $0x20] sm:$0x1]  ;;  %v269_v36 = vadd.f32 %v2573_v15, %v254_v24 }
  0x18   : > { %v337_v33 = vld [vmem:[#allocation2 + $0x24] sm:$0x1]  ;;  %v293_v34 = vld [vmem:[#allocation2] sm:$0x1]  ;;  %304 = vst [vmem:[#allocation2 + $0x18] sm:$0x1] %v303_v30  ;;  %v255_v37 = vmul.f32 %v2545_v8, %v240_v27 }
  0x19   : > { %v325_v35 = vld [vmem:[#allocation2 + $0x4] sm:$0x1]  ;;  %336 = vst [vmem:[#allocation2 + $0x1c] sm:$0x1] %v335_v31  ;;  %v306_v38 = vsel %vm2535_vm4, 0, %v305_v32  ;;  %v338_v39 = vsel %vm2551_vm6, 0, %v337_v33 }
  0x1a   : > { %v275_v40 = vmax.f32 %v267_v28, 0.0  ;;  %v294_v41 = vsel %vm2535_vm4, 0, %v293_v34  ;;  %v326_v42 = vsel %vm2551_vm6, 0, %v325_v35  ;;  %v276_v43 = vmax.f32 %v268_v29, 0.0  ;;  %307 = vst [vmem:[#allocation2 + $0x20] sm:$0x1] %v306_v38 }
  0x1b   : > { %339 = vst [vmem:[#allocation2 + $0x24] sm:$0x1] %v338_v39  ;;  %v241_v44 = vld [vmem:[%s2560_s29 + $0x20] sm:$0xff]  ;;  %295 = vst [vmem:[#allocation2] sm:$0x1] %v294_v41  ;;  %v277_v45 = vmax.f32 %v269_v36, 0.0  ;;  %v270_v46 = vadd.f32 %v2573_v15, %v255_v37 }
  0x1c   : > { %327 = vst [vmem:[#allocation2 + $0x4] sm:$0x1] %v326_v42  ;;  %v256_v47 = vmul.f32 %v2545_v8, %v241_v44  ;;  %v308_v48 = vld [vmem:[#allocation2 + $0x28] sm:$0x1]  ;;  %v2230_v49 = vpack.c.bf16 %v275_v40, %v275_v40  ;;  %v2231_v50 = vpack.c.bf16 %v276_v43, %v276_v43  ;;  %v340_v52 = vld [vmem:[#allocation2 + $0x2c] sm:$0x1] }
  0x1d   : > { %v309_v51 = vsel %vm2535_vm4, 0, %v308_v48  ;;  %v2232_v53 = vpack.c.bf16 %v277_v45, %v277_v45  ;;  %v278_v54 = vmax.f32 %v270_v46, 0.0  ;;  %v341_v56 = vsel %vm2551_vm6, 0, %v340_v52  ;;  %v242_v57 = vld [vmem:[%s2560_s29 + $0x28] sm:$0xff]  ;;  %v243_v62 = vld [vmem:[%s2560_s29 + $0x30] sm:$0xff]  ;;  %s2111_s24 = sshll.u32 %s3256_s19, 1 }
  0x1e   : > { %v271_v55 = vadd.f32 %v2573_v15, %v256_v47  ;;  %310 = vst [vmem:[#allocation2 + $0x28] sm:$0x1] %v309_v51  ;;  %v388_v58 = vshrl.u32 %v2230_v49, 16  ;;  %v391_v59 = vshll.u32 %v2230_v49, 16  ;;  %v396_v60 = vshrl.u32 %v2231_v50, 16  ;;  %s235_s6 = scalar_lea.vmem %s3230_s5, %s2111_s24 }
  0x1f   : > { %v399_v61 = vshll.u32 %v2231_v50, 16  ;;  %342 = vst [vmem:[#allocation2 + $0x2c] sm:$0x1] %v341_v56  ;;  %v470_v63 = vld [vmem:[#allocation2 + $0x8] sm:$0xf]  ;;  %v404_v0 = vshrl.u32 %v2232_v53, 16  ;;  %v2233_v2 = vpack.c.bf16 %v278_v54, %v278_v54  ;;  %v257_v13 = vmul.f32 %v2545_v8, %v242_v57 }
  0x20   : > { %v2622_v1 = vsel %vm677_vm0, %v2567_v12, 0  ;;  %v279_v4 = vmax.f32 %v271_v55, 0.0  ;;  %v390_v6 = vrot.slane %v388_v58, 7  ;;  %v473_v7 = vld [vmem:[#allocation2 + $0xc] sm:$0x1]  ;;  %v398_v9 = vrot.slane %v396_v60, 7 }
  0x21   : > { %vm535_vm7 = vsmask.f32 3328  ;;  %vm536_vm8 = vsmask.f32 7440  ;;  %v407_v11 = vshll.u32 %v2232_v53, 16  ;;  %v406_v12 = vrot.slane %v404_v0, 7 }
  0x22   : > { %v476_v16 = vld [vmem:[#allocation2 + $0x10] sm:$0xf]  ;;  %v479_v17 = vld [vmem:[#allocation2 + $0x14] sm:$0x1]  ;;  %v412_v18 = vshrl.u32 %v2233_v2, 16  ;;  %v2234_v19 = vpack.c.bf16 %v279_v4, %v279_v4  ;;  %v258_v20 = vmul.f32 %v2545_v8, %v243_v62  ;;  %v393_v22 = vor.u32 %v391_v59, %v390_v6  ;;  %vm2668_vm10 = vmor %vm535_vm7, %vm536_vm8 }
  0x23   : > { %v394_v23 = vrot.slane %v390_v6, 4  ;;  %v2632_v24 = vld [vmem:[#allocation2] sm:$0xf]  ;;  %v2634_v25 = vld [vmem:[#allocation2 + $0x4] sm:$0x1]  ;;  %v401_v26 = vor.u32 %v399_v61, %v398_v9  ;;  %v402_v27 = vrot.slane %v398_v9, 4  ;;  %v409_v40 = vor.u32 %v407_v11, %v406_v12 }
  0x24   : > { %v539_v28 = vshrl.u32 %v2632_v24, 16  ;;  %v542_v29 = vshll.u32 %v2632_v24, 16  ;;  %v548_v30 = vshll.u32 %v2634_v25, 16  ;;  %v415_v31 = vshll.u32 %v2233_v2, 16  ;;  %v482_v36 = vld [vmem:[#allocation2 + $0x18] sm:$0xf] }
  0x25   : > { %v471_v32 = vsel %vm2627_vm9, %v393_v22, %v470_v63  ;;  %v474_v33 = vsel %vm2535_vm4, %v394_v23, %v473_v7  ;;  %v477_v34 = vsel %vm2627_vm9, %v401_v26, %v476_v16  ;;  %v480_v35 = vsel %vm2535_vm4, %v402_v27, %v479_v17  ;;  %v311_v37 = vld [vmem:[#allocation2 + $0x30] sm:$0x1]  ;;  %v485_v41 = vld [vmem:[#allocation2 + $0x1c] sm:$0x1]  ;;  %v314_v43 = vld [vmem:[#allocation2 + $0x38] sm:$0x1] }
  0x26   : > { %472 = vst [vmem:[#allocation2 + $0x8] sm:$0xf] %v471_v32  ;;  %475 = vst [vmem:[#allocation2 + $0xc] sm:$0x1] %v474_v33  ;;  %v541_v38 = vrot.slane %v539_v28, 4  ;;  %v544_v39 = vrot.slane %v542_v29, 5  ;;  %v272_v42 = vadd.f32 %v2573_v15, %v257_v13  ;;  %v483_v51 = vsel %vm2627_vm9, %v409_v40, %v482_v36 }
  0x27   : > { %478 = vst [vmem:[#allocation2 + $0x10] sm:$0xf] %v477_v34  ;;  %481 = vst [vmem:[#allocation2 + $0x14] sm:$0x1] %v480_v35  ;;  %v410_v44 = vrot.slane %v406_v12, 4  ;;  %v414_v45 = vrot.slane %v412_v18, 7  ;;  %v273_v54 = vadd.f32 %v2573_v15, %v258_v20 }
  0x28   : > { %v488_v46 = vld [vmem:[#allocation2 + $0x20] sm:$0xf]  ;;  %v420_v47 = vshrl.u32 %v2234_v19, 16  ;;  %v423_v48 = vshll.u32 %v2234_v19, 16  ;;  %v545_v49 = vor.u32 %v544_v39, %v541_v38  ;;  %v2648_v50 = vrot.slane %v548_v30, 5  ;;  %v244_v11 = vld [vmem:[%s2560_s29 + $0x38] sm:$0xff] }
  0x29   : > { %v491_v52 = vld [vmem:[#allocation2 + $0x24] sm:$0x1]  ;;  %v494_v53 = vld [vmem:[#allocation2 + $0x28] sm:$0xf]  ;;  %484 = vst [vmem:[#allocation2 + $0x18] sm:$0xf] %v483_v51  ;;  %v486_v55 = vsel %vm2535_vm4, %v410_v44, %v485_v41  ;;  %v417_v56 = vor.u32 %v415_v31, %v414_v45  ;;  %v259_v30 = vmul.f32 %v2545_v8, %v244_v11 }
  0x2a   : > { %v418_v57 = vrot.slane %v414_v45, 4  ;;  %v422_v58 = vrot.slane %v420_v47, 7  ;;  %v343_v59 = vld [vmem:[#allocation2 + $0x34] sm:$0x1]  ;;  %v346_v60 = vld [vmem:[#allocation2 + $0x3c] sm:$0x1] }
  0x2b   : > { %v2655_v61 = vrot.slane %v545_v49, 4  ;;  %487 = vst [vmem:[#allocation2 + $0x1c] sm:$0x1] %v486_v55  ;;  %v497_v62 = vld [vmem:[#allocation2 + $0x2c] sm:$0x1]  ;;  %v280_v63 = vmax.f32 %v272_v42, 0.0  ;;  %v489_v4 = vsel %vm2627_vm9, %v417_v56, %v488_v46 }
  0x2c   : > { %v312_v0 = vsel %vm2535_vm4, 0, %v311_v37  ;;  %v315_v2 = vsel %vm2535_vm4, 0, %v314_v43  ;;  %v492_v6 = vsel %vm2535_vm4, %v418_v57, %v491_v52  ;;  %v425_v7 = vor.u32 %v423_v48, %v422_v58  ;;  %490 = vst [vmem:[#allocation2 + $0x20] sm:$0xf] %v489_v4 }
  0x2d   : > { %v426_v9 = vrot.slane %v422_v58, 4  ;;  %313 = vst [vmem:[#allocation2 + $0x30] sm:$0x1] %v312_v0  ;;  %316 = vst [vmem:[#allocation2 + $0x38] sm:$0x1] %v315_v2  ;;  %v2674_v16 = vsel %vm677_vm0, %v2585_v21, 0  ;;  %v551_v31 = vsel %vm2668_vm10, %v2655_v61, %v2648_v50  ;;  %v2706_v36 = vpack.c.bf16 %v280_v63, %v280_v63 }
  0x2e   : > { %493 = vst [vmem:[#allocation2 + $0x24] sm:$0x1] %v492_v6  ;;  %v281_v17 = vmax.f32 %v273_v54, 0.0  ;;  %v344_v12 = vsel %vm2551_vm6, 0, %v343_v59  ;;  %v347_v18 = vsel %vm2551_vm6, 0, %v346_v60  ;;  %v495_v23 = vsel %vm2627_vm9, %v425_v7, %v494_v53 }
  0x2f   : > { %v2680_v19 = vld [vmem:[#allocation2 + $0x8] sm:$0xf]  ;;  %v2682_v20 = vld [vmem:[#allocation2 + $0xc] sm:$0x1]  ;;  %v498_v21 = vsel %vm2535_vm4, %v426_v9, %v497_v62  ;;  %345 = vst [vmem:[#allocation2 + $0x34] sm:$0x1] %v344_v12  ;;  %v2721_v50 = vadd.f32 %v2573_v15, %v259_v30 }
  0x30   : > { %v2684_v22 = vld [vmem:[#allocation2 + $0x8] sm:$0xf]  ;;  %348 = vst [vmem:[#allocation2 + $0x3c] sm:$0x1] %v347_v18  ;;  %v553_v26 = vshrl.u32 %v2680_v19, 16  ;;  %v556_v27 = vshll.u32 %v2680_v19, 16  ;;  %v2709_v8 = vpack.c.bf16 %v281_v17, %v281_v17 }
  0x31   : > { %v562_v28 = vshll.u32 %v2682_v20, 16  ;;  %v2693_v29 = vld [vmem:[#allocation2 + $0xc] sm:$0x1]  ;;  %496 = vst [vmem:[#allocation2 + $0x28] sm:$0xf] %v495_v23  ;;  %v1118_v34 = vshrl.u32 %v2684_v22, 16 }
  0x32   : > { %499 = vst [vmem:[#allocation2 + $0x2c] sm:$0x1] %v498_v21  ;;  %v2700_v32 = vld [vmem:[#allocation2 + $0x10] sm:$0xf]  ;;  %v2702_v33 = vld [vmem:[#allocation2 + $0x14] sm:$0x1] }
  0x33   : > { %v1121_v35 = vshll.u32 %v2684_v22, 16  ;;  %v555_v37 = vrot.slane %v553_v26, 4  ;;  %v558_v38 = vrot.slane %v556_v27, 5  ;;  %v1127_v39 = vshll.u32 %v2693_v29, 16  ;;  %v2713_v44 = vld [vmem:[#allocation2 + $0x10] sm:$0xf] }
  0x34   : > { %v1120_v40 = vrot.slane %v1118_v34, 4  ;;  %v1132_v42 = vshrl.u32 %v2700_v32, 16  ;;  %v1135_v43 = vshll.u32 %v2700_v32, 16  ;;  %v564_v46 = vrot.slane %v562_v28, 5  ;;  %v2716_v48 = vld [vmem:[#allocation2 + $0x14] sm:$0x1] }
  0x35   : > { %v1123_v41 = vrot.slane %v1121_v35, 5  ;;  %v559_v45 = vor.u32 %v558_v38, %v555_v37  ;;  %v1141_v47 = vshll.u32 %v2702_v33, 16  ;;  %v2718_v49 = vld [vmem:[#allocation2 + $0x18] sm:$0xf]  ;;  %v1129_v52 = vrot.slane %v1127_v39, 5 }
  0x36   : > { %v1134_v53 = vrot.slane %v1132_v42, 4  ;;  %v1137_v54 = vrot.slane %v1135_v43, 5  ;;  %v567_v57 = vshrl.u32 %v2713_v44, 16  ;;  %v570_v58 = vshll.u32 %v2713_v44, 16  ;;  %v2725_v61 = vld [vmem:[#allocation2 + $0x1c] sm:$0x1] }
  0x37   : > { %v1124_v51 = vor.u32 %v1123_v41, %v1120_v40  ;;  %v560_v55 = vrot.slane %v559_v45, 4  ;;  %v1143_v56 = vrot.slane %v1141_v47, 5  ;;  %v576_v62 = vshll.u32 %v2716_v48, 16  ;;  %v2732_v6 = vld [vmem:[#allocation2 + $0x18] sm:$0xf] }
  0x38   : > { %v1138_v60 = vor.u32 %v1137_v54, %v1134_v53  ;;  %v581_v63 = vshrl.u32 %v2718_v49, 16  ;;  %v569_v0 = vrot.slane %v567_v57, 4  ;;  %v572_v2 = vrot.slane %v570_v58, 5  ;;  %v2736_v12 = vld [vmem:[#allocation2 + $0x1c] sm:$0x1] }
  0x39   : > { %v1125_v59 = vrot.slane %v1124_v51, 4  ;;  %v565_v15 = vsel %vm2668_vm10, %v560_v55, %v564_v46  ;;  %v584_v4 = vshll.u32 %v2718_v49, 16  ;;  %v578_v17 = vrot.slane %v576_v62, 5  ;;  %v2739_v27 = vld [vmem:[#allocation2 + $0x20] sm:$0xf] }
  0x3a   : > { %v2123_v7 = vcombine.low %v551_v31, %v565_v15  ;;  %v1139_v11 = vrot.slane %v1138_v60, 4  ;;  %v573_v18 = vor.u32 %v572_v2, %v569_v0  ;;  %v583_v23 = vrot.slane %v581_v63, 4  ;;  %v2746_v34 = vld [vmem:[#allocation2 + $0x24] sm:$0x1]  ;;  %v2752_v46 = vld [vmem:[#allocation2 + $0x20] sm:$0xf] }
  0x3b   : > { %v1130_v9 = vsel %vm2668_vm10, %v1125_v59, %v1129_v52  ;;  %v586_v21 = vrot.slane %v584_v4, 5  ;;  %v590_v26 = vshll.u32 %v2725_v61, 16  ;;  %v1341_v30 = vrot.slane %v2693_v29, 5  ;;  %v2759_v54 = vld [vmem:[#allocation2 + $0x24] sm:$0x1] }
  0x3c   : > { %2285 = vmatprep.mubr.msk.bf16.mxu1 %vm664_vm11, %v2123_v7  ;;  %v1144_v28 = vsel %vm2668_vm10, %v1139_v11, %v1143_v56  ;;  %v1345_v31 = vrot.slane %v2702_v33, 5  ;;  %v1146_v35 = vshrl.u32 %v2732_v6, 16  ;;  %v574_v38 = vrot.slane %v573_v18, 4  ;;  %v2762_v59 = vld [vmem:[#allocation2 + $0x28] sm:$0xf] }
  0x3d   : > { %v2166_v37 = vcombine.low %v1130_v9, %v1144_v28  ;;  %v587_v39 = vor.u32 %v586_v21, %v583_v23  ;;  %v592_v40 = vrot.slane %v590_v26, 5  ;;  %vm854_vm12 = vcmask 1042432   ;;  %v2767_v0 = vld [vmem:[#allocation2 + $0x2c] sm:$0x1]  ;;  %v2777_v21 = vld [vmem:[%s3228_s3 + $0x8] sm:$0xf] }
  0x3e   : > { %vm855_vm13 = vcmask 1046532   ;;  %v1148_v41 = vrot.slane %v1146_v35, 4  ;;  %v1149_v42 = vshll.u32 %v2732_v6, 16  ;;  %v1155_v43 = vshll.u32 %v2736_v12, 16 }
  0x3f   : > { %v1160_v45 = vshrl.u32 %v2739_v27, 16  ;;  %2325 = vmatprep.mubr.msk.bf16.mxu0 %vm664_vm11, %v2166_v37  ;;  %v579_v47 = vsel %vm2668_vm10, %v574_v38, %v578_v17  ;;  %v588_v51 = vrot.slane %v587_v39, 4  ;;  %v1163_v52 = vshll.u32 %v2739_v27, 16  ;;  %vm2797_vm14 = vmor %vm854_vm12, %vm855_vm13 }
  0x40   : > { %v1169_v53 = vshll.u32 %v2746_v34, 16  ;;  %v1151_v55 = vrot.slane %v1149_v42, 5  ;;  %v1157_v56 = vrot.slane %v1155_v43, 5  ;;  %v1349_v58 = vrot.slane %v2736_v12, 5 }
  0x41   : > { %v1162_v57 = vrot.slane %v1160_v45, 4  ;;  %v593_v60 = vsel %vm2668_vm10, %v588_v51, %v592_v40  ;;  %v1165_v62 = vrot.slane %v1163_v52, 5  ;;  %v1353_v15 = vrot.slane %v2746_v34, 5  ;;  %v2853_v34 = vld [vmem:[%s3228_s3 + $0x1c] sm:$0xf] }
  0x42   : > { %v1171_v63 = vrot.slane %v1169_v53, 5  ;;  %v2124_v2 = vcombine.low %v579_v47, %v593_v60  ;;  %v1152_v4 = vor.u32 %v1151_v55, %v1148_v41  ;;  %v595_v7 = vshrl.u32 %v2752_v46, 16  ;;  %v2191_v55 = vld [vmem:[%s3228_s3 + $0x18] sm:$0xf] }
  0x43   : > { %v598_v9 = vshll.u32 %v2752_v46, 16  ;;  %v1166_v11 = vor.u32 %v1165_v62, %v1162_v57  ;;  %v604_v17 = vshll.u32 %v2759_v54, 16  ;;  %v609_v18 = vshrl.u32 %v2762_v59, 16 }
  0x44   : > { %v612_v23 = vshll.u32 %v2762_v59, 16  ;;  %2286 = vmatmul.mubr.msk.bf16.vlgmr.msra.gmra.mrb[0].mxu1 %vm664_vm11, %v2124_v2  ;;  %v1153_v26 = vrot.slane %v1152_v4, 4  ;;  %v597_v28 = vrot.slane %v595_v7, 4  ;;  %v618_v37 = vshll.u32 %v2767_v0, 16  ;;  %v500_v2 = vld [vmem:[#allocation2 + $0x30] sm:$0xf] }
  0x45   : > { %v600_v35 = vrot.slane %v598_v9, 5  ;;  %2294 = vmatpush3.bf16.msra.mxu1 %v2622_v1  ;;  %v1167_v38 = vrot.slane %v1166_v11, 4  ;;  %v606_v39 = vrot.slane %v604_v17, 5  ;;  %v611_v40 = vrot.slane %v609_v18, 4  ;;  %v503_v7 = vld [vmem:[#allocation2 + $0x34] sm:$0x1] }
  0x46   : > { %v614_v41 = vrot.slane %v612_v23, 5  ;;  %v1158_v42 = vsel %vm2668_vm10, %v1153_v26, %v1157_v56  ;;  %v620_v45 = vrot.slane %v618_v37, 5  ;;  %v428_v47 = vshrl.u32 %v2706_v36, 16  ;;  %2441 = vmatprep.subr.msk.bf16.mxu1 %vm677_vm0, %v2777_v21  ;;  %v506_v23 = vld [vmem:[#allocation2 + $0x38] sm:$0xf] }
  0x47   : > { %v601_v43 = vor.u32 %v600_v35, %v597_v28  ;;  %v1172_v51 = vsel %vm2668_vm10, %v1167_v38, %v1171_v63  ;;  %v431_v1 = vshll.u32 %v2706_v36, 16  ;;  %v436_v53 = vshrl.u32 %v2709_v8, 16  ;;  %v509_v26 = vld [vmem:[#allocation2 + $0x3c] sm:$0x1] }
  0x48   : > { %v615_v52 = vor.u32 %v614_v41, %v611_v40  ;;  %v2167_v56 = vcombine.low %v1158_v42, %v1172_v51  ;;  %v430_v60 = vrot.slane %v428_v47, 7  ;;  %v439_v62 = vshll.u32 %v2709_v8, 16  ;;  %v349_v47 = vld [vmem:[#allocation2 + $0x44] sm:$0x1]  ;;  %v2831_v51 = vld [vmem:[#allocation2 + $0x2c] sm:$0x1] }
  0x49   : > { %v602_v57 = vrot.slane %v601_v43, 4  ;;  %v438_v36 = vrot.slane %v436_v53, 7  ;;  %v2174_v9 = vrot.slane %v2684_v22, 9  ;;  %v2175_v11 = vrot.slane %v2700_v32, 9  ;;  %v317_v43 = vld [vmem:[#allocation2 + $0x40] sm:$0x1] }
  0x4a   : > { %v616_v63 = vrot.slane %v615_v52, 4  ;;  %2326 = vmatmul.mubr.msk.bf16.vlgmr.msra.gmra.mrb[0].mxu0 %vm664_vm11, %v2167_v56  ;;  %v433_v8 = vor.u32 %v431_v1, %v430_v60  ;;  %v434_v18 = vrot.slane %v430_v60, 4  ;;  %v2176_v28 = vrot.slane %v2732_v6, 9 }
  0x4b   : > { %v607_v17 = vsel %vm2668_vm10, %v602_v57, %v606_v39  ;;  %2334 = vmatpush3.bf16.msra.mxu0 %v2674_v16  ;;  %v441_v37 = vor.u32 %v439_v62, %v438_v36  ;;  %v442_v38 = vrot.slane %v438_v36, 4  ;;  %v1342_v40 = vsel %vm2797_vm14, %v2174_v9, %v1341_v30  ;;  %v2978_v9 = vld [vmem:[#allocation2 + $0x14] sm:$0x1] }
  0x4c   : > { %v621_v35 = vsel %vm2668_vm10, %v616_v63, %v620_v45  ;;  %v501_v39 = vsel %vm2627_vm9, %v433_v8, %v500_v2  ;;  %v504_v42 = vsel %vm2535_vm4, %v434_v18, %v503_v7  ;;  %v1346_v16 = vsel %vm2797_vm14, %v2175_v11, %v1345_v31  ;;  %2446 = vmatprep.subr.msk.bf16.mxu0 %vm677_vm0, %v2191_v55  ;;  %v2829_v31 = vld [vmem:[#allocation2 + $0x28] sm:$0xf] }
  0x4d   : > { %v2125_v41 = vcombine.low %v607_v17, %v621_v35  ;;  %502 = vst [vmem:[#allocation2 + $0x30] sm:$0xf] %v501_v39  ;;  %505 = vst [vmem:[#allocation2 + $0x34] sm:$0x1] %v504_v42  ;;  %v507_v29 = vsel %vm2627_vm9, %v441_v37, %v506_v23  ;;  %v510_v30 = vsel %vm2535_vm4, %v442_v38, %v509_v26  ;;  %v2177_v33 = vrot.slane %v2739_v27, 9 }
  0x4e   : > { %v2183_v45 = vcombine.low %v1342_v40, %v1346_v16  ;;  %508 = vst [vmem:[#allocation2 + $0x38] sm:$0xf] %v507_v29  ;;  %511 = vst [vmem:[#allocation2 + $0x3c] sm:$0x1] %v510_v30  ;;  %v1350_v52 = vsel %vm2797_vm14, %v2176_v28, %v1349_v58  ;;  %v282_v1 = vmax.f32 %v2721_v50, 0.0  ;;  %v318_v53 = vsel %vm2535_vm4, 0, %v317_v43 }
  0x4f   : > { %2289 = vmatprep.mubr.msk.bf16.mxu1 %vm664_vm11, %v2125_v41  ;;  %v1354_v56 = vsel %vm2797_vm14, %v2177_v33, %v1353_v15  ;;  %319 = vst [vmem:[#allocation2 + $0x40] sm:$0x1] %v318_v53  ;;  %v350_v57 = vsel %vm2551_vm6, 0, %v349_v47  ;;  %v2178_v60 = vrot.slane %v2829_v31, 9  ;;  %v1357_v12 = vrot.slane %v2831_v51, 5 }
  0x50   : > { %2335 = vmatprep.mubr.msk.bf16.mxu0 %vm664_vm11, %v2183_v45  ;;  %351 = vst [vmem:[#allocation2 + $0x44] sm:$0x1] %v350_v57  ;;  %v2237_v58 = vpack.c.bf16 %v282_v1, %v282_v1  ;;  %v2184_v62 = vcombine.low %v1350_v52, %v1354_v56  ;;  %v1525_v50 = vsel %vm677_vm0, %v2191_v55, 0  ;;  %v879_v11 = vrot.slane %v2767_v0, 5 }
  0x51   : > { %v1358_v23 = vsel %vm2797_vm14, %v2178_v60, %v1357_v12 }
  0x52   : > { %v444_v2 = vshrl.u32 %v2237_v58, 16  ;;  %v447_v63 = vshll.u32 %v2237_v58, 16 }
  0x54   : > { %v2855_v15 = vld [vmem:[#allocation2 + $0x30] sm:$0xf]  ;;  %v2857_v36 = vld [vmem:[#allocation2 + $0x34] sm:$0x1]  ;;  %v446_v47 = vrot.slane %v444_v2, 7 }
  0x55   : > { %v2859_v7 = vld [vmem:[#allocation2 + $0x30] sm:$0xf]  ;;  %v2865_v55 = vld [vmem:[#allocation2 + $0x38] sm:$0xf]  ;;  %v2867_v17 = vld [vmem:[#allocation2 + $0x3c] sm:$0x1] }
  0x56   : > { %v623_v8 = vshrl.u32 %v2855_v15, 16  ;;  %v626_v18 = vshll.u32 %v2855_v15, 16  ;;  %v632_v26 = vshll.u32 %v2857_v36, 16  ;;  %v637_v28 = vshrl.u32 %v2865_v55, 16  ;;  %2336 = vmatmul.mubr.msk.bf16.vlgmr.msra.gmra.mrb[0].mxu0 %vm664_vm11, %v2184_v62  ;;  %v2878_v38 = vld [vmem:[#allocation2 + $0x34] sm:$0x1] }
  0x57   : > { %v640_v35 = vshll.u32 %v2865_v55, 16  ;;  %v646_v37 = vshll.u32 %v2867_v17, 16  ;;  %2344 = vmatpush3.bf16.msra.mxu0 %v1525_v50  ;;  %v2179_v39 = vrot.slane %v2859_v7, 9  ;;  %v1361_v42 = vrot.slane %v2878_v38, 5  ;;  %v512_v53 = vld [vmem:[#allocation2 + $0x40] sm:$0xf] }
  0x58   : > { %v625_v40 = vrot.slane %v623_v8, 4  ;;  %v628_v41 = vrot.slane %v626_v18, 5  ;;  %v639_v16 = vrot.slane %v637_v28, 4  ;;  %2447 = vmatprep.subr.msk.bf16.mxu0 %vm677_vm0, %v2853_v34  ;;  %v634_v30 = vrot.slane %v632_v26, 5  ;;  %v515_v56 = vld [vmem:[#allocation2 + $0x44] sm:$0x1] }
  0x59   : > { %v642_v43 = vrot.slane %v640_v35, 5  ;;  %v1362_v45 = vsel %vm2797_vm14, %v2179_v39, %v1361_v42  ;;  %v648_v52 = vrot.slane %v646_v37, 5  ;;  %v449_v60 = vor.u32 %v447_v63, %v446_v47  ;;  %v2897_v63 = vld [vmem:[#allocation2 + $0x10] sm:$0xf]  ;;  %v2902_v14 = vld [vmem:[#allocation2 + $0x38] sm:$0xf] }
  0x5a   : > { %v629_v29 = vor.u32 %v628_v41, %v625_v40  ;;  %v2185_v1 = vcombine.low %v1358_v23, %v1362_v45  ;;  %v450_v12 = vrot.slane %v446_v47, 4  ;;  %v2131_v18 = vcombine.low %v2632_v24, %v2680_v19  ;;  %v2899_v23 = vld [vmem:[#allocation2 + $0x18] sm:$0xf]  ;;  %v2904_v35 = vld [vmem:[#allocation2 + $0x3c] sm:$0x1] }
  0x5b   : > { %v643_v33 = vor.u32 %v642_v43, %v639_v16  ;;  %v513_v50 = vsel %vm2627_vm9, %v449_v60, %v512_v53  ;;  %v859_v26 = vrot.slane %v2634_v25, 5  ;;  %3244 = vst [vmem:[#allocation3_spill] sm:$0xff] %v2904_v35  ;;  %v863_v37 = vrot.slane %v2682_v20, 5  ;;  %v320_v42 = vld [vmem:[#allocation2 + $0x48] sm:$0x1] }
  0x5c   : > { %v630_v57 = vrot.slane %v629_v29, 4  ;;  %2339 = vmatprep.mubr.msk.bf16.mxu0 %vm664_vm11, %v2185_v1  ;;  %v516_v2 = vsel %vm2535_vm4, %v450_v12, %v515_v56  ;;  %514 = vst [vmem:[#allocation2 + $0x40] sm:$0xf] %v513_v50  ;;  %v867_v40 = vrot.slane %v2716_v48, 5  ;;  %v871_v41 = vrot.slane %v2725_v61, 5 }
  0x5d   : > { %v644_v58 = vrot.slane %v643_v33, 4  ;;  %517 = vst [vmem:[#allocation2 + $0x44] sm:$0x1] %v516_v2  ;;  %v2132_v39 = vcombine.low %v2713_v44, %v2718_v49  ;;  %v916_v25 = vsel %vm677_vm0, %v2777_v21, 0  ;;  %v2133_v16 = vcombine.low %v2752_v46, %v2762_v59  ;;  %v2919_v48 = vld [vmem:[#allocation2 + $0x20] sm:$0xf] }
  0x5e   : > { %v635_v62 = vsel %vm2668_vm10, %v630_v57, %v634_v30  ;;  %v2192_v43 = vcombine.low %v2897_v63, %v2899_v23  ;;  %v1601_v20 = vshrl.u32 %v2897_v63, 16  ;;  %v2180_v61 = vrot.slane %v2902_v14, 9  ;;  %v2925_v45 = vld [vmem:[#allocation2 + $0x28] sm:$0xf] }
  0x5f   : > { %v649_v8 = vsel %vm2668_vm10, %v644_v58, %v648_v52  ;;  %v1365_v29 = vrot.slane %v2904_v35, 5  ;;  %v1604_v30 = vshll.u32 %v2897_v63, 16  ;;  %v2139_v21 = vrot.slane %v2632_v24, 9  ;;  %v2156_v24 = vld [vmem:[%s3228_s3 + $0xc] sm:$0xf] }
  0x60   : > { %v2126_v28 = vcombine.low %v635_v62, %v649_v8  ;;  %v2140_v47 = vrot.slane %v2680_v19, 9  ;;  %v2141_v33 = vrot.slane %v2713_v44, 9  ;;  %v2142_v52 = vrot.slane %v2718_v49, 9 }
  0x61   : > { %v321_v1 = vsel %vm2535_vm4, 0, %v320_v42  ;;  %v1615_v53 = vshrl.u32 %v2899_v23, 16  ;;  %v1618_v56 = vshll.u32 %v2899_v23, 16  ;;  %v1629_v57 = vshrl.u32 %v2919_v48, 16 }
  0x62   : > { %2290 = vmatmul.mubr.msk.bf16.gmra.mrb[4].mxu1 %vm664_vm11, %v2126_v28  ;;  %v1632_v60 = vshll.u32 %v2919_v48, 16  ;;  %322 = vst [vmem:[#allocation2 + $0x48] sm:$0x1] %v321_v1  ;;  %v2134_v5 = vcombine.low %v2855_v15, %v2865_v55  ;;  %v1643_v12 = vshrl.u32 %v2925_v45, 16  ;;  %v1646_v58 = vshll.u32 %v2925_v45, 16 }
  0x63   : > { %2295 = vmatprep.mubr.msk.bf16.mxu1 %vm664_vm11, %v2131_v18  ;;  %v2940_v19 = vld [vmem:[#allocation2 + $0x40] sm:$0xf]  ;;  %v1366_v62 = vsel %vm2797_vm14, %v2180_v61, %v1365_v29  ;;  %v2955_v2 = vsel %vm677_vm0, %v2853_v34, 0  ;;  %v860_v8 = vsel %vm2797_vm14, %v2139_v21, %v859_v26  ;;  %v2959_v18 = vld [vmem:[#allocation2 + $0x30] sm:$0xf]  ;;  %v864_v1 = vsel %vm2797_vm14, %v2140_v47, %v863_v37 }
  0x64   : > { %v2942_v44 = vld [vmem:[#allocation2 + $0x44] sm:$0x1]  ;;  %v2181_v50 = vrot.slane %v2940_v19, 9  ;;  %v2961_v28 = vld [vmem:[#allocation2 + $0x38] sm:$0xf]  ;;  %v2968_v61 = vsel %vm2797_vm14, %v2141_v33, %v867_v40  ;;  %v2972_v34 = vsel %vm2797_vm14, %v2142_v52, %v871_v41  ;;  %v2143_v29 = vrot.slane %v2752_v46, 9 }
  0x65   : > { %3245 = vst [vmem:[#allocation4_spill] sm:$0xff] %v2942_v44  ;;  %v1369_v42 = vrot.slane %v2942_v44, 5  ;;  %v875_v26 = vrot.slane %v2759_v54, 5  ;;  %v2144_v21 = vrot.slane %v2762_v59, 9  ;;  %v2984_v40 = vsel %vm677_vm0, %v2156_v24, 0 }
  0x66   : > { %v1657_v46 = vshrl.u32 %v2959_v18, 16  ;;  %v2148_v59 = vcombine.low %v860_v8, %v864_v1  ;;  %v1660_v0 = vshll.u32 %v2959_v18, 16  ;;  %v1603_v47 = vrot.slane %v1601_v20, 4  ;;  %v2994_v33 = vld [vmem:[#allocation2 + $0x1c] sm:$0x1] }
  0x67   : > { %v1370_v37 = vsel %vm2797_vm14, %v2181_v50, %v1369_v42  ;;  %v1606_v52 = vrot.slane %v1604_v30, 5  ;;  %v1610_v50 = vshll.u32 %v2978_v9, 16  ;;  %v1617_v42 = vrot.slane %v1615_v53, 4 }
  0x68   : > { %v2186_v54 = vcombine.low %v1366_v62, %v1370_v37  ;;  %v3002_v20 = vsel %vm2797_vm14, %v2143_v29, %v875_v26  ;;  %v2145_v30 = vrot.slane %v2855_v15, 9  ;;  %v883_v53 = vrot.slane %v2857_v36, 5  ;;  %v3015_v29 = vld [vmem:[#allocation2 + $0x24] sm:$0x1] }
  0x69   : > { %v1607_v62 = vor.u32 %v1606_v52, %v1603_v47  ;;  %v1620_v8 = vrot.slane %v1618_v56, 5  ;;  %v1612_v1 = vrot.slane %v1610_v50, 5  ;;  %v1624_v37 = vshll.u32 %v2994_v33, 16  ;;  %v3023_v47 = vld [vmem:[#allocation2 + $0x2c] sm:$0x1] }
  0x6a   : > { %2296 = vmatmul.mubr.msk.bf16.vlgmr.msra.gmra.mrb[0].mxu1 %vm664_vm11, %v2132_v39  ;;  %2340 = vmatmul.mubr.msk.bf16.gmra.mrb[4].mxu0 %vm664_vm11, %v2186_v54  ;;  %v1631_v26 = vrot.slane %v1629_v57, 4  ;;  %v1634_v54 = vrot.slane %v1632_v60, 5  ;;  %v1645_v41 = vrot.slane %v1643_v12, 4  ;;  %v1648_v49 = vrot.slane %v1646_v58, 5  ;;  %v352_v52 = vld [vmem:[#allocation2 + $0x4c] sm:$0x1] }
  0x6b   : > { %2304 = vmatpush3.bf16.msra.mxu1 %v916_v25  ;;  %2299 = vmatprep.mubr.msk.bf16.mxu1 %vm664_vm11, %v2133_v16  ;;  %v1671_v25 = vshrl.u32 %v2961_v28, 16  ;;  %v1674_v16 = vshll.u32 %v2961_v28, 16  ;;  %v1621_v39 = vor.u32 %v1620_v8, %v1617_v42  ;;  %v1626_v56 = vrot.slane %v1624_v37, 5  ;;  %v3032_v50 = vld [vmem:[#allocation2 + $0x34] sm:$0x1] }
  0x6c   : > { %2442 = vmatprep.subr.msk.bf16.mxu1 %vm677_vm0, %v2156_v24  ;;  %v3006_v24 = vsel %vm2797_vm14, %v2144_v21, %v879_v11  ;;  %2345 = vmatprep.mubr.msk.bf16.mxu0 %vm664_vm11, %v2192_v43  ;;  %v3017_v11 = vld [vmem:[#allocation2 + $0x40] sm:$0xf]  ;;  %v1608_v21 = vrot.slane %v1607_v62, 4  ;;  %v3028_v57 = vsel %vm2797_vm14, %v2145_v30, %v883_v53  ;;  %v2146_v60 = vrot.slane %v2865_v55, 9  ;;  %v3038_v8 = vld [vmem:[#allocation2 + $0x48] sm:$0xf] }
  0x6d   : > { %v1685_v43 = vshrl.u32 %v3017_v11, 16  ;;  %v1688_v15 = vshll.u32 %v3017_v11, 16  ;;  %v2150_v36 = vcombine.low %v3002_v20, %v3006_v24  ;;  %v887_v12 = vrot.slane %v2867_v17, 5  ;;  %v3036_v24 = vld [vmem:[#allocation2 + $0x3c] sm:$0x1]  ;;  %3246 = vst [vmem:[#allocation5_spill] sm:$0xff] %v3038_v8 }
  0x6e   : > { %v1622_v58 = vrot.slane %v1621_v39, 4  ;;  %v1635_v42 = vor.u32 %v1634_v54, %v1631_v26  ;;  %v1638_v20 = vshll.u32 %v3015_v29, 16  ;;  %v1659_v62 = vrot.slane %v1657_v46, 4  ;;  %v2217_v55 = vld [vmem:[%s3228_s3 + $0x20] sm:$0xf] }
  0x6f   : > { %v1613_v30 = vsel %vm2668_vm10, %v1608_v21, %v1612_v1  ;;  %v1649_v17 = vor.u32 %v1648_v49, %v1645_v41  ;;  %v1652_v39 = vshll.u32 %v3023_v47, 16  ;;  %v3247_v53 = vcombine.low %v2919_v48, %v2925_v45 }
  0x70   : > { %v1627_v46 = vsel %vm2668_vm10, %v1622_v58, %v1626_v56  ;;  %v1666_v37 = vshll.u32 %v3032_v50, 16  ;;  %v1676_v1 = vrot.slane %v1674_v16, 5  ;;  %v3248_v49 = vcombine.low %v2959_v18, %v2961_v28 }
  0x71   : > { %v1699_v41 = vshrl.u32 %v3038_v8, 16  ;;  %v1680_v26 = vshll.u32 %v3036_v24, 16  ;;  %v353_v54 = vsel %vm2551_vm6, 0, %v352_v52  ;;  %v2195_v21 = vcombine.low %v3017_v11, %v3038_v8 }
  0x72   : > { %2300 = vmatmul.mubr.msk.bf16.gmra.mrb[4].mxu1 %vm664_vm11, %v2134_v5  ;;  %v1662_v5 = vrot.slane %v1660_v0, 5  ;;  %2346 = vmatmul.mubr.msk.bf16.vlgmr.msra.gmra.mrb[0].mxu0 %vm664_vm11, %v3247_v53  ;;  %v1640_v16 = vrot.slane %v1638_v20, 5  ;;  %354 = vst [vmem:[#allocation2 + $0x4c] sm:$0x1] %v353_v54  ;;  %v2201_v58 = vcombine.low %v1613_v30, %v1627_v46  ;;  %v1654_v53 = vrot.slane %v1652_v39, 5 }
  0x73   : > { %2305 = vmatprep.mubr.msk.bf16.mxu1 %vm664_vm11, %v2148_v59  ;;  %v1673_v59 = vrot.slane %v1671_v25, 4  ;;  %2354 = vmatpush3.bf16.msra.mxu0 %v2955_v2  ;;  %v1702_v25 = vshll.u32 %v3038_v8, 16  ;;  %v888_v2 = vsel %vm2797_vm14, %v2146_v60, %v887_v12  ;;  %v1668_v44 = vrot.slane %v1666_v37, 5  ;;  %v3072_v12 = vld [vmem:[#allocation2 + $0x44] sm:$0x1] }
  0x74   : > { %v1663_v0 = vor.u32 %v1662_v5, %v1659_v62  ;;  %2349 = vmatprep.mubr.msk.bf16.mxu0 %vm664_vm11, %v3248_v49  ;;  %2448 = vmatprep.subr.msk.bf16.mxu0 %vm677_vm0, %v2217_v55  ;;  %v1636_v62 = vrot.slane %v1635_v42, 4  ;;  %v1650_v5 = vrot.slane %v1649_v17, 4  ;;  %v1687_v35 = vrot.slane %v1685_v43, 4 }
  0x75   : > { %v1677_v56 = vor.u32 %v1676_v1, %v1673_v59  ;;  %v1690_v10 = vrot.slane %v1688_v15, 5  ;;  %v3249_v52 = vcombine.low %v2968_v61, %v2972_v34  ;;  %v1682_v60 = vrot.slane %v1680_v26, 5  ;;  %v2469_v61 = vld [vmem:[%s3228_s3 + $0x10] sm:$0xf] }
  0x76   : > { %v1664_v49 = vrot.slane %v1663_v0, 4  ;;  %v1701_v20 = vrot.slane %v1699_v41, 4  ;;  %v1704_v59 = vrot.slane %v1702_v25, 5  ;;  %v1202_v42 = vshrl.u32 %v2902_v14, 16 }
  0x77   : > { %v1678_v8 = vrot.slane %v1677_v56, 4  ;;  %v2151_v43 = vcombine.low %v3028_v57, %v888_v2  ;;  %v1641_v34 = vsel %vm2668_vm10, %v1636_v62, %v1640_v16  ;;  %v1691_v15 = vor.u32 %v1690_v10, %v1687_v35 }
  0x78   : > { %v1669_v57 = vsel %vm2668_vm10, %v1664_v49, %v1668_v44  ;;  %v1705_v39 = vor.u32 %v1704_v59, %v1701_v20  ;;  %v1174_v46 = vshrl.u32 %v2829_v31, 16  ;;  %v1205_v0 = vshll.u32 %v2902_v14, 16 }
  0x79   : > { %v1683_v30 = vsel %vm2668_vm10, %v1678_v8, %v1682_v60  ;;  %v3093_v17 = vld [vmem:[#allocation2 + $0x4c] sm:$0x1]  ;;  %v1881_v37 = vsel %vm677_vm0, %v2217_v55, 0  ;;  %v1177_v1 = vshll.u32 %v2829_v31, 16  ;;  %v1188_v44 = vshrl.u32 %v2859_v7, 16 }
  0x7a   : > { %2306 = vmatmul.mubr.msk.bf16.vlgmr.msra.gmra.mrb[0].mxu1 %vm664_vm11, %v3249_v52  ;;  %2350 = vmatmul.mubr.msk.bf16.gmra.mrb[4].mxu0 %vm664_vm11, %v2195_v21  ;;  %v1708_v35 = vshll.u32 %v3093_v17, 16  ;;  %v1176_v25 = vrot.slane %v1174_v46, 4  ;;  %v1191_v26 = vshll.u32 %v2859_v7, 16  ;;  %v2203_v8 = vcombine.low %v1669_v57, %v1683_v30 }
  0x7b   : > { %2314 = vmatpush3.bf16.msra.mxu1 %v2984_v40  ;;  %2309 = vmatprep.mubr.msk.bf16.mxu1 %vm664_vm11, %v2150_v36  ;;  %v1655_v40 = vsel %vm2668_vm10, %v1650_v5, %v1654_v53  ;;  %v1694_v36 = vshll.u32 %v3072_v12, 16  ;;  %v1692_v54 = vrot.slane %v1691_v15, 4  ;;  %v1179_v2 = vrot.slane %v1177_v1, 5  ;;  %v3253_v1 = vld [vmem:[#allocation4_spill] sm:$0xff] }
  0x7c   : > { %2444 = vmatprep.subr.msk.bf16.mxu1 %vm677_vm0, %v2469_v61  ;;  %2355 = vmatprep.mubr.msk.bf16.mxu0 %vm664_vm11, %v2201_v58  ;;  %v2202_v41 = vcombine.low %v1641_v34, %v1655_v40  ;;  %v1706_v16 = vrot.slane %v1705_v39, 4  ;;  %v1710_v56 = vrot.slane %v1708_v35, 5  ;;  %v1190_v58 = vrot.slane %v1188_v44, 4 }
  0x7d   : > { %v1696_v21 = vrot.slane %v1694_v36, 5  ;;  %v1193_v55 = vrot.slane %v1191_v26, 5  ;;  %v3250_v62 = vcombine.low %v2684_v22, %v2700_v32  ;;  %v2209_v5 = vrot.slane %v2897_v63, 9 }
  0x7e   : > { %v1824_v53 = vrot.slane %v2978_v9, 5  ;;  %v2210_v49 = vrot.slane %v2899_v23, 9  ;;  %v1828_v10 = vrot.slane %v2994_v33, 5  ;;  %v1180_v52 = vor.u32 %v1179_v2, %v1176_v25 }
  0x7f   : > { %v1183_v60 = vshll.u32 %v2831_v51, 16  ;;  %v1194_v20 = vor.u32 %v1193_v55, %v1190_v58  ;;  %v1197_v59 = vshll.u32 %v2878_v38, 16  ;;  %v1219_v22 = vshll.u32 %v2940_v19, 16 }
  0x80   : > { %v1697_v32 = vsel %vm2668_vm10, %v1692_v54, %v1696_v21  ;;  %v1711_v9 = vsel %vm2668_vm10, %v1706_v16, %v1710_v56  ;;  %v2159_v51 = vcombine.low %v2829_v31, %v2859_v7  ;;  %v1204_v63 = vrot.slane %v1202_v42, 4  ;;  %v3254_v21 = vld [vmem:[#allocation5_spill] sm:$0xff] }
  0x81   : > { %v1207_v38 = vrot.slane %v1205_v0, 5  ;;  %v1825_v23 = vsel %vm2797_vm14, %v2209_v5, %v1824_v53  ;;  %v1829_v33 = vsel %vm2797_vm14, %v2210_v49, %v1828_v10  ;;  %v1181_v61 = vrot.slane %v1180_v52, 4 }
  0x82   : > { %2310 = vmatmul.mubr.msk.bf16.gmra.mrb[4].mxu1 %vm664_vm11, %v2151_v43  ;;  %v1216_v43 = vshrl.u32 %v2940_v19, 16  ;;  %2356 = vmatmul.mubr.msk.bf16.vlgmr.msra.gmra.mrb[0].mxu0 %vm664_vm11, %v2202_v41  ;;  %v1185_v34 = vrot.slane %v1183_v60, 5  ;;  %v1195_v40 = vrot.slane %v1194_v20, 4  ;;  %v1199_v15 = vrot.slane %v1197_v59, 5 }
  0x83   : > { %2315 = vmatprep.mubr.msk.bf16.mxu1 %vm664_vm11, %v3250_v62  ;;  %2364 = vmatpush3.bf16.msra.mxu0 %v1881_v37  ;;  %v1221_v57 = vrot.slane %v1219_v22, 5  ;;  %v2204_v30 = vcombine.low %v1697_v32, %v1711_v9  ;;  %v2211_v39 = vrot.slane %v2919_v48, 9  ;;  %v3251_v31 = vcombine.low %v2732_v6, %v2739_v27 }
  0x84   : > { %2359 = vmatprep.mubr.msk.bf16.mxu0 %vm664_vm11, %v2203_v8  ;;  %v1218_v36 = vrot.slane %v1216_v43, 4  ;;  %v2218_v7 = vcombine.low %v1825_v23, %v1829_v33  ;;  %v1832_v42 = vrot.slane %v3015_v29, 5  ;;  %v2212_v46 = vrot.slane %v2925_v45, 9  ;;  %v3252_v29 = vld [vmem:[#allocation3_spill] sm:$0xff] }
  0x85   : > { %v1836_v0 = vrot.slane %v3023_v47, 5  ;;  %v2213_v37 = vrot.slane %v2959_v18, 9  ;;  %v1840_v48 = vrot.slane %v3032_v50, 5  ;;  %v2214_v35 = vrot.slane %v2961_v28, 9 }
  0x86   : > { %v1844_v6 = vrot.slane %v3036_v24, 5  ;;  %v1186_v27 = vsel %vm2668_vm10, %v1181_v61, %v1185_v34  ;;  %v1200_v45 = vsel %vm2668_vm10, %v1195_v40, %v1199_v15  ;;  %v1211_v47 = vshll.u32 %v3252_v29, 16 }
  0x87   : > { %v1225_v41 = vshll.u32 %v3253_v1, 16  ;;  %v2160_v18 = vcombine.low %v2902_v14, %v2940_v19  ;;  %v1833_v28 = vsel %vm2797_vm14, %v2211_v39, %v1832_v42  ;;  %v1837_v50 = vsel %vm2797_vm14, %v2212_v46, %v1836_v0 }
  0x88   : > { %v2168_v24 = vcombine.low %v1186_v27, %v1200_v45  ;;  %v1841_v25 = vsel %vm2797_vm14, %v2213_v37, %v1840_v48  ;;  %v1845_v44 = vsel %vm2797_vm14, %v2214_v35, %v1844_v6  ;;  %v1222_v26 = vor.u32 %v1221_v57, %v1218_v36 }
  0x89   : > { %v2219_v8 = vcombine.low %v1833_v28, %v1837_v50  ;;  %v2215_v54 = vrot.slane %v3017_v11, 9  ;;  %v2220_v14 = vcombine.low %v1841_v25, %v1845_v44  ;;  %v1848_v19 = vrot.slane %v3072_v12, 5 }
  0x8a   : > { %2316 = vmatmul.mubr.msk.bf16.vlgmr.msra.gmra.mrb[0].mxu1 %vm664_vm11, %v3251_v31  ;;  %2360 = vmatmul.mubr.msk.bf16.gmra.mrb[4].mxu0 %vm664_vm11, %v2204_v30  ;;  %v2216_v2 = vrot.slane %v3254_v21, 9  ;;  %v1852_v16 = vrot.slane %v3093_v17, 5  ;;  %v1213_v56 = vrot.slane %v1211_v47, 5  ;;  %v1227_v58 = vrot.slane %v1225_v41, 5 }
  0x8b   : > { %2374 = vmatpush3.bf16.msra.mxu1 %v2527_v3  ;;  %2319 = vmatprep.mubr.msk.bf16.mxu1 %vm664_vm11, %v2159_v51  ;;  %v1208_v3 = vor.u32 %v1207_v38, %v1204_v63  ;;  %v1223_v62 = vrot.slane %v1222_v26, 4  ;;  %v1849_v11 = vsel %vm2797_vm14, %v2215_v54, %v1848_v19 }
  0x8c   : > { %2365 = vmatprep.mubr.msk.bf16.mxu0 %vm664_vm11, %v2218_v7  ;;  %v1853_v12 = vsel %vm2797_vm14, %v2216_v2, %v1852_v16 }
  0x8d   : > { %v1209_v55 = vrot.slane %v1208_v3, 4  ;;  %v1228_v5 = vsel %vm2668_vm10, %v1223_v62, %v1227_v58  ;;  %v2221_v53 = vcombine.low %v1849_v11, %v1853_v12 }
  0x8f   : > { %v1214_v17 = vsel %vm2668_vm10, %v1209_v55, %v1213_v56 }
  0x90   : > { %v2169_v49 = vcombine.low %v1214_v17, %v1228_v5 }
  0x92   : > { %2320 = vmatmul.mubr.msk.bf16.gmra.mrb[4].mxu1 %vm664_vm11, %v2160_v18  ;;  %2366 = vmatmul.mubr.msk.bf16.vlgmr.msra.gmra.mrb[0].mxu0 %vm664_vm11, %v2219_v8 }
  0x93   : > { %2329 = vmatprep.mubr.msk.bf16.mxu1 %vm664_vm11, %v2168_v24  ;;  %2369 = vmatprep.mubr.msk.bf16.mxu0 %vm664_vm11, %v2220_v14 }
  0x9a   : > { %2370 = vmatmul.mubr.msk.bf16.gmra.mrb[4].mxu0 %vm664_vm11, %v2221_v53 }
  0x9e   : > { %2330 = vmatmul.mubr.msk.bf16.vlgmr.msra.gmra.mrb[4].mxu1 %vm664_vm11, %v2169_v49 }
 0x15d   : > { %v2317_v10 = vpop.f32.mrb[0].mxu1 }
 0x15e   : > { %v1078_v52 = vpop.f32.mrb[1].mxu1 }
 0x15f   : > { %v2318_v60 = vpop.f32.mrb[2].mxu1 }
 0x160   : > { %v1081_v20 = vpop.f32.mrb[3].mxu1 }
 0x165   : > { %v2367_v13 = vpop.f32.mrb[0].mxu0 }
 0x166   : > { %v2375_v4 = vadd.f32 %v2367_v13, %v2317_v10  ;;  %v1917_v59 = vpop.f32.mrb[1].mxu0 }
 0x167   : > { %v2376_v43 = vadd.f32 %v1917_v59, %v1078_v52  ;;  %v2368_v22 = vpop.f32.mrb[2].mxu0 }
 0x168   : > { %1958 = vst.msk [vmem:[%s3182_s28 + $0x10] sm:$0xff] %vm664_vm11, %v2375_v4  ;;  %v2377_v32 = vadd.f32 %v2368_v22, %v2318_v60  ;;  %v1920_v9 = vpop.f32.mrb[3].mxu0  ;;  %v1988_v38 = vmul.f32 %v2375_v4, %v2375_v4  ;;  %v1967_v40 = vsel %vm664_vm11, %v2375_v4, 0.0 }
 0x169   : > { %1956 = vst.msk [vmem:[%s3182_s28] sm:$0xff] %vm664_vm11, %v2376_v43  ;;  %v1986_v51 = vmul.f32 %v2376_v43, %v2376_v43  ;;  %v2378_v63 = vadd.f32 %v1920_v9, %v1081_v20  ;;  %v1964_v23 = vsel %vm664_vm11, %v2376_v43, 0.0 }
 0x16a   : > { %1959 = vst.msk [vmem:[%s3182_s28 + $0x18] sm:$0xff] %vm664_vm11, %v2377_v32  ;;  %v1989_v36 = vmul.f32 %v2377_v32, %v2377_v32  ;;  %v1997_v46 = vsel %vm664_vm11, %v1988_v38, 0.0  ;;  %v1969_v0 = vsel %vm664_vm11, %v2377_v32, 0.0 }
 0x16b   : > { %1957 = vst.msk [vmem:[%s3182_s28 + $0x8] sm:$0xff] %vm664_vm11, %v2378_v63  ;;  %v1965_v33 = vsel %vm664_vm11, %v2378_v63, 0.0  ;;  %v1987_v61 = vmul.f32 %v2378_v63, %v2378_v63  ;;  %v1994_v15 = vsel %vm664_vm11, %v1986_v51, 0.0 }
 0x16c   : > { %v1966_v34 = vadd.f32 %v1965_v33, %v1964_v23  ;;  %v1999_v3 = vsel %vm664_vm11, %v1989_v36, 0.0 }
 0x16d   : > { %v1995_v57 = vsel %vm664_vm11, %v1987_v61, 0.0  ;;  %v2371_v30 = vpop.f32.mrb[4].mxu0 }
 0x16e   : > { %v1968_v39 = vadd.f32 %v1967_v40, %v1966_v34  ;;  %v1996_v31 = vadd.f32 %v1995_v57, %v1994_v15  ;;  %v1933_v42 = vpop.f32.mrb[5].mxu0 }
 0x16f   : > { %v2372_v35 = vpop.f32.mrb[6].mxu0 }
 0x170   : > { %v1998_v6 = vadd.f32 %v1997_v46, %v1996_v31  ;;  %v1970_v45 = vadd.f32 %v1969_v0, %v1968_v39  ;;  %v1936_v47 = vpop.f32.mrb[7].mxu0 }
 0x171   : > { %v2331_v7 = vpop.f32.mrb[4].mxu1 }
 0x172   : > { %v2379_v37 = vadd.f32 %v2371_v30, %v2331_v7  ;;  %v1308_v48 = vpop.f32.mrb[5].mxu1  ;;  %v2000_v50 = vadd.f32 %v1999_v3, %v1998_v6 }
 0x173   : > { %v2380_v27 = vadd.f32 %v1933_v42, %v1308_v48  ;;  %v2332_v29 = vpop.f32.mrb[6].mxu1 }
 0x174   : > { %1962 = vst.msk [vmem:[%s3182_s28 + $0x30] sm:$0xff] %vm664_vm11, %v2379_v37  ;;  %v2381_v1 = vadd.f32 %v2372_v35, %v2332_v29  ;;  %v1311_v41 = vpop.f32.mrb[7].mxu1  ;;  %v1992_v44 = vmul.f32 %v2379_v37, %v2379_v37  ;;  %v1975_v21 = vsel %vm664_vm11, %v2379_v37, 0.0 }
 0x175   : > { %1960 = vst.msk [vmem:[%s3182_s28 + $0x20] sm:$0xff] %vm664_vm11, %v2380_v27  ;;  %v1971_v18 = vsel %vm664_vm11, %v2380_v27, 0.0  ;;  %v1990_v28 = vmul.f32 %v2380_v27, %v2380_v27  ;;  %v2382_v24 = vadd.f32 %v1936_v47, %v1311_v41 }
 0x176   : > { %v1972_v25 = vadd.f32 %v1971_v18, %v1970_v45  ;;  %1963 = vst.msk [vmem:[%s3182_s28 + $0x38] sm:$0xff] %vm664_vm11, %v2381_v1  ;;  %v1993_v2 = vmul.f32 %v2381_v1, %v2381_v1  ;;  %v2005_v55 = vsel %vm664_vm11, %v1992_v44, 0.0  ;;  %v1977_v62 = vsel %vm664_vm11, %v2381_v1, 0.0 }
 0x177   : > { %v2001_v26 = vsel %vm664_vm11, %v1990_v28, 0.0  ;;  %1961 = vst.msk [vmem:[%s3182_s28 + $0x28] sm:$0xff] %vm664_vm11, %v2382_v24  ;;  %v1973_v8 = vsel %vm664_vm11, %v2382_v24, 0.0  ;;  %v1991_v54 = vmul.f32 %v2382_v24, %v2382_v24 }
 0x178   : > { %v2002_v14 = vadd.f32 %v2001_v26, %v2000_v50  ;;  %v1974_v19 = vadd.f32 %v1973_v8, %v1972_v25  ;;  %v2007_v17 = vsel %vm664_vm11, %v1993_v2, 0.0 }
 0x179   : > { %v2003_v16 = vsel %vm664_vm11, %v1991_v54, 0.0 }
 0x17a   : > { %v1976_v56 = vadd.f32 %v1975_v21, %v1974_v19  ;;  %v2004_v58 = vadd.f32 %v2003_v16, %v2002_v14 }
 0x17c   : > { %v1978_v11 = vadd.f32 %v1977_v62, %v1976_v56  ;;  %v2006_v12 = vadd.f32 %v2005_v55, %v2004_v58 }
 0x17e   : > { %v1979_v5 = vrot.slane %v1978_v11, 4  ;;  %v2008_v53 = vadd.f32 %v2007_v17, %v2006_v12 }
 0x180   : > { %v1980_v49 = vadd.f32 %v1979_v5, %v1978_v11  ;;  %v2009_v10 = vrot.slane %v2008_v53, 4 }
 0x182   : > { %v1981_v52 = vrot.slane %v1980_v49, 2  ;;  %v2010_v60 = vadd.f32 %v2009_v10, %v2008_v53 }
 0x184   : > { %v1982_v20 = vadd.f32 %v1981_v52, %v1980_v49  ;;  %v2011_v13 = vrot.slane %v2010_v60, 2 }
 0x186   : > { %v1983_v4 = vrot.slane %v1982_v20, 1  ;;  %v2012_v59 = vadd.f32 %v2011_v13, %v2010_v60 }
 0x188   : > { %v1984_v43 = vadd.f32 %v1983_v4, %v1982_v20  ;;  %v2013_v22 = vrot.slane %v2012_v59, 1 }
 0x18a   : > { %1985 = vst.msk [vmem:[%s235_s6] sm:$0x1] %vm285_vm2, %v1984_v43  ;;  %v2014_v32 = vadd.f32 %v2013_v22, %v2012_v59 }
 0x18c   : > { %2015 = vst.msk [vmem:[%s235_s6 + $0x1] sm:$0x1] %vm285_vm2, %v2014_v32 }
 0x18d PF: > { %s16_s18 = sadd.s32 1, %s2476_s18  }
 0x18e   : > { %p13_p4 = scmp.ge.s32.totalorder %s16_s18, 4  }
 0x190   :  { %15 = sbr.rel (!%p13_p4) target bundleno = 1 (0x1), region = 89 }

// kernel: downsample_forward.3
= control target key start
LH: loop header
LB: loop body
LE: loop exit
PB: predicated region body
PF: predicated region fallthrough
CT: control target
= control target key end

     0   :  { %s2480_s12 = smov 0   ;;  %s3191_s0 = inlined_call_operand.vmem [shape: f32[2,8,2,8,8], index: 0, kind: input, shape index: {}]   ;;  %s3192_s1 = inlined_call_operand.vmem [shape: bf16[3,3,4,8], index: 1, kind: input, shape index: {}]   ;;  %s3193_s2 = inlined_call_operand.vmem [shape: f32[2,8,8,8], index: 2, kind: output, shape index: {0}]   ;;  %s3194_s3 = inlined_call_operand.vmem [shape: f32[2,1,2,8], index: 3, kind: output, shape index: {1}]  }
   0x1 LB: > { %s2068_s13 = sadd.s32 4294967295, %s2456_s12   ;;  %p2072_p0 = scmp.ge.s32.totalorder %s2456_s12, 1  ;;  %s2456_s12 = sphi %s2480_s12, %s14_s12  }
   0x2   : > { %p140_p1 = scmp.lt.s32.totalorder %s2456_s12, 3 }
   0x4   : > { %p141_p2 = pnand %p2072_p0, %p140_p1 }
   0x6   : > { %144 = sbr.rel (%p141_p2) target bundleno = 502 (0x1f6), region = 28 }
   0xd   : > { %p168_p3 = scmp.lt.s32.totalorder %s2068_s13, 1  ;;  %vm247_vm0 = vcmask 27648   ;;  %vm249_vm1 = vcmask 24576   ;;  %v2458_v0 = vmov 0   ;;  %vm255_vm2 = vsmask.f32 256 }
   0xe   : > { %248 = vst.msk [vmem:[#allocation2] sm:$0xf] %vm247_vm0, %v2458_v0  ;;  %252 = vst.msk [vmem:[#allocation2 + $0x48] sm:$0xf] %vm247_vm0, %v2458_v0  ;;  %v260_v1 = vld [vmem:[#allocation2 + $0x8] sm:$0x1] }
   0xf   : > { %250 = vst.msk [vmem:[#allocation2 + $0x4] sm:$0x1] %vm249_vm1, %v2458_v0  ;;  %253 = vst.msk [vmem:[#allocation2 + $0x4c] sm:$0x1] %vm249_vm1, %v2458_v0  ;;  %v263_v2 = vld [vmem:[#allocation2 + $0x10] sm:$0x1] }
  0x10   : > { %s3219_s13 = smov (!%p168_p3, %s2068_s13), 1  ;;  %vm2495_vm3 = vmand %vm249_vm1, %vm255_vm2  ;;  %vm287_vm4 = vsmask.f32 7938  ;;  %v292_v4 = vld [vmem:[#allocation2 + $0xc] sm:$0x1]  ;;  %s2459_s18 = smov 124  }
  0x11   : > { %v261_v5 = vsel %vm2495_vm3, 0, %v260_v1  ;;  %v264_v6 = vsel %vm2495_vm3, 0, %v263_v2  ;;  %vm2504_vm5 = vmand %vm249_vm1, %vm287_vm4  ;;  %v295_v8 = vld [vmem:[#allocation2 + $0x14] sm:$0x1]  ;;  %s2192_s14 = sshll.u32 %s3219_s13, 7  ;;  %vm641_vm7 = vcmask 1041408  }
  0x12   : > { %262 = vst [vmem:[#allocation2 + $0x8] sm:$0x1] %v261_v5  ;;  %265 = vst [vmem:[#allocation2 + $0x10] sm:$0x1] %v264_v6  ;;  %v293_v9 = vsel %vm2504_vm5, 0, %v292_v4  ;;  %v296_v10 = vsel %vm2504_vm5, 0, %v295_v8  ;;  %s2521_s17 = scalar_lea.vmem %s3191_s0, %s2192_s14 }
  0x13   : > { %vm2514_vm6 = vmand %vm247_vm0, %vm287_vm4  ;;  %294 = vst [vmem:[#allocation2 + $0xc] sm:$0x1] %v293_v9  ;;  %v272_v12 = vld [vmem:[#allocation2 + $0x28] sm:$0x1]  ;;  %v304_v13 = vld [vmem:[#allocation2 + $0x2c] sm:$0x1] }
  0x14   : > { %297 = vst [vmem:[#allocation2 + $0x14] sm:$0x1] %v296_v10  ;;  %v266_v14 = vld [vmem:[#allocation2 + $0x18] sm:$0x1]  ;;  %v183_v15 = vld [vmem:[%s2521_s17] sm:$0xff]  ;;  %v184_v16 = vld [vmem:[%s2521_s17 + $0x8] sm:$0xff] }
  0x15   : > { %v185_v17 = vld [vmem:[%s2521_s17 + $0x10] sm:$0xff]  ;;  %v273_v18 = vsel %vm2495_vm3, 0, %v272_v12  ;;  %v305_v19 = vsel %vm2504_vm5, 0, %v304_v13  ;;  %v267_v20 = vsel %vm2495_vm3, 0, %v266_v14  ;;  %v186_v21 = vld [vmem:[%s2521_s17 + $0x18] sm:$0xff]  ;;  %v2533_v22 = vmax.f32 %v183_v15, %v184_v16  ;;  %v191_v23 = vld [vmem:[%s2521_s17 + $0x40] sm:$0xff] }
  0x16   : > { %v192_v24 = vld [vmem:[%s2521_s17 + $0x48] sm:$0xff]  ;;  %274 = vst [vmem:[#allocation2 + $0x28] sm:$0x1] %v273_v18  ;;  %306 = vst [vmem:[#allocation2 + $0x2c] sm:$0x1] %v305_v19  ;;  %v2537_v25 = vmax.f32 %v185_v17, %v186_v21  ;;  %v193_v26 = vld [vmem:[%s2521_s17 + $0x50] sm:$0xff] }
  0x17   : > { %268 = vst [vmem:[#allocation2 + $0x18] sm:$0x1] %v267_v20  ;;  %v194_v27 = vld [vmem:[%s2521_s17 + $0x58] sm:$0xff]  ;;  %v2541_v28 = vmax.f32 %v191_v23, %v192_v24  ;;  %v187_v29 = vld [vmem:[%s2521_s17 + $0x20] sm:$0xff]  ;;  %v188_v31 = vld [vmem:[%s2521_s17 + $0x28] sm:$0xff]  ;;  %vm628_vm11 = vcmask 31744  }
  0x18   : > { %v2544_v30 = vmax.f32 %v193_v26, %v194_v27  ;;  %v189_v32 = vld [vmem:[%s2521_s17 + $0x30] sm:$0xff]  ;;  %v190_v33 = vld [vmem:[%s2521_s17 + $0x38] sm:$0xff]  ;;  %v2423_v34 = vpack.i.bf16 %v2537_v25, %v2533_v22  ;;  %v2551_v35 = vmax.f32 %v187_v29, %v188_v31  ;;  %v195_v37 = vld [vmem:[%s2521_s17 + $0x60] sm:$0xff]  ;;  %vm499_vm8 = vsmask.f32 3328  ;;  %s2193_s10 = sshll.u32 %s3219_s13, 6 }
  0x19   : > { %v2553_v36 = vmax.f32 %v189_v32, %v190_v33  ;;  %v196_v38 = vld [vmem:[%s2521_s17 + $0x68] sm:$0xff]  ;;  %v257_v40 = vld [vmem:[#allocation2] sm:$0x1]  ;;  %v197_v47 = vld [vmem:[%s2521_s17 + $0x70] sm:$0xff]  ;;  %vm500_vm9 = vsmask.f32 7440  ;;  %s3150_s15 = scalar_lea.vmem %s3193_s2, %s2193_s10 }
  0x1a   : > { %v2433_v39 = vpack.i.bf16 %v2544_v30, %v2541_v28  ;;  %v284_v41 = vld [vmem:[#allocation2 + $0x48] sm:$0x1]  ;;  %2424 = vrot.lane.b32.xlu0 %v2423_v34, %s2459_s18  ;;  %v258_v43 = vsel %vm2495_vm3, 0, %v257_v40  ;;  %v316_v45 = vld [vmem:[#allocation2 + $0x4c] sm:$0x1]  ;;  %v2567_v46 = vmax.f32 %v195_v37, %v196_v38  ;;  %v198_v48 = vld [vmem:[%s2521_s17 + $0x78] sm:$0xff] }
  0x1b   : > { %v2428_v42 = vpack.i.bf16 %v2553_v36, %v2551_v35  ;;  %v285_v44 = vsel %vm2495_vm3, 0, %v284_v41  ;;  %259 = vst [vmem:[#allocation2] sm:$0x1] %v258_v43  ;;  %v317_v49 = vsel %vm2504_vm5, 0, %v316_v45  ;;  %v275_v50 = vld [vmem:[#allocation2 + $0x30] sm:$0x1]  ;;  %v2578_v54 = vmax.f32 %v197_v47, %v198_v48  ;;  %vm2702_vm10 = vmor %vm499_vm8, %vm500_vm9 }
  0x1c   : > { %2434 = vrot.lane.b32.xlu1 %v2433_v39, %s2459_s18  ;;  %286 = vst [vmem:[#allocation2 + $0x48] sm:$0x1] %v285_v44  ;;  %318 = vst [vmem:[#allocation2 + $0x4c] sm:$0x1] %v317_v49  ;;  %v307_v51 = vld [vmem:[#allocation2 + $0x34] sm:$0x1] }
  0x1d   : > { %v276_v52 = vsel %vm2495_vm3, 0, %v275_v50  ;;  %v308_v53 = vsel %vm2504_vm5, 0, %v307_v51  ;;  %v269_v55 = vld [vmem:[#allocation2 + $0x20] sm:$0x1]  ;;  %v298_v56 = vld [vmem:[#allocation2 + $0x1c] sm:$0x1] }
  0x1e   : > { %2429 = vrot.lane.b32.xlu0 %v2428_v42, %s2459_s18  ;;  %277 = vst [vmem:[#allocation2 + $0x30] sm:$0x1] %v276_v52  ;;  %309 = vst [vmem:[#allocation2 + $0x34] sm:$0x1] %v308_v53  ;;  %v301_v57 = vld [vmem:[#allocation2 + $0x24] sm:$0x1] }
  0x1f   : > { %v270_v58 = vsel %vm2495_vm3, 0, %v269_v55  ;;  %v299_v59 = vsel %vm2504_vm5, 0, %v298_v56  ;;  %v302_v60 = vsel %vm2504_vm5, 0, %v301_v57  ;;  %v278_v61 = vld [vmem:[#allocation2 + $0x38] sm:$0x1]  ;;  %vm818_vm12 = vcmask 1042432  }
  0x20   : > { %227 = vrot.lane.b32.xlu1 %v2567_v46, %s2459_s18  ;;  %271 = vst [vmem:[#allocation2 + $0x20] sm:$0x1] %v270_v58  ;;  %300 = vst [vmem:[#allocation2 + $0x1c] sm:$0x1] %v299_v59  ;;  %v310_v62 = vld [vmem:[#allocation2 + $0x3c] sm:$0x1] }
  0x21   : > { %303 = vst [vmem:[#allocation2 + $0x24] sm:$0x1] %v302_v60  ;;  %v281_v63 = vld [vmem:[#allocation2 + $0x40] sm:$0x1]  ;;  %v279_v0 = vsel %vm2495_vm3, 0, %v278_v61  ;;  %v311_v1 = vsel %vm2504_vm5, 0, %v310_v62 }
  0x22   : > { %v282_v2 = vsel %vm2495_vm3, 0, %v281_v63  ;;  %v313_v4 = vld [vmem:[#allocation2 + $0x44] sm:$0x1]  ;;  %229 = vrot.lane.b32.xlu0 %v2578_v54, %s2459_s18  ;;  %280 = vst [vmem:[#allocation2 + $0x38] sm:$0x1] %v279_v0  ;;  %vm819_vm13 = vcmask 1046532  }
  0x23   : > { %312 = vst [vmem:[#allocation2 + $0x3c] sm:$0x1] %v311_v1  ;;  %283 = vst [vmem:[#allocation2 + $0x40] sm:$0x1] %v282_v2  ;;  %v314_v5 = vsel %vm2504_vm5, 0, %v313_v4  ;;  %vm1920_vm15 = vcmask 64512  }
  0x24   : > { %v289_v6 = vld [vmem:[#allocation2 + $0x4] sm:$0x1]  ;;  %315 = vst [vmem:[#allocation2 + $0x44] sm:$0x1] %v314_v5  ;;  %v2086_v9 = vld [vmem:[%s3192_s1 + $0x2] sm:$0x3]  ;;  %vm2794_vm14 = vmor %vm818_vm12, %vm819_vm13 }
  0x25   : > { %v290_v8 = vsel %vm2504_vm5, 0, %v289_v6  ;;  %v2606_v10 = vld [vmem:[%s3192_s1 + $0x8] sm:$0x3]  ;;  %2403 = vmatprep.subr.msk.bf16.mxu1 %vm641_vm7, %v2086_v9  ;;  %v643_v12 = vsel %vm641_vm7, %v2086_v9, 0  ;;  %v2620_v13 = vld [vmem:[%s3192_s1] sm:$0x3] }
  0x26   : > { %291 = vst [vmem:[#allocation2 + $0x4] sm:$0x1] %v290_v8  ;;  %2407 = vmatprep.subr.msk.bf16.mxu0 %vm641_vm7, %v2606_v10  ;;  %2248 = vmatpush3.bf16.msra.mxu1 %v643_v12  ;;  %v2614_v7 = vsel %vm641_vm7, %v2606_v10, 0  ;;  %v2625_v14 = vld [vmem:[%s3192_s1 + $0xa] sm:$0x3]  ;;  %s2077_s16 = sshll.u32 %s3219_s13, 1 }
  0x27   : > { %3205 = vst [vmem:[#allocation3_spill] sm:$0xff] %v2614_v7  ;;  %2288 = vmatpush3.bf16.msra.mxu0 %v2614_v7  ;;  %2404 = vmatprep.subr.msk.bf16.mxu1 %vm641_vm7, %v2620_v13  ;;  %v2631_v15 = vld [vmem:[#allocation2] sm:$0xf]  ;;  %v434_v48 = vld [vmem:[#allocation2 + $0x8] sm:$0xf]  ;;  %s181_s19 = scalar_lea.vmem %s3194_s3, %s2077_s16  ;;  %vm1950_vm0 = vcmask 57344  }
  0x28   : > { %2409 = vmatprep.subr.msk.bf16.mxu0 %vm641_vm7, %v2625_v14  ;;  %v503_v17 = vshrl.u32 %v2631_v15, 16  ;;  %v506_v18 = vshll.u32 %v2631_v15, 16  ;;  %v437_v49 = vld [vmem:[#allocation2 + $0xc] sm:$0x1]  ;;  %v440_v56 = vld [vmem:[#allocation2 + $0x10] sm:$0xf] }
  0x29   : > { %v443_v57 = vld [vmem:[#allocation2 + $0x14] sm:$0x1]  ;;  %v458_v61 = vld [vmem:[#allocation2 + $0x28] sm:$0xf]  ;;  %v461_v62 = vld [vmem:[#allocation2 + $0x2c] sm:$0x1] }
  0x2a   : > { %v2639_v33 = vrot.slane %v503_v17, 4  ;;  %v2641_v34 = vrot.slane %v506_v18, 5  ;;  %v464_v9 = vld [vmem:[#allocation2 + $0x30] sm:$0xf]  ;;  %v467_v12 = vld [vmem:[#allocation2 + $0x34] sm:$0x1] }
  0x2d   : > { %v2643_v42 = vld [vmem:[#allocation2 + $0x4] sm:$0x1] }
  0x8c   : > { %v2425_v16 = vpop.permute.xlu0 %2424 }
  0x8d   : > { %v2427_v19 = vunpack.i.h.bf16 %v2425_v16  ;;  %v2426_v20 = vunpack.i.l.bf16 %v2425_v16 }
  0x8e   : > { %v2435_v21 = vpop.permute.xlu1 %2434 }
  0x8f   : > { %v2437_v23 = vunpack.i.h.bf16 %v2435_v21  ;;  %v2436_v24 = vunpack.i.l.bf16 %v2435_v21  ;;  %v240_v26 = vmax.f32 %v2537_v25, %v2427_v19  ;;  %v239_v27 = vmax.f32 %v2533_v22, %v2426_v20 }
  0x90   : > { %v2430_v32 = vpop.permute.xlu0 %2429 }
  0x91   : > { %v244_v29 = vmax.f32 %v2544_v30, %v2437_v23  ;;  %v243_v31 = vmax.f32 %v2541_v28, %v2436_v24  ;;  %v2195_v37 = vpack.c.bf16 %v240_v26, %v240_v26  ;;  %v2194_v38 = vpack.c.bf16 %v239_v27, %v239_v27 }
  0x92   : > { %v2432_v39 = vunpack.i.h.bf16 %v2430_v32  ;;  %v2431_v40 = vunpack.i.l.bf16 %v2430_v32  ;;  %v228_v41 = vpop.permute.xlu1 %227  ;;  %v512_v30 = vshll.u32 %v2643_v42, 16 }
  0x93   : > { %v2199_v43 = vpack.c.bf16 %v244_v29, %v244_v29  ;;  %v2198_v25 = vpack.c.bf16 %v243_v31, %v243_v31  ;;  %v245_v22 = vmax.f32 %v2567_v46, %v228_v41  ;;  %v360_v44 = vshrl.u32 %v2195_v37, 16  ;;  %v446_v41 = vld [vmem:[#allocation2 + $0x18] sm:$0xf] }
  0x94   : > { %v363_v28 = vshll.u32 %v2195_v37, 16  ;;  %v352_v45 = vshrl.u32 %v2194_v38, 16  ;;  %v355_v47 = vshll.u32 %v2194_v38, 16  ;;  %v230_v55 = vpop.permute.xlu0 %229  ;;  %v242_v60 = vmax.f32 %v2553_v36, %v2432_v39 }
  0x95   : > { %v392_v50 = vshrl.u32 %v2199_v43, 16  ;;  %v395_v51 = vshll.u32 %v2199_v43, 16  ;;  %v384_v52 = vshrl.u32 %v2198_v25, 16  ;;  %v387_v53 = vshll.u32 %v2198_v25, 16  ;;  %v449_v43 = vld [vmem:[#allocation2 + $0x1c] sm:$0x1] }
  0x96   : > { %v362_v58 = vrot.slane %v360_v44, 7  ;;  %v354_v59 = vrot.slane %v352_v45, 7  ;;  %v241_v46 = vmax.f32 %v2551_v35, %v2431_v40  ;;  %v2200_v1 = vpack.c.bf16 %v245_v22, %v245_v22  ;;  %v452_v25 = vld [vmem:[#allocation2 + $0x20] sm:$0xf]  ;;  %v455_v22 = vld [vmem:[#allocation2 + $0x24] sm:$0x1] }
  0x97   : > { %v394_v63 = vrot.slane %v392_v50, 7  ;;  %v386_v0 = vrot.slane %v384_v52, 7  ;;  %v246_v2 = vmax.f32 %v2578_v54, %v230_v55  ;;  %v2197_v27 = vpack.c.bf16 %v242_v60, %v242_v60  ;;  %v470_v44 = vld [vmem:[#allocation2 + $0x38] sm:$0xf]  ;;  %v476_v55 = vld [vmem:[#allocation2 + $0x40] sm:$0xf] }
  0x98   : > { %v365_v4 = vor.u32 %v363_v28, %v362_v58  ;;  %v366_v5 = vrot.slane %v362_v58, 4  ;;  %v357_v6 = vor.u32 %v355_v47, %v354_v59  ;;  %v358_v8 = vrot.slane %v354_v59, 4 }
  0x99   : > { %v397_v16 = vor.u32 %v395_v51, %v394_v63  ;;  %v398_v17 = vrot.slane %v394_v63, 4  ;;  %v389_v18 = vor.u32 %v387_v53, %v386_v0  ;;  %v390_v19 = vrot.slane %v386_v0, 4 }
  0x9a   : > { %v441_v35 = vsel %vm2514_vm6, %v365_v4, %v440_v56  ;;  %v444_v36 = vsel %vm2495_vm3, %v366_v5, %v443_v57  ;;  %v435_v20 = vsel %vm2514_vm6, %v357_v6, %v434_v48  ;;  %v438_v54 = vsel %vm2495_vm3, %v358_v8, %v437_v49 }
  0x9b   : > { %442 = vst [vmem:[#allocation2 + $0x10] sm:$0xf] %v441_v35  ;;  %445 = vst [vmem:[#allocation2 + $0x14] sm:$0x1] %v444_v36  ;;  %v465_v21 = vsel %vm2514_vm6, %v397_v16, %v464_v9  ;;  %v468_v23 = vsel %vm2495_vm3, %v398_v17, %v467_v12  ;;  %v459_v24 = vsel %vm2514_vm6, %v389_v18, %v458_v61  ;;  %v400_v31 = vshrl.u32 %v2200_v1, 16 }
  0x9c   : > { %436 = vst [vmem:[#allocation2 + $0x8] sm:$0xf] %v435_v20  ;;  %439 = vst [vmem:[#allocation2 + $0xc] sm:$0x1] %v438_v54  ;;  %v462_v26 = vsel %vm2495_vm3, %v390_v19, %v461_v62  ;;  %v2196_v29 = vpack.c.bf16 %v241_v46, %v241_v46  ;;  %v403_v32 = vshll.u32 %v2200_v1, 16  ;;  %v2201_v37 = vpack.c.bf16 %v246_v2, %v246_v2 }
  0x9d   : > { %466 = vst [vmem:[#allocation2 + $0x30] sm:$0xf] %v465_v21  ;;  %469 = vst [vmem:[#allocation2 + $0x34] sm:$0x1] %v468_v23  ;;  %v509_v38 = vor.u32 %v2641_v34, %v2639_v33  ;;  %v376_v39 = vshrl.u32 %v2197_v27, 16  ;;  %v402_v28 = vrot.slane %v400_v31, 7 }
  0x9e   : > { %460 = vst [vmem:[#allocation2 + $0x28] sm:$0xf] %v459_v24  ;;  %463 = vst [vmem:[#allocation2 + $0x2c] sm:$0x1] %v462_v26  ;;  %v368_v40 = vshrl.u32 %v2196_v29, 16  ;;  %v408_v45 = vshrl.u32 %v2201_v37, 16 }
  0x9f   : > { %v411_v47 = vshll.u32 %v2201_v37, 16  ;;  %v2670_v48 = vrot.slane %v512_v30, 5  ;;  %v378_v49 = vrot.slane %v376_v39, 7  ;;  %v379_v50 = vshll.u32 %v2197_v27, 16  ;;  %v473_v34 = vld [vmem:[#allocation2 + $0x3c] sm:$0x1] }
  0xa0   : > { %v370_v51 = vrot.slane %v368_v40, 7  ;;  %v371_v33 = vshll.u32 %v2196_v29, 16  ;;  %v405_v52 = vor.u32 %v403_v32, %v402_v28  ;;  %v406_v53 = vrot.slane %v402_v28, 4  ;;  %v479_v61 = vld [vmem:[#allocation2 + $0x44] sm:$0x1] }
  0xa1   : > { %v410_v56 = vrot.slane %v408_v45, 7  ;;  %v2672_v57 = vrot.slane %v509_v38, 4  ;;  %v381_v58 = vor.u32 %v379_v50, %v378_v49  ;;  %v382_v59 = vrot.slane %v378_v49, 4 }
  0xa2   : > { %v373_v60 = vor.u32 %v371_v33, %v370_v51  ;;  %v374_v46 = vrot.slane %v370_v51, 4  ;;  %v471_v30 = vsel %vm2514_vm6, %v405_v52, %v470_v44  ;;  %v474_v63 = vsel %vm2495_vm3, %v406_v53, %v473_v34  ;;  %v2694_v16 = vld [vmem:[#allocation2 + $0x10] sm:$0xf]  ;;  %v2711_v23 = vld [vmem:[#allocation2 + $0x14] sm:$0x1] }
  0xa3   : > { %v2674_v62 = vld [vmem:[#allocation2 + $0x8] sm:$0xf]  ;;  %v413_v0 = vor.u32 %v411_v47, %v410_v56  ;;  %v414_v1 = vrot.slane %v410_v56, 4  ;;  %v2680_v2 = vld [vmem:[#allocation2 + $0xc] sm:$0x1]  ;;  %v453_v5 = vsel %vm2514_vm6, %v381_v58, %v452_v25  ;;  %v456_v6 = vsel %vm2495_vm3, %v382_v59, %v455_v22 }
  0xa4   : > { %v2682_v4 = vld [vmem:[#allocation2 + $0x8] sm:$0xf]  ;;  %v447_v8 = vsel %vm2514_vm6, %v373_v60, %v446_v41  ;;  %v450_v9 = vsel %vm2495_vm3, %v374_v46, %v449_v43  ;;  %472 = vst [vmem:[#allocation2 + $0x38] sm:$0xf] %v471_v30  ;;  %475 = vst [vmem:[#allocation2 + $0x3c] sm:$0x1] %v474_v63  ;;  %v515_v27 = vsel %vm2702_vm10, %v2672_v57, %v2670_v48 }
  0xa5   : > { %v2692_v12 = vld [vmem:[#allocation2 + $0xc] sm:$0x1]  ;;  %454 = vst [vmem:[#allocation2 + $0x20] sm:$0xf] %v453_v5  ;;  %457 = vst [vmem:[#allocation2 + $0x24] sm:$0x1] %v456_v6  ;;  %v477_v17 = vsel %vm2514_vm6, %v413_v0, %v476_v55  ;;  %v480_v18 = vsel %vm2495_vm3, %v414_v1, %v479_v61 }
  0xa6   : > { %448 = vst [vmem:[#allocation2 + $0x18] sm:$0xf] %v447_v8  ;;  %451 = vst [vmem:[#allocation2 + $0x1c] sm:$0x1] %v450_v9  ;;  %v517_v35 = vshrl.u32 %v2674_v62, 16  ;;  %v520_v36 = vshll.u32 %v2674_v62, 16 }
  0xa7   : > { %478 = vst [vmem:[#allocation2 + $0x40] sm:$0xf] %v477_v17  ;;  %481 = vst [vmem:[#allocation2 + $0x44] sm:$0x1] %v480_v18  ;;  %v526_v20 = vshll.u32 %v2680_v2, 16  ;;  %v1082_v11 = vshrl.u32 %v2682_v4, 16 }
  0xa8   : > { %v1085_v3 = vshll.u32 %v2682_v4, 16  ;;  %v519_v54 = vrot.slane %v517_v35, 4  ;;  %v522_v21 = vrot.slane %v520_v36, 5  ;;  %v1091_v24 = vshll.u32 %v2692_v12, 16  ;;  %v2720_v37 = vld [vmem:[#allocation2 + $0x10] sm:$0xf] }
  0xa9   : > { %v1096_v26 = vshrl.u32 %v2694_v16, 16  ;;  %v1084_v29 = vrot.slane %v1082_v11, 4  ;;  %v1099_v32 = vshll.u32 %v2694_v16, 16  ;;  %v2722_v40 = vld [vmem:[#allocation2 + $0x14] sm:$0x1]  ;;  %v2726_v41 = vsel %vm641_vm7, %v2620_v13, 0 }
  0xaa   : > { %v1087_v31 = vrot.slane %v1085_v3, 5  ;;  %v523_v38 = vor.u32 %v522_v21, %v519_v54  ;;  %v2730_v43 = vsel %vm641_vm7, %v2625_v14, 0  ;;  %v528_v25 = vrot.slane %v526_v20, 5 }
  0xab   : > { %v1098_v39 = vrot.slane %v1096_v26, 4  ;;  %v1101_v44 = vrot.slane %v1099_v32, 5  ;;  %v1105_v28 = vshll.u32 %v2711_v23, 16  ;;  %v1093_v47 = vrot.slane %v1091_v24, 5 }
  0xac   : > { %v1088_v22 = vor.u32 %v1087_v31, %v1084_v29  ;;  %v524_v45 = vrot.slane %v523_v38, 4  ;;  %v531_v48 = vshrl.u32 %v2720_v37, 16  ;;  %v534_v49 = vshll.u32 %v2720_v37, 16  ;;  %v2751_v1 = vld [vmem:[#allocation2 + $0x20] sm:$0xf] }
  0xad   : > { %v1102_v51 = vor.u32 %v1101_v44, %v1098_v39  ;;  %v2735_v33 = vld [vmem:[#allocation2 + $0x18] sm:$0xf]  ;;  %v2737_v13 = vld [vmem:[#allocation2 + $0x1c] sm:$0x1]  ;;  %v540_v14 = vshll.u32 %v2722_v40, 16  ;;  %v1107_v60 = vrot.slane %v1105_v28, 5 }
  0xae   : > { %v1089_v50 = vrot.slane %v1088_v22, 4  ;;  %v529_v34 = vsel %vm2702_vm10, %v524_v45, %v528_v25  ;;  %v533_v52 = vrot.slane %v531_v48, 4  ;;  %v536_v53 = vrot.slane %v534_v49, 5  ;;  %v2743_v56 = vld [vmem:[#allocation2 + $0x18] sm:$0xf] }
  0xaf   : > { %v545_v55 = vshrl.u32 %v2735_v33, 16  ;;  %v2087_v57 = vcombine.low %v515_v27, %v529_v34  ;;  %v1103_v59 = vrot.slane %v1102_v51, 4  ;;  %v2747_v46 = vld [vmem:[#allocation2 + $0x1c] sm:$0x1]  ;;  %v548_v63 = vshll.u32 %v2735_v33, 16 }
  0xb0   : > { %v1094_v58 = vsel %vm2702_vm10, %v1089_v50, %v1093_v47  ;;  %v537_v61 = vor.u32 %v536_v53, %v533_v52  ;;  %v554_v0 = vshll.u32 %v2737_v13, 16  ;;  %v1305_v6 = vrot.slane %v2692_v12, 5  ;;  %v2758_v9 = vld [vmem:[#allocation2 + $0x24] sm:$0x1]  ;;  %v2764_v24 = vld [vmem:[#allocation2 + $0x20] sm:$0xf] }
  0xb1   : > { %v547_v30 = vrot.slane %v545_v55, 4  ;;  %2249 = vmatprep.mubr.msk.bf16.mxu1 %vm628_vm11, %v2087_v57  ;;  %v1108_v5 = vsel %vm2702_vm10, %v1103_v59, %v1107_v60  ;;  %v1309_v8 = vrot.slane %v2711_v23, 5  ;;  %v1110_v17 = vshrl.u32 %v2743_v56, 16  ;;  %v2769_v32 = vld [vmem:[#allocation2 + $0x24] sm:$0x1] }
  0xb2   : > { %v2130_v18 = vcombine.low %v1094_v58, %v1108_v5  ;;  %v538_v35 = vrot.slane %v537_v61, 4  ;;  %v542_v36 = vrot.slane %v540_v14, 5  ;;  %v550_v20 = vrot.slane %v548_v63, 5  ;;  %v2773_v44 = vld [vmem:[#allocation2 + $0x28] sm:$0xf] }
  0xb3   : > { %v1112_v11 = vrot.slane %v1110_v17, 4  ;;  %v1113_v3 = vshll.u32 %v2743_v56, 16  ;;  %v1119_v54 = vshll.u32 %v2747_v46, 16  ;;  %v1124_v21 = vshrl.u32 %v2751_v1, 16  ;;  %v2786_v57 = vld [vmem:[%s3192_s1 + $0x4] sm:$0x3] }
  0xb4   : > { %2289 = vmatprep.mubr.msk.bf16.mxu0 %vm628_vm11, %v2130_v18  ;;  %v551_v26 = vor.u32 %v550_v20, %v547_v30  ;;  %v556_v27 = vrot.slane %v554_v0, 5  ;;  %v1127_v29 = vshll.u32 %v2751_v1, 16  ;;  %v1133_v31 = vshll.u32 %v2758_v9, 16  ;;  %v2788_v30 = vld [vmem:[#allocation2 + $0x30] sm:$0xf] }
  0xb5   : > { %v543_v38 = vsel %vm2702_vm10, %v538_v35, %v542_v36  ;;  %v1115_v39 = vrot.slane %v1113_v3, 5  ;;  %v1121_v25 = vrot.slane %v1119_v54, 5  ;;  %v1126_v22 = vrot.slane %v1124_v21, 4  ;;  %v2790_v0 = vld [vmem:[#allocation2 + $0x2c] sm:$0x1] }
  0xb6   : > { %v552_v28 = vrot.slane %v551_v26, 4  ;;  %v1129_v45 = vrot.slane %v1127_v29, 5  ;;  %v1135_v47 = vrot.slane %v1133_v31, 5  ;;  %v1313_v48 = vrot.slane %v2747_v46, 5 }
  0xb7   : > { %v1116_v49 = vor.u32 %v1115_v39, %v1112_v11  ;;  %v559_v50 = vshrl.u32 %v2764_v24, 16  ;;  %v562_v51 = vshll.u32 %v2764_v24, 16  ;;  %v568_v14 = vshll.u32 %v2769_v32, 16 }
  0xb8   : > { %v557_v34 = vsel %vm2702_vm10, %v552_v28, %v556_v27  ;;  %v1130_v52 = vor.u32 %v1129_v45, %v1126_v22  ;;  %v573_v53 = vshrl.u32 %v2773_v44, 16  ;;  %v576_v55 = vshll.u32 %v2773_v44, 16  ;;  %v2807_v27 = vld [vmem:[#allocation2 + $0x38] sm:$0xf]  ;;  %v2823_v45 = vld [vmem:[#allocation2 + $0x34] sm:$0x1] }
  0xb9   : > { %v2088_v58 = vcombine.low %v543_v38, %v557_v34  ;;  %v1117_v59 = vrot.slane %v1116_v49, 4  ;;  %v561_v60 = vrot.slane %v559_v50, 4  ;;  %v564_v61 = vrot.slane %v562_v51, 5  ;;  %v2829_v50 = vld [vmem:[#allocation2 + $0x3c] sm:$0x1] }
  0xba   : > { %v1131_v63 = vrot.slane %v1130_v52, 4  ;;  %v570_v5 = vrot.slane %v568_v14, 5  ;;  %v575_v17 = vrot.slane %v573_v53, 4  ;;  %v578_v18 = vrot.slane %v576_v55, 5  ;;  %v2838_v53 = vld [vmem:[#allocation2 + $0x2c] sm:$0x1] }
  0xbb   : > { %2250 = vmatmul.mubr.msk.bf16.vlgmr.msra.gmra.mrb[0].mxu1 %vm628_vm11, %v2088_v58  ;;  %v1122_v36 = vsel %vm2702_vm10, %v1117_v59, %v1121_v25  ;;  %v565_v20 = vor.u32 %v564_v61, %v561_v60  ;;  %v582_v11 = vshll.u32 %v2790_v0, 16  ;;  %v2138_v3 = vrot.slane %v2682_v4, 9 }
  0xbc   : > { %2258 = vmatpush3.bf16.msra.mxu1 %v2726_v41  ;;  %v1136_v54 = vsel %vm2702_vm10, %v1131_v63, %v1135_v47  ;;  %v579_v21 = vor.u32 %v578_v18, %v575_v17  ;;  %v2139_v26 = vrot.slane %v2694_v16, 9  ;;  %v587_v29 = vshrl.u32 %v2788_v30, 16  ;;  %v2155_v41 = vld [vmem:[%s3192_s1 + $0xc] sm:$0x3]  ;;  %v2847_v18 = vld [vmem:[#allocation2 + $0x28] sm:$0xf] }
  0xbd   : > { %v2131_v31 = vcombine.low %v1122_v36, %v1136_v54  ;;  %v566_v38 = vrot.slane %v565_v20, 4  ;;  %v584_v39 = vrot.slane %v582_v11, 5  ;;  %v1306_v25 = vsel %vm2794_vm14, %v2138_v3, %v1305_v6  ;;  %2405 = vmatprep.subr.msk.bf16.mxu1 %vm641_vm7, %v2786_v57  ;;  %v2850_v36 = vld [vmem:[#allocation2 + $0x30] sm:$0xf] }
  0xbe   : > { %v580_v22 = vrot.slane %v579_v21, 4  ;;  %v1310_v28 = vsel %vm2794_vm14, %v2139_v26, %v1309_v8  ;;  %v589_v47 = vrot.slane %v587_v29, 4  ;;  %v590_v12 = vshll.u32 %v2788_v30, 16 }
  0xbf   : > { %2290 = vmatmul.mubr.msk.bf16.vlgmr.msra.gmra.mrb[0].mxu0 %vm628_vm11, %v2131_v31  ;;  %v571_v6 = vsel %vm2702_vm10, %v566_v38, %v570_v5  ;;  %v2147_v49 = vcombine.low %v1306_v25, %v1310_v28  ;;  %v596_v51 = vshll.u32 %v2823_v45, 16  ;;  %v601_v23 = vshrl.u32 %v2807_v27, 16  ;;  %v2864_v25 = vld [vmem:[#allocation2 + $0x48] sm:$0xf]  ;;  %v2867_v28 = vld [vmem:[#allocation2 + $0x3c] sm:$0x1] }
  0xc0   : > { %2298 = vmatpush3.bf16.msra.mxu0 %v2730_v43  ;;  %v585_v8 = vsel %vm2702_vm10, %v580_v22, %v584_v39  ;;  %v592_v14 = vrot.slane %v590_v12, 5  ;;  %v604_v34 = vshll.u32 %v2807_v27, 16  ;;  %v610_v52 = vshll.u32 %v2829_v50, 16  ;;  %v2843_v43 = vld [vmem:[#allocation2 + $0x34] sm:$0x1]  ;;  %3210 = vst [vmem:[#allocation4_spill] sm:$0xff] %v2864_v25 }
  0xc1   : > { %v1317_v55 = vrot.slane %v2758_v9, 5  ;;  %v2089_v58 = vcombine.low %v571_v6, %v585_v8  ;;  %2299 = vmatprep.mubr.msk.bf16.mxu0 %vm628_vm11, %v2147_v49  ;;  %v598_v59 = vrot.slane %v596_v51, 5  ;;  %v603_v60 = vrot.slane %v601_v23, 4  ;;  %2410 = vmatprep.subr.msk.bf16.mxu0 %vm641_vm7, %v2155_v41  ;;  %3211 = vst [vmem:[#allocation5_spill] sm:$0xff] %v2867_v28  ;;  %v2875_v6 = vld [vmem:[#allocation2 + $0x44] sm:$0x1] }
  0xc2   : > { %v593_v61 = vor.u32 %v592_v14, %v589_v47  ;;  %v606_v63 = vrot.slane %v604_v34, 5  ;;  %v2140_v5 = vrot.slane %v2743_v56, 9  ;;  %v2141_v17 = vrot.slane %v2751_v1, 9  ;;  %3212 = vst [vmem:[#allocation6_spill] sm:$0xff] %v2875_v6  ;;  %v2164_v49 = vld [vmem:[%s3192_s1 + $0xe] sm:$0x3] }
  0xc3   : > { %2253 = vmatprep.mubr.msk.bf16.mxu1 %vm628_vm11, %v2089_v58  ;;  %v612_v9 = vrot.slane %v610_v52, 5  ;;  %v2142_v20 = vrot.slane %v2847_v18, 9  ;;  %v1321_v11 = vrot.slane %v2838_v53, 5  ;;  %v2143_v21 = vrot.slane %v2850_v36, 9  ;;  %v2882_v8 = vld [vmem:[#allocation2 + $0x38] sm:$0xf] }
  0xc4   : > { %v594_v3 = vrot.slane %v593_v61, 4  ;;  %v607_v54 = vor.u32 %v606_v63, %v603_v60  ;;  %v1325_v26 = vrot.slane %v2843_v43, 5  ;;  %v1314_v38 = vsel %vm2794_vm14, %v2140_v5, %v1313_v48  ;;  %v2887_v14 = vld [vmem:[%s3192_s1 + $0x6] sm:$0x3] }
  0xc5   : > { %v1318_v39 = vsel %vm2794_vm14, %v2141_v17, %v1317_v55  ;;  %v823_v22 = vrot.slane %v2643_v42, 5  ;;  %v1322_v12 = vsel %vm2794_vm14, %v2142_v20, %v1321_v11  ;;  %v2103_v48 = vrot.slane %v2631_v15, 9  ;;  %v2892_v55 = vld [vmem:[#allocation2 + $0x40] sm:$0xf]  ;;  %v2913_v20 = vld [vmem:[#allocation2 + $0x10] sm:$0xf] }
  0xc6   : > { %v599_v29 = vsel %vm2702_vm10, %v594_v3, %v598_v59  ;;  %v608_v31 = vrot.slane %v607_v54, 4  ;;  %v1326_v46 = vsel %vm2794_vm14, %v2143_v21, %v1325_v26  ;;  %v2148_v51 = vcombine.low %v1314_v38, %v1318_v39  ;;  %v2915_v11 = vld [vmem:[#allocation2 + $0x18] sm:$0xf]  ;;  %v2937_v39 = vld [vmem:[#allocation2 + $0x20] sm:$0xf] }
  0xc7   : > { %v1489_v23 = vsel %vm641_vm7, %v2155_v41, 0  ;;  %v1663_v34 = vshrl.u32 %v2864_v25, 16  ;;  %v2095_v52 = vcombine.low %v2631_v15, %v2674_v62  ;;  %v2144_v58 = vrot.slane %v2882_v8, 9 }
  0xc8   : > { %v613_v47 = vsel %vm2702_vm10, %v608_v31, %v612_v9  ;;  %v1329_v59 = vrot.slane %v2867_v28, 5  ;;  %v1666_v41 = vshll.u32 %v2864_v25, 16  ;;  %v2149_v60 = vcombine.low %v1322_v12, %v1326_v46 }
  0xc9   : > { %v2090_v42 = vcombine.low %v599_v29, %v613_v47  ;;  %v2145_v61 = vrot.slane %v2892_v55, 9  ;;  %v1333_v63 = vrot.slane %v2875_v6, 5  ;;  %v880_v15 = vsel %vm641_vm7, %v2786_v57, 0 }
  0xca   : > { %v2905_v5 = vsel %vm641_vm7, %v2164_v49, 0  ;;  %v2909_v17 = vsel %vm641_vm7, %v2887_v14, 0  ;;  %v827_v9 = vrot.slane %v2680_v2, 5  ;;  %v2919_v3 = vsel %vm2794_vm14, %v2103_v48, %v823_v22  ;;  %v2939_v22 = vld [vmem:[#allocation2 + $0x28] sm:$0xf] }
  0xcb   : > { %2254 = vmatmul.mubr.msk.bf16.gmra.mrb[4].mxu1 %vm628_vm11, %v2090_v42  ;;  %2300 = vmatmul.mubr.msk.bf16.vlgmr.msra.gmra.mrb[0].mxu0 %vm628_vm11, %v2148_v51  ;;  %v2104_v57 = vrot.slane %v2674_v62, 9  ;;  %v1330_v54 = vsel %vm2794_vm14, %v2144_v58, %v1329_v59  ;;  %v1334_v2 = vsel %vm2794_vm14, %v2145_v61, %v1333_v63  ;;  %v2927_v21 = vrot.slane %v1663_v34, 4  ;;  %v2958_v59 = vld [vmem:[#allocation2 + $0x38] sm:$0xf] }
  0xcc   : > { %2259 = vmatprep.mubr.msk.bf16.mxu1 %vm628_vm11, %v2095_v52  ;;  %2308 = vmatpush3.bf16.msra.mxu0 %v1489_v23  ;;  %v2929_v26 = vrot.slane %v1666_v41, 5  ;;  %v831_v29 = vrot.slane %v2722_v40, 5  ;;  %v835_v31 = vrot.slane %v2737_v13, 5  ;;  %v2096_v38 = vcombine.low %v2720_v37, %v2735_v33  ;;  %v2946_v13 = vld [vmem:[#allocation2 + $0x30] sm:$0xf] }
  0xcd   : > { %2303 = vmatprep.mubr.msk.bf16.mxu0 %vm628_vm11, %v2149_v60  ;;  %2411 = vmatprep.subr.msk.bf16.mxu0 %vm641_vm7, %v2164_v49  ;;  %v2097_v62 = vcombine.low %v2764_v24, %v2773_v44  ;;  %v2156_v47 = vcombine.low %v2913_v20, %v2915_v11  ;;  %v1565_v12 = vshrl.u32 %v2913_v20, 16  ;;  %v1568_v46 = vshll.u32 %v2913_v20, 16 }
  0xce   : > { %v1579_v40 = vshrl.u32 %v2915_v11, 16  ;;  %v2150_v48 = vcombine.low %v1330_v54, %v1334_v2  ;;  %v1582_v49 = vshll.u32 %v2915_v11, 16  ;;  %v2098_v42 = vcombine.low %v2788_v30, %v2807_v27 }
  0xcf   : > { %v828_v51 = vsel %vm2794_vm14, %v2104_v57, %v827_v9  ;;  %v2157_v23 = vcombine.low %v2937_v39, %v2939_v22  ;;  %v1593_v34 = vshrl.u32 %v2937_v39, 16  ;;  %v1596_v52 = vshll.u32 %v2937_v39, 16 }
  0xd0   : > { %v1607_v58 = vshrl.u32 %v2939_v22, 16  ;;  %v1610_v41 = vshll.u32 %v2939_v22, 16  ;;  %v2158_v60 = vcombine.low %v2946_v13, %v2958_v59  ;;  %v1621_v61 = vshrl.u32 %v2946_v13, 16 }
  0xd1   : > { %v2106_v63 = vrot.slane %v2735_v33, 9  ;;  %v2112_v9 = vcombine.low %v2919_v3, %v828_v51  ;;  %v2105_v57 = vrot.slane %v2720_v37, 9  ;;  %v2107_v54 = vrot.slane %v2764_v24, 9  ;;  %v2979_v33 = vld [vmem:[#allocation2 + $0x14] sm:$0x1] }
  0xd2   : > { %v839_v2 = vrot.slane %v2769_v32, 5  ;;  %v1635_v6 = vshrl.u32 %v2958_v59, 16  ;;  %v1584_v3 = vrot.slane %v1582_v49, 5  ;;  %v1638_v37 = vshll.u32 %v2958_v59, 16  ;;  %v2983_v32 = vld [vmem:[#allocation2 + $0x1c] sm:$0x1] }
  0xd3   : > { %2260 = vmatmul.mubr.msk.bf16.vlgmr.msra.gmra.mrb[0].mxu1 %vm628_vm11, %v2096_v38  ;;  %2304 = vmatmul.mubr.msk.bf16.gmra.mrb[4].mxu0 %vm628_vm11, %v2150_v48  ;;  %v2972_v38 = vld [vmem:[#allocation2 + $0x40] sm:$0xf]  ;;  %v1624_v48 = vshll.u32 %v2946_v13, 16  ;;  %v2108_v24 = vrot.slane %v2773_v44, 9  ;;  %v1570_v51 = vrot.slane %v1568_v46, 5  ;;  %v843_v28 = vrot.slane %v2790_v0, 5 }
  0xd4   : > { %2268 = vmatpush3.bf16.msra.mxu1 %v880_v15  ;;  %2263 = vmatprep.mubr.msk.bf16.mxu1 %vm628_vm11, %v2097_v62  ;;  %v1581_v15 = vrot.slane %v1579_v40, 4  ;;  %v1567_v62 = vrot.slane %v1565_v12, 4  ;;  %v832_v40 = vsel %vm2794_vm14, %v2105_v57, %v831_v29  ;;  %v2994_v49 = vsel %vm2794_vm14, %v2107_v54, %v839_v2  ;;  %v3005_v29 = vld [vmem:[%s3192_s1 + $0x10] sm:$0x3] }
  0xd5   : > { %2309 = vmatprep.mubr.msk.bf16.mxu0 %vm628_vm11, %v2156_v47  ;;  %2406 = vmatprep.subr.msk.bf16.mxu1 %vm641_vm7, %v2887_v14  ;;  %v836_v47 = vsel %vm2794_vm14, %v2106_v63, %v835_v31  ;;  %v2159_v14 = vcombine.low %v2972_v38, %v2864_v25  ;;  %v1649_v44 = vshrl.u32 %v2972_v38, 16  ;;  %v1574_v31 = vshll.u32 %v2979_v33, 16 }
  0xd6   : > { %v1585_v7 = vor.u32 %v1584_v3, %v1581_v15  ;;  %v1588_v0 = vshll.u32 %v2983_v32, 16  ;;  %v1595_v46 = vrot.slane %v1593_v34, 4  ;;  %v1598_v63 = vrot.slane %v1596_v52, 5  ;;  %v3011_v34 = vld [vmem:[#allocation2 + $0x24] sm:$0x1] }
  0xd7   : > { %v2113_v25 = vcombine.low %v832_v40, %v836_v47  ;;  %v1652_v15 = vshll.u32 %v2972_v38, 16  ;;  %v1571_v3 = vor.u32 %v1570_v51, %v1567_v62  ;;  %v1609_v57 = vrot.slane %v1607_v58, 4  ;;  %v3017_v51 = vld [vmem:[#allocation2 + $0x2c] sm:$0x1] }
  0xd8   : > { %v844_v54 = vsel %vm2794_vm14, %v2108_v24, %v843_v28  ;;  %v1586_v2 = vrot.slane %v1585_v7, 4  ;;  %v1599_v52 = vor.u32 %v1598_v63, %v1595_v46  ;;  %v1612_v47 = vrot.slane %v1610_v41, 5 }
  0xd9   : > { %v2109_v62 = vrot.slane %v2788_v30, 9  ;;  %v847_v58 = vrot.slane %v2823_v45, 5  ;;  %v1576_v28 = vrot.slane %v1574_v31, 5  ;;  %v1590_v7 = vrot.slane %v1588_v0, 5  ;;  %v3024_v30 = vld [vmem:[#allocation2 + $0x34] sm:$0x1] }
  0xda   : > { %v1613_v41 = vor.u32 %v1612_v47, %v1609_v57  ;;  %v1572_v24 = vrot.slane %v1571_v3, 4  ;;  %v1637_v45 = vrot.slane %v1635_v6, 4  ;;  %v1640_v40 = vrot.slane %v1638_v37, 5  ;;  %v3030_v0 = vld [vmem:[#allocation2 + $0x3c] sm:$0x1] }
  0xdb   : > { %2264 = vmatmul.mubr.msk.bf16.gmra.mrb[4].mxu1 %vm628_vm11, %v2098_v42  ;;  %2310 = vmatmul.mubr.msk.bf16.vlgmr.msra.gmra.mrb[0].mxu0 %vm628_vm11, %v2157_v23  ;;  %v1623_v42 = vrot.slane %v1621_v61, 4  ;;  %v1626_v23 = vrot.slane %v1624_v48, 5  ;;  %v1591_v61 = vsel %vm2702_vm10, %v1586_v2, %v1590_v7  ;;  %v1600_v48 = vrot.slane %v1599_v52, 4  ;;  %v3034_v6 = vld [vmem:[#allocation2 + $0x4c] sm:$0x1] }
  0xdc   : > { %2269 = vmatprep.mubr.msk.bf16.mxu1 %vm628_vm11, %v2112_v9  ;;  %2318 = vmatpush3.bf16.msra.mxu0 %v2905_v5  ;;  %v1616_v9 = vshll.u32 %v3017_v51, 16  ;;  %v2110_v5 = vrot.slane %v2807_v27, 9  ;;  %v1602_v31 = vshll.u32 %v3011_v34, 16  ;;  %v1630_v63 = vshll.u32 %v3024_v30, 16 }
  0xdd   : > { %2313 = vmatprep.mubr.msk.bf16.mxu0 %vm628_vm11, %v2158_v60  ;;  %2412 = vmatprep.subr.msk.bf16.mxu0 %vm641_vm7, %v3005_v29  ;;  %v851_v60 = vrot.slane %v2829_v50, 5  ;;  %v1627_v46 = vor.u32 %v1626_v23, %v1623_v42  ;;  %v1641_v3 = vor.u32 %v1640_v40, %v1637_v45  ;;  %v1644_v27 = vshll.u32 %v3030_v0, 16 }
  0xde   : > { %v1614_v57 = vrot.slane %v1613_v41, 4  ;;  %v1618_v47 = vrot.slane %v1616_v9, 5  ;;  %v1651_v37 = vrot.slane %v1649_v44, 4  ;;  %v1654_v12 = vrot.slane %v1652_v15, 5 }
  0xdf   : > { %v2114_v2 = vcombine.low %v2994_v49, %v844_v54  ;;  %v1577_v50 = vsel %vm2702_vm10, %v1572_v24, %v1576_v28  ;;  %v1669_v52 = vor.u32 %v2929_v26, %v2927_v21  ;;  %v1672_v42 = vshll.u32 %v3034_v6, 16  ;;  %v3050_v28 = vld [vmem:[#allocation2 + $0x44] sm:$0x1] }
  0xe0   : > { %v2165_v23 = vcombine.low %v1577_v50, %v1591_v61  ;;  %v848_v7 = vsel %vm2794_vm14, %v2109_v62, %v847_v58  ;;  %v852_v44 = vsel %vm2794_vm14, %v2110_v5, %v851_v60  ;;  %v1604_v49 = vrot.slane %v1602_v31, 5 }
  0xe1   : > { %v1628_v15 = vrot.slane %v1627_v46, 4  ;;  %v1632_v21 = vrot.slane %v1630_v63, 5  ;;  %v1642_v26 = vrot.slane %v1641_v3, 4  ;;  %v1646_v54 = vrot.slane %v1644_v27, 5 }
  0xe2   : > { %v1658_v62 = vshll.u32 %v3050_v28, 16  ;;  %v1845_v58 = vsel %vm641_vm7, %v3005_v29, 0  ;;  %v1138_v41 = vshrl.u32 %v2847_v18, 16  ;;  %v1141_v9 = vshll.u32 %v2847_v18, 16 }
  0xe3   : > { %2270 = vmatmul.mubr.msk.bf16.vlgmr.msra.gmra.mrb[0].mxu1 %vm628_vm11, %v2113_v25  ;;  %2314 = vmatmul.mubr.msk.bf16.gmra.mrb[4].mxu0 %vm628_vm11, %v2159_v14  ;;  %v1605_v25 = vsel %vm2702_vm10, %v1600_v48, %v1604_v49  ;;  %v1619_v14 = vsel %vm2702_vm10, %v1614_v57, %v1618_v47  ;;  %v1670_v24 = vrot.slane %v1669_v52, 4  ;;  %v1674_v5 = vrot.slane %v1672_v42, 5 }
  0xe4   : > { %2278 = vmatpush3.bf16.msra.mxu1 %v2909_v17  ;;  %2273 = vmatprep.mubr.msk.bf16.mxu1 %vm628_vm11, %v2114_v2  ;;  %v1655_v17 = vor.u32 %v1654_v12, %v1651_v37  ;;  %v1152_v45 = vshrl.u32 %v2850_v36, 16  ;;  %v1155_v40 = vshll.u32 %v2850_v36, 16  ;;  %v2115_v61 = vcombine.low %v848_v7, %v852_v44 }
  0xe5   : > { %2319 = vmatprep.mubr.msk.bf16.mxu0 %vm628_vm11, %v2165_v23  ;;  %2408 = vmatprep.subr.msk.bf16.mxu1 %vm641_vm7, %v2606_v10  ;;  %v2166_v60 = vcombine.low %v1605_v25, %v1619_v14  ;;  %v1633_v10 = vsel %vm2702_vm10, %v1628_v15, %v1632_v21  ;;  %v1647_v12 = vsel %vm2702_vm10, %v1642_v26, %v1646_v54  ;;  %v1660_v29 = vrot.slane %v1658_v62, 5 }
  0xe6   : > { %v1656_v48 = vrot.slane %v1655_v17, 4  ;;  %v2174_v31 = vrot.slane %v2915_v11, 9  ;;  %v1792_v46 = vrot.slane %v2983_v32, 5  ;;  %v2173_v63 = vrot.slane %v2913_v20, 9 }
  0xe7   : > { %v1140_v3 = vrot.slane %v1138_v41, 4  ;;  %v1143_v27 = vrot.slane %v1141_v9, 5  ;;  %v2167_v57 = vcombine.low %v1633_v10, %v1647_v12  ;;  %v1788_v47 = vrot.slane %v2979_v33, 5  ;;  %v3217_v10 = vld [vmem:[#allocation4_spill] sm:$0xff] }
  0xe8   : > { %v1154_v37 = vrot.slane %v1152_v45, 4  ;;  %v1157_v2 = vrot.slane %v1155_v40, 5  ;;  %v3213_v50 = vcombine.low %v2682_v4, %v2694_v16  ;;  %v1675_v20 = vsel %vm2702_vm10, %v1670_v24, %v1674_v5  ;;  %v3215_v45 = vld [vmem:[#allocation5_spill] sm:$0xff] }
  0xe9   : > { %v1661_v11 = vsel %vm2702_vm10, %v1656_v48, %v1660_v29  ;;  %v1793_v32 = vsel %vm2794_vm14, %v2174_v31, %v1792_v46  ;;  %v1147_v33 = vshll.u32 %v2838_v53, 16  ;;  %v1161_v52 = vshll.u32 %v2843_v43, 16 }
  0xea   : > { %v1166_v4 = vshrl.u32 %v2882_v8, 16  ;;  %v1169_v16 = vshll.u32 %v2882_v8, 16  ;;  %v1144_v42 = vor.u32 %v1143_v27, %v1140_v3  ;;  %v1180_v23 = vshrl.u32 %v2892_v55, 16 }
  0xeb   : > { %2274 = vmatmul.mubr.msk.bf16.gmra.mrb[4].mxu1 %vm628_vm11, %v2115_v61  ;;  %2320 = vmatmul.mubr.msk.bf16.vlgmr.msra.gmra.mrb[0].mxu0 %vm628_vm11, %v2166_v60  ;;  %v1183_v7 = vshll.u32 %v2892_v55, 16  ;;  %v1789_v44 = vsel %vm2794_vm14, %v2173_v63, %v1788_v47  ;;  %v1158_v49 = vor.u32 %v1157_v2, %v1154_v37  ;;  %v2122_v15 = vcombine.low %v2743_v56, %v2751_v1  ;;  %v3216_v61 = vld [vmem:[#allocation6_spill] sm:$0xff] }
  0xec   : > { %2279 = vmatprep.mubr.msk.bf16.mxu1 %vm628_vm11, %v3213_v50  ;;  %2328 = vmatpush3.bf16.msra.mxu0 %v1845_v58  ;;  %v2123_v53 = vcombine.low %v2847_v18, %v2850_v36  ;;  %v2168_v43 = vcombine.low %v1661_v11, %v1675_v20  ;;  %v2182_v21 = vcombine.low %v1789_v44, %v1793_v32  ;;  %v1149_v26 = vrot.slane %v1147_v33, 5 }
  0xed   : > { %2323 = vmatprep.mubr.msk.bf16.mxu0 %vm628_vm11, %v2167_v57  ;;  %v1163_v54 = vrot.slane %v1161_v52, 5  ;;  %v2175_v25 = vrot.slane %v2937_v39, 9  ;;  %v1796_v14 = vrot.slane %v3011_v34, 5  ;;  %v1145_v17 = vrot.slane %v1144_v42, 4  ;;  %v3214_v39 = vld [vmem:[#allocation3_spill] sm:$0xff] }
  0xee   : > { %v2176_v62 = vrot.slane %v2939_v22, 9  ;;  %v1800_v58 = vrot.slane %v3017_v51, 5  ;;  %v2177_v41 = vrot.slane %v2946_v13, 9  ;;  %v1159_v56 = vrot.slane %v1158_v49, 4 }
  0xef   : > { %v1804_v1 = vrot.slane %v3024_v30, 5  ;;  %v2178_v18 = vrot.slane %v2958_v59, 9  ;;  %v1808_v36 = vrot.slane %v3030_v0, 5  ;;  %v1168_v22 = vrot.slane %v1166_v4, 4 }
  0xf0   : > { %v1171_v34 = vrot.slane %v1169_v16, 5  ;;  %v1182_v51 = vrot.slane %v1180_v23, 4  ;;  %v1185_v9 = vrot.slane %v1183_v7, 5  ;;  %v1797_v13 = vsel %vm2794_vm14, %v2175_v25, %v1796_v14 }
  0xf1   : > { %v1801_v30 = vsel %vm2794_vm14, %v2176_v62, %v1800_v58  ;;  %v1150_v59 = vsel %vm2702_vm10, %v1145_v17, %v1149_v26  ;;  %v1164_v0 = vsel %vm2702_vm10, %v1159_v56, %v1163_v54  ;;  %v1805_v24 = vsel %vm2794_vm14, %v2177_v41, %v1804_v1 }
  0xf2   : > { %v1809_v5 = vsel %vm2794_vm14, %v2178_v18, %v1808_v36  ;;  %v1175_v40 = vshll.u32 %v3215_v45, 16  ;;  %v1189_v60 = vshll.u32 %v3216_v61, 16  ;;  %v2180_v12 = vrot.slane %v3217_v10, 9 }
  0xf3   : > { %2280 = vmatmul.mubr.msk.bf16.vlgmr.msra.gmra.mrb[0].mxu1 %vm628_vm11, %v2122_v15  ;;  %2324 = vmatmul.mubr.msk.bf16.gmra.mrb[4].mxu0 %vm628_vm11, %v2168_v43  ;;  %v1816_v48 = vrot.slane %v3034_v6, 5  ;;  %v2124_v29 = vcombine.low %v2882_v8, %v2892_v55  ;;  %v2183_v31 = vcombine.low %v1797_v13, %v1801_v30  ;;  %v1172_v46 = vor.u32 %v1171_v34, %v1168_v22 }
  0xf4   : > { %2338 = vmatpush3.bf16.msra.mxu1 %v3214_v39  ;;  %2283 = vmatprep.mubr.msk.bf16.mxu1 %vm628_vm11, %v2123_v53  ;;  %v1186_v63 = vor.u32 %v1185_v9, %v1182_v51  ;;  %v2132_v3 = vcombine.low %v1150_v59, %v1164_v0  ;;  %v2184_v27 = vcombine.low %v1805_v24, %v1809_v5  ;;  %v2179_v57 = vrot.slane %v2972_v38, 9 }
  0xf5   : > { %2329 = vmatprep.mubr.msk.bf16.mxu0 %vm628_vm11, %v2182_v21  ;;  %v1812_v47 = vrot.slane %v3050_v28, 5  ;;  %v1177_v6 = vrot.slane %v1175_v40, 5  ;;  %v1817_v8 = vsel %vm2794_vm14, %v2180_v12, %v1816_v48  ;;  %v1191_v55 = vrot.slane %v1189_v60, 5 }
  0xf6   : > { %v1173_v37 = vrot.slane %v1172_v46, 4  ;;  %v1187_v2 = vrot.slane %v1186_v63, 4 }
  0xf7   : > { %v1813_v38 = vsel %vm2794_vm14, %v2179_v57, %v1812_v47 }
  0xf8   : > { %v2185_v28 = vcombine.low %v1813_v38, %v1817_v8  ;;  %v1178_v50 = vsel %vm2702_vm10, %v1173_v37, %v1177_v6  ;;  %v1192_v20 = vsel %vm2702_vm10, %v1187_v2, %v1191_v55 }
  0xf9   : > { %v2133_v11 = vcombine.low %v1178_v50, %v1192_v20 }
  0xfb   : > { %2284 = vmatmul.mubr.msk.bf16.gmra.mrb[4].mxu1 %vm628_vm11, %v2124_v29  ;;  %2330 = vmatmul.mubr.msk.bf16.vlgmr.msra.gmra.mrb[0].mxu0 %vm628_vm11, %v2183_v31 }
  0xfc   : > { %2293 = vmatprep.mubr.msk.bf16.mxu1 %vm628_vm11, %v2132_v3  ;;  %2333 = vmatprep.mubr.msk.bf16.mxu0 %vm628_vm11, %v2184_v27 }
 0x103   : > { %2334 = vmatmul.mubr.msk.bf16.gmra.mrb[4].mxu0 %vm628_vm11, %v2185_v28 }
 0x107   : > { %2294 = vmatmul.mubr.msk.bf16.vlgmr.msra.gmra.mrb[4].mxu1 %vm628_vm11, %v2133_v11 }
 0x1c6   : > { %v2281_v32 = vpop.f32.mrb[0].mxu1 }
 0x1c7   : > { %v1042_v33 = vpop.f32.mrb[1].mxu1 }
 0x1c8   : > { %v2282_v52 = vpop.f32.mrb[2].mxu1 }
 0x1c9   : > { %v1045_v4 = vpop.f32.mrb[3].mxu1 }
 0x1ce   : > { %v2331_v19 = vpop.f32.mrb[0].mxu0 }
 0x1cf   : > { %v2339_v35 = vadd.f32 %v2331_v19, %v2281_v32  ;;  %v1881_v16 = vpop.f32.mrb[1].mxu0 }
 0x1d0   : > { %v2340_v42 = vadd.f32 %v1881_v16, %v1042_v33  ;;  %v2332_v23 = vpop.f32.mrb[2].mxu0 }
 0x1d1   : > { %1923 = vst.msk [vmem:[%s3150_s15 + $0x10] sm:$0xff] %vm1920_vm15, %v2339_v35  ;;  %v2341_v7 = vadd.f32 %v2332_v23, %v2282_v52  ;;  %v1884_v44 = vpop.f32.mrb[3].mxu0  ;;  %v1954_v53 = vmul.f32 %v2339_v35, %v2339_v35  ;;  %v1932_v25 = vsel %vm1920_vm15, %v2339_v35, 0.0 }
 0x1d2   : > { %1921 = vst.msk [vmem:[%s3150_s15] sm:$0xff] %vm1920_vm15, %v2340_v42  ;;  %v1952_v49 = vmul.f32 %v2340_v42, %v2340_v42  ;;  %v2342_v15 = vadd.f32 %v1884_v44, %v1045_v4  ;;  %v1929_v43 = vsel %vm1920_vm15, %v2340_v42, 0.0 }
 0x1d3   : > { %1924 = vst.msk [vmem:[%s3150_s15 + $0x18] sm:$0xff] %vm1920_vm15, %v2341_v7  ;;  %v1955_v17 = vmul.f32 %v2341_v7, %v2341_v7  ;;  %v1963_v18 = vsel %vm1920_vm15, %v1954_v53, 0.0  ;;  %v1934_v36 = vsel %vm1920_vm15, %v2341_v7, 0.0 }
 0x1d4   : > { %1922 = vst.msk [vmem:[%s3150_s15 + $0x8] sm:$0xff] %vm1920_vm15, %v2342_v15  ;;  %v1930_v21 = vsel %vm1920_vm15, %v2342_v15, 0.0  ;;  %v1953_v26 = vmul.f32 %v2342_v15, %v2342_v15  ;;  %v1960_v14 = vsel %vm1920_vm15, %v1952_v49, 0.0 }
 0x1d5   : > { %v1931_v54 = vadd.f32 %v1930_v21, %v1929_v43  ;;  %v1965_v9 = vsel %vm1920_vm15, %v1955_v17, 0.0 }
 0x1d6   : > { %v1961_v62 = vsel %vm1920_vm15, %v1953_v26, 0.0  ;;  %v2335_v58 = vpop.f32.mrb[4].mxu0 }
 0x1d7   : > { %v1933_v41 = vadd.f32 %v1932_v25, %v1931_v54  ;;  %v1962_v56 = vadd.f32 %v1961_v62, %v1960_v14  ;;  %v1897_v1 = vpop.f32.mrb[5].mxu0 }
 0x1d8   : > { %v2336_v39 = vpop.f32.mrb[6].mxu0 }
 0x1d9   : > { %v1964_v22 = vadd.f32 %v1963_v18, %v1962_v56  ;;  %v1935_v34 = vadd.f32 %v1934_v36, %v1933_v41  ;;  %v1900_v51 = vpop.f32.mrb[7].mxu0 }
 0x1da   : > { %v2295_v13 = vpop.f32.mrb[4].mxu1 }
 0x1db   : > { %v2343_v30 = vadd.f32 %v2335_v58, %v2295_v13  ;;  %v1272_v59 = vpop.f32.mrb[5].mxu1  ;;  %v1966_v0 = vadd.f32 %v1965_v9, %v1964_v22 }
 0x1dc   : > { %v2344_v24 = vadd.f32 %v1897_v1, %v1272_v59  ;;  %v2296_v5 = vpop.f32.mrb[6].mxu1 }
 0x1dd   : > { %1927 = vst.msk [vmem:[%s3150_s15 + $0x30] sm:$0xff] %vm1920_vm15, %v2343_v30  ;;  %v2345_v45 = vadd.f32 %v2336_v39, %v2296_v5  ;;  %v1275_v40 = vpop.f32.mrb[7].mxu1  ;;  %v1958_v48 = vmul.f32 %v2343_v30, %v2343_v30  ;;  %v1940_v27 = vsel %vm1920_vm15, %v2343_v30, 0.0 }
 0x1de   : > { %1925 = vst.msk [vmem:[%s3150_s15 + $0x20] sm:$0xff] %vm1920_vm15, %v2344_v24  ;;  %v1936_v61 = vsel %vm1920_vm15, %v2344_v24, 0.0  ;;  %v1956_v60 = vmul.f32 %v2344_v24, %v2344_v24  ;;  %v2346_v10 = vadd.f32 %v1900_v51, %v1275_v40 }
 0x1df   : > { %v1937_v12 = vadd.f32 %v1936_v61, %v1935_v34  ;;  %1928 = vst.msk [vmem:[%s3150_s15 + $0x38] sm:$0xff] %vm1920_vm15, %v2345_v45  ;;  %v1959_v57 = vmul.f32 %v2345_v45, %v2345_v45  ;;  %v1971_v55 = vsel %vm1920_vm15, %v1958_v48, 0.0  ;;  %v1942_v37 = vsel %vm1920_vm15, %v2345_v45, 0.0 }
 0x1e0   : > { %v1967_v29 = vsel %vm1920_vm15, %v1956_v60, 0.0  ;;  %1926 = vst.msk [vmem:[%s3150_s15 + $0x28] sm:$0xff] %vm1920_vm15, %v2346_v10  ;;  %v1938_v31 = vsel %vm1920_vm15, %v2346_v10, 0.0  ;;  %v1957_v46 = vmul.f32 %v2346_v10, %v2346_v10 }
 0x1e1   : > { %v1968_v63 = vadd.f32 %v1967_v29, %v1966_v0  ;;  %v1939_v3 = vadd.f32 %v1938_v31, %v1937_v12  ;;  %v1973_v28 = vsel %vm1920_vm15, %v1959_v57, 0.0 }
 0x1e2   : > { %v1969_v47 = vsel %vm1920_vm15, %v1957_v46, 0.0 }
 0x1e3   : > { %v1941_v6 = vadd.f32 %v1940_v27, %v1939_v3  ;;  %v1970_v8 = vadd.f32 %v1969_v47, %v1968_v63 }
 0x1e5   : > { %v1943_v2 = vadd.f32 %v1942_v37, %v1941_v6  ;;  %v1972_v38 = vadd.f32 %v1971_v55, %v1970_v8 }
 0x1e7   : > { %v1944_v50 = vrot.slane %v1943_v2, 4  ;;  %v1974_v20 = vadd.f32 %v1973_v28, %v1972_v38 }
 0x1e9   : > { %v1945_v11 = vadd.f32 %v1944_v50, %v1943_v2  ;;  %v1975_v32 = vrot.slane %v1974_v20, 4 }
 0x1eb   : > { %v1946_v33 = vrot.slane %v1945_v11, 2  ;;  %v1976_v52 = vadd.f32 %v1975_v32, %v1974_v20 }
 0x1ed   : > { %v1947_v4 = vadd.f32 %v1946_v33, %v1945_v11  ;;  %v1977_v19 = vrot.slane %v1976_v52, 2 }
 0x1ef   : > { %v1948_v35 = vrot.slane %v1947_v4, 1  ;;  %v1978_v16 = vadd.f32 %v1977_v19, %v1976_v52 }
 0x1f1   : > { %v1949_v42 = vadd.f32 %v1948_v35, %v1947_v4  ;;  %v1979_v23 = vrot.slane %v1978_v16, 1 }
 0x1f3   : > { %1951 = vst.msk [vmem:[%s181_s19] sm:$0x1] %vm1950_vm0, %v1949_v42  ;;  %v1980_v7 = vadd.f32 %v1979_v23, %v1978_v16 }
 0x1f5   : > { %1981 = vst.msk [vmem:[%s181_s19 + $0x1] sm:$0x1] %vm1950_vm0, %v1980_v7 }
 0x1f6 PF: > { %s14_s12 = sadd.s32 1, %s2456_s12  }
 0x1f7   : > { %p11_p4 = scmp.ge.s32.totalorder %s14_s12, 4  }
 0x1f9   :  { %13 = sbr.rel (!%p11_p4) target bundleno = 1 (0x1), region = 81 }

</bundles_post_ra>
